<compile_context>
chip_gen: v7x
topology: tpu7x:2x2x1
jax: 0.10.0
libtpu: 0.0.40
codegen_flags: <defaults>
</compile_context>

<pallas_src>
import functools

import jax
import jax.numpy as jnp
from jax.experimental import pallas as pl
from jax.experimental.pallas import tpu as pltpu

LANE = 128


def _round_up(x, m):
    return (x + m - 1) // m * m


def _default_vmem_limit():
    # ~75% of physical VMEM, capped at 96 MiB: 96 MiB on v5e/v6e (128 MiB
    # physical), 48 MiB on v7x (64 MiB physical).  Fallback 48 MiB.
    try:
        cap = int(pltpu.get_tpu_info().vmem_capacity_bytes)
    except Exception:
        cap = 64 * 1024 * 1024
    return max(32 * 1024 * 1024, min(int(cap * 3 // 4), 96 * 1024 * 1024))


VMEM_LIMIT = _default_vmem_limit()


def _row_tile(h, w, max_rows=2048):
    """Largest divisor tr of h such that tr*w <= max_rows (>=1)."""
    best = 1
    for tr in range(1, h + 1):
        if h % tr == 0 and tr * w <= max_rows:
            best = tr
    return best


def _m_tile(m, max_rows=2048):
    """Row tile for a flat (M, K) operand: full M if small, else the largest
    multiple-of-8 divisor of M that is <= max_rows (keeps BlockSpecs legal)."""
    if m <= max_rows:
        return m
    for tm in range(max_rows - max_rows % 8, 7, -8):
        if m % tm == 0:
            return tm
    return m


def _pick_tn(coutp):
    # 256-wide N tiles feed the v6e/v7x 256x256 MXU; 128 otherwise (v5e MXUs
    # are 128x128 so 128 is also the right choice there).
    return 256 if coutp % 256 == 0 else 128


# ---------------------------------------------------------------------------
# Kernel 1: fused conv3x3 (in-kernel im2col over a padded VMEM scratch)
#           + optional fused BatchNorm-apply/ReLU on the INPUT
#           + partial BatchNorm statistics of the OUTPUT
# ---------------------------------------------------------------------------
def _conv3x3_stats_kernel(x_ref, s_ref, b_ref, w_ref, h_ref, stats_ref,
                          xpad_ref, *, apply_input_bn_relu):
    # x_ref:     (1, H, W, Cin)     bf16  unpadded input image (resident per i)
    # s_ref/b_ref: (1, Cin)         f32   BN scale/shift for the input (opt.)
    # w_ref:     (3, 3, Cin, tn)    bf16  repacked conv weights
    # h_ref:     (1, tr, W, tn)     bf16  conv output row strip
    # stats_ref: (1, 1, 2, tn)      f32   partial [sum, sum_sq] of this strip
    # xpad_ref:  (H+2, W+2, Cin)    bf16  VMEM scratch, persists across r
    hh, ww, cin = x_ref.shape[1], x_ref.shape[2], x_ref.shape[3]
    tr = h_ref.shape[1]
    tn = w_ref.shape[3]
    r = pl.program_id(2)

    # Fill the spatially padded scratch once per (image, Cout-tile) sweep.
    # Guarded on r==0 only (not j==0) so it stays correct if the megacore
    # splits the parallel j axis across TensorCores.
    @pl.when(r == 0)
    def _fill_padded_input():
        xpad_ref[...] = jnp.zeros_like(xpad_ref)
        v = x_ref[0]
        if apply_input_bn_relu:
            v = jnp.maximum(v.astype(jnp.float32) * s_ref[...] + b_ref[...], 0.0)
        xpad_ref[1:hh + 1, 1:ww + 1, :] = v.astype(xpad_ref.dtype)

    r0 = r * tr
    acc = jnp.zeros((tr * ww, tn), jnp.float32)
    for dy in range(3):
        for dx in range(3):
            # shifted window == one im2col tap, straight out of the padded scratch
            xt = xpad_ref[pl.ds(r0 + dy, tr), dx:dx + ww, :].reshape(tr * ww, cin)
            acc = acc + jnp.dot(xt, w_ref[dy, dx, :, :],
                                preferred_element_type=jnp.float32)

    h_ref[0] = acc.reshape(tr, ww, tn).astype(h_ref.dtype)
    stats_ref[0, 0, 0:1, :] = jnp.sum(acc, axis=0, keepdims=True)
    stats_ref[0, 0, 1:2, :] = jnp.sum(acc * acc, axis=0, keepdims=True)


def conv3x3_with_stats(x, w_prep, scale=None, shift=None,
                       apply_input_bn_relu=False):
    """x: (N, H, W, Cin) bf16; w_prep: (3,3,Cin,Coutp) bf16;
    scale/shift: (1, Cin) f32 BN params applied (with ReLU) to x in-kernel.

    Returns h: (N, H, W, Coutp) bf16 and stats: (N, nr, 2, Coutp) f32 partial
    [sum, sum of squares] of h (reduced over (N, nr) in glue)."""
    n, hh, ww, cin = x.shape
    assert w_prep.shape[2] == cin
    coutp = w_prep.shape[3]
    tn = _pick_tn(coutp)
    tr = _row_tile(hh, ww)
    nr = hh // tr
    nj = coutp // tn

    if scale is None:
        scale = jnp.ones((1, cin), jnp.float32)
        shift = jnp.zeros((1, cin), jnp.float32)

    kernel = functools.partial(_conv3x3_stats_kernel,
                               apply_input_bn_relu=apply_input_bn_relu)

    return pl.pallas_call(
        kernel,
        out_shape=(jax.ShapeDtypeStruct((n, hh, ww, coutp), jnp.bfloat16),
                   jax.ShapeDtypeStruct((n, nr, 2, coutp), jnp.float32)),
        grid_spec=pltpu.PrefetchScalarGridSpec(
            num_scalar_prefetch=0,
            grid=(n, nj, nr),                 # r innermost: weights + scratch reused
            in_specs=[
                pl.BlockSpec((1, hh, ww, cin), lambda i, j, r: (i, 0, 0, 0)),
                pl.BlockSpec((1, cin), lambda i, j, r: (0, 0)),
                pl.BlockSpec((1, cin), lambda i, j, r: (0, 0)),
                pl.BlockSpec((3, 3, cin, tn), lambda i, j, r: (0, 0, 0, j)),
            ],
            out_specs=[
                pl.BlockSpec((1, tr, ww, tn), lambda i, j, r: (i, r, 0, j)),
                pl.BlockSpec((1, 1, 2, tn), lambda i, j, r: (i, r, 0, j)),
            ],
            scratch_shapes=[pltpu.VMEM((hh + 2, ww + 2, cin), jnp.bfloat16)]),
        compiler_params=pltpu.CompilerParams(
            dimension_semantics=("parallel", "parallel", "arbitrary"),
            vmem_limit_bytes=VMEM_LIMIT),
    )(x, scale, shift, w_prep)


# ---------------------------------------------------------------------------
# Kernel 2: matmul + partial BN statistics (conv1 with taps folded into K)
# ---------------------------------------------------------------------------
def _matmul_stats_kernel(x_ref, w_ref, h_ref, stats_ref):
    # x_ref: (1, tm, K) bf16; w_ref: (K, tn) bf16
    acc = jnp.dot(x_ref[0], w_ref[...], preferred_element_type=jnp.float32)
    h_ref[0] = acc.astype(h_ref.dtype)
    stats_ref[0, 0, 0:1, :] = jnp.sum(acc, axis=0, keepdims=True)
    stats_ref[0, 0, 1:2, :] = jnp.sum(acc * acc, axis=0, keepdims=True)


def matmul_with_stats(x, w_prep):
    """x: (N, M, K) bf16; w_prep: (K, Coutp) bf16.
    Returns h: (N, M, Coutp) bf16 and stats: (N, nr, 2, Coutp) f32."""
    n, m, k = x.shape
    coutp = w_prep.shape[1]
    tn = _pick_tn(coutp)
    tm = _m_tile(m)
    nr = m // tm
    nj = coutp // tn

    return pl.pallas_call(
        _matmul_stats_kernel,
        out_shape=(jax.ShapeDtypeStruct((n, m, coutp), jnp.bfloat16),
                   jax.ShapeDtypeStruct((n, nr, 2, coutp), jnp.float32)),
        grid_spec=pltpu.PrefetchScalarGridSpec(
            num_scalar_prefetch=0,
            grid=(n, nj, nr),
            in_specs=[
                pl.BlockSpec((1, tm, k), lambda i, j, r: (i, r, 0)),
                pl.BlockSpec((k, tn), lambda i, j, r: (0, j)),
            ],
            out_specs=[
                pl.BlockSpec((1, tm, tn), lambda i, j, r: (i, r, j)),
                pl.BlockSpec((1, 1, 2, tn), lambda i, j, r: (i, r, 0, j)),
            ]),
        compiler_params=pltpu.CompilerParams(
            dimension_semantics=("parallel", "parallel", "parallel"),
            vmem_limit_bytes=VMEM_LIMIT),
    )(x, w_prep)


# ---------------------------------------------------------------------------
# Kernel 3: final BatchNorm-apply + ReLU + time-embedding add (tiled, f32 out)
# ---------------------------------------------------------------------------
def _bn_relu_add_kernel(h_ref, s_ref, b_ref, t_ref, o_ref):
    y = jnp.maximum(h_ref[0].astype(jnp.float32) * s_ref[...] + b_ref[...], 0.0)
    o_ref[0] = y + t_ref[0, 0]          # (1, C) broadcast over (tr, W, C)


def bn_relu_add(h, scale, shift, temb):
    """h: (N, H, W, Cp) bf16; scale/shift: (1, Cp) f32; temb: (N, Cp) f32."""
    n, hh, ww, cp = h.shape
    tr = _row_tile(hh, ww, max_rows=2048)
    temb4 = temb.reshape(n, 1, 1, cp)

    return pl.pallas_call(
        _bn_relu_add_kernel,
        out_shape=jax.ShapeDtypeStruct((n, hh, ww, cp), jnp.float32),
        grid_spec=pltpu.PrefetchScalarGridSpec(
            num_scalar_prefetch=0,
            grid=(n, hh // tr),
            in_specs=[
                pl.BlockSpec((1, tr, ww, cp), lambda i, r: (i, r, 0, 0)),
                pl.BlockSpec((1, cp), lambda i, r: (0, 0)),
                pl.BlockSpec((1, cp), lambda i, r: (0, 0)),
                pl.BlockSpec((1, 1, 1, cp), lambda i, r: (i, 0, 0, 0)),
            ],
            out_specs=pl.BlockSpec((1, tr, ww, cp), lambda i, r: (i, r, 0, 0))),
        compiler_params=pltpu.CompilerParams(
            dimension_semantics=("parallel", "parallel"),
            vmem_limit_bytes=VMEM_LIMIT),
    )(h, scale, shift, temb4)


# ---------------------------------------------------------------------------
# Kernel 4: tiny time MLP (Linear + bias + ReLU fused epilogue)
# ---------------------------------------------------------------------------
def _time_mlp_kernel(t_ref, w_ref, b_ref, o_ref):
    y = jnp.dot(t_ref[...].astype(jnp.bfloat16), w_ref[...],
                preferred_element_type=jnp.float32)
    o_ref[...] = jnp.maximum(y + b_ref[...], 0.0)


def time_mlp(t, w_prep, b_prep):
    """t: (N, Temb) f32; w_prep: (Temb, Coutp) bf16; b_prep: (1, Coutp) f32."""
    n = t.shape[0]
    coutp = w_prep.shape[1]
    return pl.pallas_call(
        _time_mlp_kernel,
        out_shape=jax.ShapeDtypeStruct((n, coutp), jnp.float32),
        compiler_params=pltpu.CompilerParams(vmem_limit_bytes=VMEM_LIMIT),
    )(t, w_prep, b_prep)


# ---------------------------------------------------------------------------
# Glue
# ---------------------------------------------------------------------------
def _bn_scale_shift(stats, gamma_p, beta_p, count, eps=1e-5):
    """stats: (N, nr, 2, Cp) partial [sum, sum_sq]; gamma_p/beta_p: (1, Cp).
    Note: E[x^2]-mean^2 in f32; fine for zero-ish-mean conv activations."""
    total = jnp.sum(stats[:, :, 0, :], axis=(0, 1))
    total_sq = jnp.sum(stats[:, :, 1, :], axis=(0, 1))
    mean = total / count
    var = jnp.maximum(total_sq / count - mean * mean, 0.0)   # biased (PyTorch)
    scale = gamma_p[0] * jax.lax.rsqrt(var + eps)
    shift = beta_p[0] - mean * scale
    return scale[None, :], shift[None, :]


def prepare_params(params):
    """One-time weight repack (hoisted out of the hot path).  Conv weights go
    to (3,3,Cin,Coutp) bf16 (or (9*Cin, Coutp) for the small-Cin conv1 path),
    vectors to (1, Coutp) f32.  Zero padding keeps padded channels exactly
    zero through the whole pipeline."""
    w1, w2 = params["conv1_w"], params["conv2_w"]
    cmid, cin = w1.shape[0], w1.shape[1]
    cout = w2.shape[0]
    cmid_p = _round_up(cmid, LANE)
    cout_p = _round_up(cout, LANE)

    def conv_w(w, cin_to, cout_to):
        co, ci = w.shape[0], w.shape[1]
        wt = jnp.transpose(w, (2, 3, 1, 0))                     # (3,3,Cin,Cout)
        wt = jnp.pad(wt, ((0, 0), (0, 0), (0, cin_to - ci), (0, cout_to - co)))
        return wt.astype(jnp.bfloat16)

    def vec(v, cp):
        return jnp.pad(v, (0, cp - v.shape[0])).reshape(1, cp).astype(jnp.float32)

    prep = dict(
        w2=conv_w(w2, cmid_p, cout_p),
        bn1_g=vec(params["bn1_g"], cmid_p),
        bn1_b=vec(params["bn1_b"], cmid_p),
        bn2_g=vec(params["bn2_g"], cout_p),
        bn2_b=vec(params["bn2_b"], cout_p),
        time_w=jnp.pad(params["time_w"].T,
                       ((0, 0), (0, cout_p - cout))).astype(jnp.bfloat16),
        time_b=vec(params["time_b"], cout_p),
    )
    if 9 * cin <= 512:
        # small Cin: fold the 9 taps into the contraction dim (K = 9*Cin)
        prep["w1_k"] = conv_w(w1, cin, cmid_p).reshape(9 * cin, cmid_p)
    else:
        prep["w1_conv"] = conv_w(w1, cin, cmid_p)
    return prep


@functools.partial(jax.jit, static_argnums=(3,))
def double_conv_forward(prep, x, t, out_channels):
    """x: (N, Cin, H, W) f32 NCHW; t: (N, time_emb_dim) f32.
    Returns (N, out_channels, H, W) f32, matching PyTorch DoubleConv.forward."""
    n, cin, hh, ww = x.shape
    count = n * hh * ww

    x_nhwc = jnp.transpose(x, (0, 2, 3, 1))

    # ---- conv1 + partial BN1 statistics -----------------------------------
    if "w1_k" in prep:
        # tiny-Cin path: im2col patches built in XLA glue (cheap for small Cin),
        # one dense matmul with K = 9*Cin keeps the MXU contraction well fed.
        xp = jnp.pad(x_nhwc, ((0, 0), (1, 1), (1, 1), (0, 0)))
        taps = [xp[:, dy:dy + hh, dx:dx + ww, :]
                for dy in range(3) for dx in range(3)]
        patches = jnp.concatenate(taps, axis=-1)
        patches = patches.reshape(n, hh * ww, 9 * cin).astype(jnp.bfloat16)
        h1, st1 = matmul_with_stats(patches, prep["w1_k"])
        h1 = h1.reshape(n, hh, ww, -1)                          # bf16
    else:
        h1, st1 = conv3x3_with_stats(x_nhwc.astype(jnp.bfloat16),
                                     prep["w1_conv"],
                                     apply_input_bn_relu=False)
    s1, b1 = _bn_scale_shift(st1, prep["bn1_g"], prep["bn1_b"], count)

    # ---- conv2 with BN1-apply + ReLU + spatial zero-pad fused in-kernel ----
    h2, st2 = conv3x3_with_stats(h1, prep["w2"], scale=s1, shift=b1,
                                 apply_input_bn_relu=True)
    s2, b2 = _bn_scale_shift(st2, prep["bn2_g"], prep["bn2_b"], count)

    # ---- time embedding (kept at (N, C); broadcast only inside the kernel) -
    temb = time_mlp(t, prep["time_w"], prep["time_b"])

    y = bn_relu_add(h2, s2, b2, temb)                           # (N,H,W,Cp) f32
    y = y[..., :out_channels]
    # TODO(synk): NCHW boundary transpose left to XLA (lane-dense in-kernel
    # transpose of the output would remove this pass).
    return jnp.transpose(y, (0, 3, 1, 2))


# ---------------------------------------------------------------------------
# Pure-JAX reference (mirrors the PyTorch module, training-mode BatchNorm)
# ---------------------------------------------------------------------------
def reference_forward(params, x, t, eps=1e-5):
    def conv(z, w):
        return jax.lax.conv_general_dilated(
            z, w, window_strides=(1, 1), padding=((1, 1), (1, 1)),
            dimension_numbers=("NCHW", "OIHW", "NCHW"))

    def bn_relu(h, g, b):
        mean = jnp.mean(h, axis=(0, 2, 3), keepdims=True)
        var = jnp.mean((h - mean) ** 2, axis=(0, 2, 3), keepdims=True)
        hn = (h - mean) / jnp.sqrt(var + eps)
        return jnp.maximum(hn * g[None, :, None, None] + b[None, :, None, None], 0.0)

    h = bn_relu(conv(x, params["conv1_w"]), params["bn1_g"], params["bn1_b"])
    h = bn_relu(conv(h, params["conv2_w"]), params["bn2_g"], params["bn2_b"])
    temb = jnp.maximum(t @ params["time_w"].T + params["time_b"], 0.0)
    return h + temb[:, :, None, None]


# ---------------------------------------------------------------------------
# Deterministic parameter init (PyTorch-layout weights)
# ---------------------------------------------------------------------------
def init_params(key, in_channels, out_channels, time_emb_dim, mid_channels=None):
    mid = mid_channels or out_channels
    keys = iter(jax.random.split(key, 8))

    def nrm(shape, scale=0.05):
        return scale * jax.random.normal(next(keys), shape, dtype=jnp.float32)

    return dict(
        conv1_w=nrm((mid, in_channels, 3, 3)),
        bn1_g=jnp.ones((mid,), jnp.float32),
        bn1_b=jnp.zeros((mid,), jnp.float32),
        conv2_w=nrm((out_channels, mid, 3, 3)),
        bn2_g=jnp.ones((out_channels,), jnp.float32),
        bn2_b=jnp.zeros((out_channels,), jnp.float32),
        time_w=nrm((out_channels, time_emb_dim)),
        time_b=nrm((out_channels,), 0.02),
    )


if __name__ == "__main__":
    key = jax.random.PRNGKey(0)
    kp, kx, kt = jax.random.split(key, 3)

    N, CIN, COUT, TEMB, S = 2, 4, 32, 32, 16
    params = init_params(kp, CIN, COUT, TEMB)
    prep = prepare_params(params)          # one-time weight repack (hoisted)

    x = jax.random.normal(kx, (N, CIN, S, S), dtype=jnp.float32)
    t = jax.random.normal(kt, (N, TEMB), dtype=jnp.float32)

    out = double_conv_forward(prep, x, t, COUT)
    jax.block_until_ready(out)

    assert out.shape == (N, COUT, S, S), out.shape
    assert bool(jnp.all(jnp.isfinite(out)))

    ref = reference_forward(params, x, t)
    err = float(jnp.max(jnp.abs(out - ref)))
    assert err < 0.15, f"max abs err vs reference: {err}"
    print("KERNEL_OK")
</pallas_src>

<mosaic_0001>
module attributes {stable_mosaic.version = 11 : i64} {
  func.func @_matmul_stats_kernel(%arg0: i32, %arg1: i32, %arg2: i32, %arg3: memref<1x256x36xbf16, #tpu.memory_space<vmem>>, %arg4: memref<36x128xbf16, #tpu.memory_space<vmem>>, %arg5: memref<1x256x128xbf16, #tpu.memory_space<vmem>>, %arg6: memref<1x1x2x128xf32, #tpu.memory_space<vmem>>) attributes {dimension_semantics = [#tpu.dimension_semantics<parallel>, #tpu.dimension_semantics<parallel>, #tpu.dimension_semantics<parallel>], iteration_bounds = array<i64: 2, 1, 1>, scalar_prefetch = 0 : i64, scratch_operands = 0 : i64, tpu.core_type = #tpu.core_type<tc>, window_params = [{transform_indices = @transform_0, window_bounds = array<i64: 1, 256, 36>}, {transform_indices = @transform_1, window_bounds = array<i64: 36, 128>}, {transform_indices = @transform_2, window_bounds = array<i64: 1, 256, 128>}, {transform_indices = @transform_3, window_bounds = array<i64: 1, 1, 2, 128>}]} {
    %c0 = arith.constant 0 : index
    %c0_0 = arith.constant 0 : index
    %c0_1 = arith.constant 0 : index
    %0 = vector.load %arg3[%c0, %c0_0, %c0_1] : memref<1x256x36xbf16, #tpu.memory_space<vmem>>, vector<1x256x36xbf16>
    %1 = vector.shape_cast %0 : vector<1x256x36xbf16> to vector<256x36xbf16>
    %c0_2 = arith.constant 0 : index
    %c0_3 = arith.constant 0 : index
    %2 = vector.load %arg4[%c0_2, %c0_3] : memref<36x128xbf16, #tpu.memory_space<vmem>>, vector<36x128xbf16>
    %cst = arith.constant dense<0.000000e+00> : vector<256x128xf32>
    %3 = tpu.matmul %1, %2, %cst {dimension_numbers = #tpu.dot_dimension_numbers<[1], [0], [0], [1], [0, 0, 1, 1], [], []>} : vector<256x36xbf16>, vector<36x128xbf16>, vector<256x128xf32> -> vector<256x128xf32>
    %4 = arith.truncf %3 : vector<256x128xf32> to vector<256x128xbf16>
    %c0_4 = arith.constant 0 : index
    %c0_5 = arith.constant 0 : index
    %c0_6 = arith.constant 0 : index
    %5 = vector.load %arg5[%c0_4, %c0_5, %c0_6] : memref<1x256x128xbf16, #tpu.memory_space<vmem>>, vector<1x256x128xbf16>
    %6 = vector.shape_cast %5 : vector<1x256x128xbf16> to vector<256x128xbf16>
    %7 = vector.shape_cast %4 : vector<256x128xbf16> to vector<1x256x128xbf16>
    tpu.vector_store %arg5[%c0_4, %c0_5, %c0_6], %7 {strides = array<i32>} : memref<1x256x128xbf16, #tpu.memory_space<vmem>>, vector<1x256x128xbf16>,
    %cst_7 = arith.constant dense<0.000000e+00> : vector<128xf32>
    %8 = vector.multi_reduction <add>, %3, %cst_7 [0] : vector<256x128xf32> to vector<128xf32>
    %9 = vector.shape_cast %8 : vector<128xf32> to vector<1x128xf32>
    %c0_8 = arith.constant 0 : index
    %c0_9 = arith.constant 0 : index
    %c0_10 = arith.constant 0 : index
    %c0_11 = arith.constant 0 : index
    %10 = vector.load %arg6[%c0_8, %c0_9, %c0_10, %c0_11] : memref<1x1x2x128xf32, #tpu.memory_space<vmem>>, vector<1x1x1x128xf32>
    %11 = vector.shape_cast %10 : vector<1x1x1x128xf32> to vector<1x128xf32>
    %12 = vector.shape_cast %9 : vector<1x128xf32> to vector<1x1x1x128xf32>
    tpu.vector_store %arg6[%c0_8, %c0_9, %c0_10, %c0_11], %12 {strides = array<i32>} : memref<1x1x2x128xf32, #tpu.memory_space<vmem>>, vector<1x1x1x128xf32>,
    %13 = arith.mulf %3, %3 : vector<256x128xf32>
    %cst_12 = arith.constant dense<0.000000e+00> : vector<128xf32>
    %14 = vector.multi_reduction <add>, %13, %cst_12 [0] : vector<256x128xf32> to vector<128xf32>
    %15 = vector.shape_cast %14 : vector<128xf32> to vector<1x128xf32>
    %c0_13 = arith.constant 0 : index
    %c0_14 = arith.constant 0 : index
    %c1 = arith.constant 1 : index
    %c0_15 = arith.constant 0 : index
    %16 = vector.load %arg6[%c0_13, %c0_14, %c1, %c0_15] : memref<1x1x2x128xf32, #tpu.memory_space<vmem>>, vector<1x1x1x128xf32>
    %17 = vector.shape_cast %16 : vector<1x1x1x128xf32> to vector<1x128xf32>
    %18 = vector.shape_cast %15 : vector<1x128xf32> to vector<1x1x1x128xf32>
    tpu.vector_store %arg6[%c0_13, %c0_14, %c1, %c0_15], %18 {strides = array<i32>} : memref<1x1x2x128xf32, #tpu.memory_space<vmem>>, vector<1x1x1x128xf32>,
    return
  }
  func.func @transform_0(%arg0: i32, %arg1: i32, %arg2: i32) -> (i32, i32, i32) {
    %c0_i32 = arith.constant 0 : i32
    %c0_i32_0 = arith.constant 0 : i32
    return %arg0, %arg2, %c0_i32 : i32, i32, i32
  }
  func.func @transform_1(%arg0: i32, %arg1: i32, %arg2: i32) -> (i32, i32) {
    %c0_i32 = arith.constant 0 : i32
    %c0_i32_0 = arith.constant 0 : i32
    return %c0_i32, %arg1 : i32, i32
  }
  func.func @transform_2(%arg0: i32, %arg1: i32, %arg2: i32) -> (i32, i32, i32) {
    %c0_i32 = arith.constant 0 : i32
    return %arg0, %arg2, %arg1 : i32, i32, i32
  }
  func.func @transform_3(%arg0: i32, %arg1: i32, %arg2: i32) -> (i32, i32, i32, i32) {
    %c0_i32 = arith.constant 0 : i32
    %c0_i32_0 = arith.constant 0 : i32
    return %arg0, %arg2, %c0_i32, %arg1 : i32, i32, i32, i32
  }
}

module attributes {stable_mosaic.version = 11 : i64} {
  func.func @_conv3x3_stats_kernel(%arg0: i32, %arg1: i32, %arg2: i32, %arg3: memref<1x16x16x128xbf16, #tpu.memory_space<vmem>>, %arg4: memref<1x128xf32, #tpu.memory_space<vmem>>, %arg5: memref<1x128xf32, #tpu.memory_space<vmem>>, %arg6: memref<3x3x128x128xbf16, #tpu.memory_space<vmem>>, %arg7: memref<1x16x16x128xbf16, #tpu.memory_space<vmem>>, %arg8: memref<1x1x2x128xf32, #tpu.memory_space<vmem>>, %arg9: memref<18x18x128xbf16, #tpu.memory_space<vmem>>) attributes {dimension_semantics = [#tpu.dimension_semantics<parallel>, #tpu.dimension_semantics<parallel>, #tpu.dimension_semantics<arbitrary>], iteration_bounds = array<i64: 2, 1, 1>, scalar_prefetch = 0 : i64, scratch_operands = 1 : i64, tpu.core_type = #tpu.core_type<tc>, window_params = [{transform_indices = @transform_0, window_bounds = array<i64: 1, 16, 16, 128>}, {pipeline_mode = #tpu.pipeline_mode<synchronous>, transform_indices = @transform_1, window_bounds = array<i64: 1, 128>}, {pipeline_mode = #tpu.pipeline_mode<synchronous>, transform_indices = @transform_2, window_bounds = array<i64: 1, 128>}, {transform_indices = @transform_3, window_bounds = array<i64: 3, 3, 128, 128>}, {transform_indices = @transform_4, window_bounds = array<i64: 1, 16, 16, 128>}, {transform_indices = @transform_5, window_bounds = array<i64: 1, 1, 2, 128>}]} {
    %c0_i32 = arith.constant 0 : i32
    %0 = arith.cmpi eq, %arg2, %c0_i32 : i32
    %1 = arith.extui %0 : i1 to i32
    %c0_i32_0 = arith.constant 0 : i32
    %2 = arith.cmpi ne, %1, %c0_i32_0 : i32
    scf.if %2 {
      %cst_82 = arith.constant 0.000000e+00 : bf16
      %93 = vector.broadcast %cst_82 : bf16 to vector<18x18x128xbf16>
      %c0_83 = arith.constant 0 : index
      %c0_84 = arith.constant 0 : index
      %c0_85 = arith.constant 0 : index
      %94 = vector.load %arg9[%c0_83, %c0_84, %c0_85] : memref<18x18x128xbf16, #tpu.memory_space<vmem>>, vector<18x18x128xbf16>
      tpu.vector_store %arg9[%c0_83, %c0_84, %c0_85], %93 {strides = array<i32>} : memref<18x18x128xbf16, #tpu.memory_space<vmem>>, vector<18x18x128xbf16>,
      %c0_86 = arith.constant 0 : index
      %c0_87 = arith.constant 0 : index
      %c0_88 = arith.constant 0 : index
      %c0_89 = arith.constant 0 : index
      %95 = vector.load %arg3[%c0_86, %c0_87, %c0_88, %c0_89] : memref<1x16x16x128xbf16, #tpu.memory_space<vmem>>, vector<1x16x16x128xbf16>
      %96 = vector.shape_cast %95 : vector<1x16x16x128xbf16> to vector<16x16x128xbf16>
      %97 = arith.extf %96 : vector<16x16x128xbf16> to vector<16x16x128xf32>
      %c0_90 = arith.constant 0 : index
      %c0_91 = arith.constant 0 : index
      %98 = vector.load %arg4[%c0_90, %c0_91] : memref<1x128xf32, #tpu.memory_space<vmem>>, vector<1x128xf32>
      %99 = vector.shape_cast %98 : vector<1x128xf32> to vector<1x1x128xf32>
      %100 = vector.broadcast %99 : vector<1x1x128xf32> to vector<16x16x128xf32>
      %101 = arith.mulf %97, %100 : vector<16x16x128xf32>
      %c0_92 = arith.constant 0 : index
      %c0_93 = arith.constant 0 : index
      %102 = vector.load %arg5[%c0_92, %c0_93] : memref<1x128xf32, #tpu.memory_space<vmem>>, vector<1x128xf32>
      %103 = vector.shape_cast %102 : vector<1x128xf32> to vector<1x1x128xf32>
      %104 = vector.broadcast %103 : vector<1x1x128xf32> to vector<16x16x128xf32>
      %105 = arith.addf %101, %104 : vector<16x16x128xf32>
      %cst_94 = arith.constant 0.000000e+00 : f32
      %106 = vector.broadcast %cst_94 : f32 to vector<16x16x128xf32>
      %107 = arith.maximumf %105, %106 : vector<16x16x128xf32>
      %108 = arith.truncf %107 : vector<16x16x128xf32> to vector<16x16x128xbf16>
      %c1_95 = arith.constant 1 : index
      %c1_96 = arith.constant 1 : index
      %c0_97 = arith.constant 0 : index
      %109 = vector.load %arg9[%c1_95, %c1_96, %c0_97] : memref<18x18x128xbf16, #tpu.memory_space<vmem>>, vector<16x16x128xbf16>
      tpu.vector_store %arg9[%c1_95, %c1_96, %c0_97], %108 {strides = array<i32>} : memref<18x18x128xbf16, #tpu.memory_space<vmem>>, vector<16x16x128xbf16>,
    } else {
    }
    %c16_i32 = arith.constant 16 : i32
    %3 = arith.muli %arg2, %c16_i32 : i32
    %cst = arith.constant 0.000000e+00 : f32
    %4 = vector.broadcast %cst : f32 to vector<256x128xf32>
    %c0_i32_1 = arith.constant 0 : i32
    %5 = arith.addi %3, %c0_i32_1 : i32
    %6 = arith.index_cast %5 : i32 to index
    %c0 = arith.constant 0 : index
    %c0_2 = arith.constant 0 : index
    %7 = vector.load %arg9[%6, %c0, %c0_2] : memref<18x18x128xbf16, #tpu.memory_space<vmem>>, vector<16x16x128xbf16>
    %8 = vector.shape_cast %7 : vector<16x16x128xbf16> to vector<256x128xbf16>
    %c0_3 = arith.constant 0 : index
    %c0_4 = arith.constant 0 : index
    %c0_5 = arith.constant 0 : index
    %c0_6 = arith.constant 0 : index
    %9 = vector.load %arg6[%c0_3, %c0_4, %c0_5, %c0_6] : memref<3x3x128x128xbf16, #tpu.memory_space<vmem>>, vector<1x1x128x128xbf16>
    %10 = vector.shape_cast %9 : vector<1x1x128x128xbf16> to vector<128x128xbf16>
    %cst_7 = arith.constant dense<0.000000e+00> : vector<256x128xf32>
    %11 = tpu.matmul %8, %10, %cst_7 {dimension_numbers = #tpu.dot_dimension_numbers<[1], [0], [0], [1], [0, 0, 1, 1], [], []>} : vector<256x128xbf16>, vector<128x128xbf16>, vector<256x128xf32> -> vector<256x128xf32>
    %12 = arith.addf %4, %11 : vector<256x128xf32>
    %c0_i32_8 = arith.constant 0 : i32
    %13 = arith.addi %3, %c0_i32_8 : i32
    %14 = arith.index_cast %13 : i32 to index
    %c1 = arith.constant 1 : index
    %c0_9 = arith.constant 0 : index
    %15 = vector.load %arg9[%14, %c1, %c0_9] : memref<18x18x128xbf16, #tpu.memory_space<vmem>>, vector<16x16x128xbf16>
    %16 = vector.shape_cast %15 : vector<16x16x128xbf16> to vector<256x128xbf16>
    %c0_10 = arith.constant 0 : index
    %c1_11 = arith.constant 1 : index
    %c0_12 = arith.constant 0 : index
    %c0_13 = arith.constant 0 : index
    %17 = vector.load %arg6[%c0_10, %c1_11, %c0_12, %c0_13] : memref<3x3x128x128xbf16, #tpu.memory_space<vmem>>, vector<1x1x128x128xbf16>
    %18 = vector.shape_cast %17 : vector<1x1x128x128xbf16> to vector<128x128xbf16>
    %cst_14 = arith.constant dense<0.000000e+00> : vector<256x128xf32>
    %19 = tpu.matmul %16, %18, %cst_14 {dimension_numbers = #tpu.dot_dimension_numbers<[1], [0], [0], [1], [0, 0, 1, 1], [], []>} : vector<256x128xbf16>, vector<128x128xbf16>, vector<256x128xf32> -> vector<256x128xf32>
    %20 = arith.addf %12, %19 : vector<256x128xf32>
    %c0_i32_15 = arith.constant 0 : i32
    %21 = arith.addi %3, %c0_i32_15 : i32
    %22 = arith.index_cast %21 : i32 to index
    %c2 = arith.constant 2 : index
    %c0_16 = arith.constant 0 : index
    %23 = vector.load %arg9[%22, %c2, %c0_16] : memref<18x18x128xbf16, #tpu.memory_space<vmem>>, vector<16x16x128xbf16>
    %24 = vector.shape_cast %23 : vector<16x16x128xbf16> to vector<256x128xbf16>
    %c0_17 = arith.constant 0 : index
    %c2_18 = arith.constant 2 : index
    %c0_19 = arith.constant 0 : index
    %c0_20 = arith.constant 0 : index
    %25 = vector.load %arg6[%c0_17, %c2_18, %c0_19, %c0_20] : memref<3x3x128x128xbf16, #tpu.memory_space<vmem>>, vector<1x1x128x128xbf16>
    %26 = vector.shape_cast %25 : vector<1x1x128x128xbf16> to vector<128x128xbf16>
    %cst_21 = arith.constant dense<0.000000e+00> : vector<256x128xf32>
    %27 = tpu.matmul %24, %26, %cst_21 {dimension_numbers = #tpu.dot_dimension_numbers<[1], [0], [0], [1], [0, 0, 1, 1], [], []>} : vector<256x128xbf16>, vector<128x128xbf16>, vector<256x128xf32> -> vector<256x128xf32>
    %28 = arith.addf %20, %27 : vector<256x128xf32>
    %c1_i32 = arith.constant 1 : i32
    %29 = arith.addi %3, %c1_i32 : i32
    %30 = arith.index_cast %29 : i32 to index
    %c0_22 = arith.constant 0 : index
    %c0_23 = arith.constant 0 : index
    %31 = vector.load %arg9[%30, %c0_22, %c0_23] : memref<18x18x128xbf16, #tpu.memory_space<vmem>>, vector<16x16x128xbf16>
    %32 = vector.shape_cast %31 : vector<16x16x128xbf16> to vector<256x128xbf16>
    %c1_24 = arith.constant 1 : index
    %c0_25 = arith.constant 0 : index
    %c0_26 = arith.constant 0 : index
    %c0_27 = arith.constant 0 : index
    %33 = vector.load %arg6[%c1_24, %c0_25, %c0_26, %c0_27] : memref<3x3x128x128xbf16, #tpu.memory_space<vmem>>, vector<1x1x128x128xbf16>
    %34 = vector.shape_cast %33 : vector<1x1x128x128xbf16> to vector<128x128xbf16>
    %cst_28 = arith.constant dense<0.000000e+00> : vector<256x128xf32>
    %35 = tpu.matmul %32, %34, %cst_28 {dimension_numbers = #tpu.dot_dimension_numbers<[1], [0], [0], [1], [0, 0, 1, 1], [], []>} : vector<256x128xbf16>, vector<128x128xbf16>, vector<256x128xf32> -> vector<256x128xf32>
    %36 = arith.addf %28, %35 : vector<256x128xf32>
    %c1_i32_29 = arith.constant 1 : i32
    %37 = arith.addi %3, %c1_i32_29 : i32
    %38 = arith.index_cast %37 : i32 to index
    %c1_30 = arith.constant 1 : index
    %c0_31 = arith.constant 0 : index
    %39 = vector.load %arg9[%38, %c1_30, %c0_31] : memref<18x18x128xbf16, #tpu.memory_space<vmem>>, vector<16x16x128xbf16>
    %40 = vector.shape_cast %39 : vector<16x16x128xbf16> to vector<256x128xbf16>
    %c1_32 = arith.constant 1 : index
    %c1_33 = arith.constant 1 : index
    %c0_34 = arith.constant 0 : index
    %c0_35 = arith.constant 0 : index
    %41 = vector.load %arg6[%c1_32, %c1_33, %c0_34, %c0_35] : memref<3x3x128x128xbf16, #tpu.memory_space<vmem>>, vector<1x1x128x128xbf16>
    %42 = vector.shape_cast %41 : vector<1x1x128x128xbf16> to vector<128x128xbf16>
    %cst_36 = arith.constant dense<0.000000e+00> : vector<256x128xf32>
    %43 = tpu.matmul %40, %42, %cst_36 {dimension_numbers = #tpu.dot_dimension_numbers<[1], [0], [0], [1], [0, 0, 1, 1], [], []>} : vector<256x128xbf16>, vector<128x128xbf16>, vector<256x128xf32> -> vector<256x128xf32>
    %44 = arith.addf %36, %43 : vector<256x128xf32>
    %c1_i32_37 = arith.constant 1 : i32
    %45 = arith.addi %3, %c1_i32_37 : i32
    %46 = arith.index_cast %45 : i32 to index
    %c2_38 = arith.constant 2 : index
    %c0_39 = arith.constant 0 : index
    %47 = vector.load %arg9[%46, %c2_38, %c0_39] : memref<18x18x128xbf16, #tpu.memory_space<vmem>>, vector<16x16x128xbf16>
    %48 = vector.shape_cast %47 : vector<16x16x128xbf16> to vector<256x128xbf16>
    %c1_40 = arith.constant 1 : index
    %c2_41 = arith.constant 2 : index
    %c0_42 = arith.constant 0 : index
    %c0_43 = arith.constant 0 : index
    %49 = vector.load %arg6[%c1_40, %c2_41, %c0_42, %c0_43] : memref<3x3x128x128xbf16, #tpu.memory_space<vmem>>, vector<1x1x128x128xbf16>
    %50 = vector.shape_cast %49 : vector<1x1x128x128xbf16> to vector<128x128xbf16>
    %cst_44 = arith.constant dense<0.000000e+00> : vector<256x128xf32>
    %51 = tpu.matmul %48, %50, %cst_44 {dimension_numbers = #tpu.dot_dimension_numbers<[1], [0], [0], [1], [0, 0, 1, 1], [], []>} : vector<256x128xbf16>, vector<128x128xbf16>, vector<256x128xf32> -> vector<256x128xf32>
    %52 = arith.addf %44, %51 : vector<256x128xf32>
    %c2_i32 = arith.constant 2 : i32
    %53 = arith.addi %3, %c2_i32 : i32
    %54 = arith.index_cast %53 : i32 to index
    %c0_45 = arith.constant 0 : index
    %c0_46 = arith.constant 0 : index
    %55 = vector.load %arg9[%54, %c0_45, %c0_46] : memref<18x18x128xbf16, #tpu.memory_space<vmem>>, vector<16x16x128xbf16>
    %56 = vector.shape_cast %55 : vector<16x16x128xbf16> to vector<256x128xbf16>
    %c2_47 = arith.constant 2 : index
    %c0_48 = arith.constant 0 : index
    %c0_49 = arith.constant 0 : index
    %c0_50 = arith.constant 0 : index
    %57 = vector.load %arg6[%c2_47, %c0_48, %c0_49, %c0_50] : memref<3x3x128x128xbf16, #tpu.memory_space<vmem>>, vector<1x1x128x128xbf16>
    %58 = vector.shape_cast %57 : vector<1x1x128x128xbf16> to vector<128x128xbf16>
    %cst_51 = arith.constant dense<0.000000e+00> : vector<256x128xf32>
    %59 = tpu.matmul %56, %58, %cst_51 {dimension_numbers = #tpu.dot_dimension_numbers<[1], [0], [0], [1], [0, 0, 1, 1], [], []>} : vector<256x128xbf16>, vector<128x128xbf16>, vector<256x128xf32> -> vector<256x128xf32>
    %60 = arith.addf %52, %59 : vector<256x128xf32>
    %c2_i32_52 = arith.constant 2 : i32
    %61 = arith.addi %3, %c2_i32_52 : i32
    %62 = arith.index_cast %61 : i32 to index
    %c1_53 = arith.constant 1 : index
    %c0_54 = arith.constant 0 : index
    %63 = vector.load %arg9[%62, %c1_53, %c0_54] : memref<18x18x128xbf16, #tpu.memory_space<vmem>>, vector<16x16x128xbf16>
    %64 = vector.shape_cast %63 : vector<16x16x128xbf16> to vector<256x128xbf16>
    %c2_55 = arith.constant 2 : index
    %c1_56 = arith.constant 1 : index
    %c0_57 = arith.constant 0 : index
    %c0_58 = arith.constant 0 : index
    %65 = vector.load %arg6[%c2_55, %c1_56, %c0_57, %c0_58] : memref<3x3x128x128xbf16, #tpu.memory_space<vmem>>, vector<1x1x128x128xbf16>
    %66 = vector.shape_cast %65 : vector<1x1x128x128xbf16> to vector<128x128xbf16>
    %cst_59 = arith.constant dense<0.000000e+00> : vector<256x128xf32>
    %67 = tpu.matmul %64, %66, %cst_59 {dimension_numbers = #tpu.dot_dimension_numbers<[1], [0], [0], [1], [0, 0, 1, 1], [], []>} : vector<256x128xbf16>, vector<128x128xbf16>, vector<256x128xf32> -> vector<256x128xf32>
    %68 = arith.addf %60, %67 : vector<256x128xf32>
    %c2_i32_60 = arith.constant 2 : i32
    %69 = arith.addi %3, %c2_i32_60 : i32
    %70 = arith.index_cast %69 : i32 to index
    %c2_61 = arith.constant 2 : index
    %c0_62 = arith.constant 0 : index
    %71 = vector.load %arg9[%70, %c2_61, %c0_62] : memref<18x18x128xbf16, #tpu.memory_space<vmem>>, vector<16x16x128xbf16>
    %72 = vector.shape_cast %71 : vector<16x16x128xbf16> to vector<256x128xbf16>
    %c2_63 = arith.constant 2 : index
    %c2_64 = arith.constant 2 : index
    %c0_65 = arith.constant 0 : index
    %c0_66 = arith.constant 0 : index
    %73 = vector.load %arg6[%c2_63, %c2_64, %c0_65, %c0_66] : memref<3x3x128x128xbf16, #tpu.memory_space<vmem>>, vector<1x1x128x128xbf16>
    %74 = vector.shape_cast %73 : vector<1x1x128x128xbf16> to vector<128x128xbf16>
    %cst_67 = arith.constant dense<0.000000e+00> : vector<256x128xf32>
    %75 = tpu.matmul %72, %74, %cst_67 {dimension_numbers = #tpu.dot_dimension_numbers<[1], [0], [0], [1], [0, 0, 1, 1], [], []>} : vector<256x128xbf16>, vector<128x128xbf16>, vector<256x128xf32> -> vector<256x128xf32>
    %76 = arith.addf %68, %75 : vector<256x128xf32>
    %77 = vector.shape_cast %76 : vector<256x128xf32> to vector<16x16x128xf32>
    %78 = arith.truncf %77 : vector<16x16x128xf32> to vector<16x16x128xbf16>
    %c0_68 = arith.constant 0 : index
    %c0_69 = arith.constant 0 : index
    %c0_70 = arith.constant 0 : index
    %c0_71 = arith.constant 0 : index
    %79 = vector.load %arg7[%c0_68, %c0_69, %c0_70, %c0_71] : memref<1x16x16x128xbf16, #tpu.memory_space<vmem>>, vector<1x16x16x128xbf16>
    %80 = vector.shape_cast %79 : vector<1x16x16x128xbf16> to vector<16x16x128xbf16>
    %81 = vector.shape_cast %78 : vector<16x16x128xbf16> to vector<1x16x16x128xbf16>
    tpu.vector_store %arg7[%c0_68, %c0_69, %c0_70, %c0_71], %81 {strides = array<i32>} : memref<1x16x16x128xbf16, #tpu.memory_space<vmem>>, vector<1x16x16x128xbf16>,
    %cst_72 = arith.constant dense<0.000000e+00> : vector<128xf32>
    %82 = vector.multi_reduction <add>, %76, %cst_72 [0] : vector<256x128xf32> to vector<128xf32>
    %83 = vector.shape_cast %82 : vector<128xf32> to vector<1x128xf32>
    %c0_73 = arith.constant 0 : index
    %c0_74 = arith.constant 0 : index
    %c0_75 = arith.constant 0 : index
    %c0_76 = arith.constant 0 : index
    %84 = vector.load %arg8[%c0_73, %c0_74, %c0_75, %c0_76] : memref<1x1x2x128xf32, #tpu.memory_space<vmem>>, vector<1x1x1x128xf32>
    %85 = vector.shape_cast %84 : vector<1x1x1x128xf32> to vector<1x128xf32>
    %86 = vector.shape_cast %83 : vector<1x128xf32> to vector<1x1x1x128xf32>
    tpu.vector_store %arg8[%c0_73, %c0_74, %c0_75, %c0_76], %86 {strides = array<i32>} : memref<1x1x2x128xf32, #tpu.memory_space<vmem>>, vector<1x1x1x128xf32>,
    %87 = arith.mulf %76, %76 : vector<256x128xf32>
    %cst_77 = arith.constant dense<0.000000e+00> : vector<128xf32>
    %88 = vector.multi_reduction <add>, %87, %cst_77 [0] : vector<256x128xf32> to vector<128xf32>
    %89 = vector.shape_cast %88 : vector<128xf32> to vector<1x128xf32>
    %c0_78 = arith.constant 0 : index
    %c0_79 = arith.constant 0 : index
    %c1_80 = arith.constant 1 : index
    %c0_81 = arith.constant 0 : index
    %90 = vector.load %arg8[%c0_78, %c0_79, %c1_80, %c0_81] : memref<1x1x2x128xf32, #tpu.memory_space<vmem>>, vector<1x1x1x128xf32>
    %91 = vector.shape_cast %90 : vector<1x1x1x128xf32> to vector<1x128xf32>
    %92 = vector.shape_cast %89 : vector<1x128xf32> to vector<1x1x1x128xf32>
    tpu.vector_store %arg8[%c0_78, %c0_79, %c1_80, %c0_81], %92 {strides = array<i32>} : memref<1x1x2x128xf32, #tpu.memory_space<vmem>>, vector<1x1x1x128xf32>,
    return
  }
  func.func @transform_0(%arg0: i32, %arg1: i32, %arg2: i32) -> (i32, i32, i32, i32) {
    %c0_i32 = arith.constant 0 : i32
    %c0_i32_0 = arith.constant 0 : i32
    %c0_i32_1 = arith.constant 0 : i32
    %c0_i32_2 = arith.constant 0 : i32
    return %arg0, %c0_i32, %c0_i32_0, %c0_i32_1 : i32, i32, i32, i32
  }
  func.func @transform_1(%arg0: i32, %arg1: i32, %arg2: i32) -> (i32, i32) {
    %c0_i32 = arith.constant 0 : i32
    %c0_i32_0 = arith.constant 0 : i32
    %c0_i32_1 = arith.constant 0 : i32
    return %c0_i32, %c0_i32_0 : i32, i32
  }
  func.func @transform_2(%arg0: i32, %arg1: i32, %arg2: i32) -> (i32, i32) {
    %c0_i32 = arith.constant 0 : i32
    %c0_i32_0 = arith.constant 0 : i32
    %c0_i32_1 = arith.constant 0 : i32
    return %c0_i32, %c0_i32_0 : i32, i32
  }
  func.func @transform_3(%arg0: i32, %arg1: i32, %arg2: i32) -> (i32, i32, i32, i32) {
    %c0_i32 = arith.constant 0 : i32
    %c0_i32_0 = arith.constant 0 : i32
    %c0_i32_1 = arith.constant 0 : i32
    %c0_i32_2 = arith.constant 0 : i32
    return %c0_i32, %c0_i32_0, %c0_i32_1, %arg1 : i32, i32, i32, i32
  }
  func.func @transform_4(%arg0: i32, %arg1: i32, %arg2: i32) -> (i32, i32, i32, i32) {
    %c0_i32 = arith.constant 0 : i32
    %c0_i32_0 = arith.constant 0 : i32
    return %arg0, %arg2, %c0_i32, %arg1 : i32, i32, i32, i32
  }
  func.func @transform_5(%arg0: i32, %arg1: i32, %arg2: i32) -> (i32, i32, i32, i32) {
    %c0_i32 = arith.constant 0 : i32
    %c0_i32_0 = arith.constant 0 : i32
    return %arg0, %arg2, %c0_i32, %arg1 : i32, i32, i32, i32
  }
}

module attributes {stable_mosaic.version = 11 : i64} {
  func.func @_time_mlp_kernel(%arg0: memref<2x32xf32, #tpu.memory_space<vmem>>, %arg1: memref<32x128xbf16, #tpu.memory_space<vmem>>, %arg2: memref<1x128xf32, #tpu.memory_space<vmem>>, %arg3: memref<2x128xf32, #tpu.memory_space<vmem>>) attributes {dimension_semantics = [], scalar_prefetch = 0 : i64, scratch_operands = 0 : i64, tpu.core_type = #tpu.core_type<tc>} {
    %c0 = arith.constant 0 : index
    %c0_0 = arith.constant 0 : index
    %0 = vector.load %arg0[%c0, %c0_0] : memref<2x32xf32, #tpu.memory_space<vmem>>, vector<2x32xf32>
    %1 = arith.truncf %0 : vector<2x32xf32> to vector<2x32xbf16>
    %c0_1 = arith.constant 0 : index
    %c0_2 = arith.constant 0 : index
    %2 = vector.load %arg1[%c0_1, %c0_2] : memref<32x128xbf16, #tpu.memory_space<vmem>>, vector<32x128xbf16>
    %cst = arith.constant dense<0.000000e+00> : vector<2x128xf32>
    %3 = tpu.matmul %1, %2, %cst {dimension_numbers = #tpu.dot_dimension_numbers<[1], [0], [0], [1], [0, 0, 1, 1], [], []>} : vector<2x32xbf16>, vector<32x128xbf16>, vector<2x128xf32> -> vector<2x128xf32>
    %c0_3 = arith.constant 0 : index
    %c0_4 = arith.constant 0 : index
    %4 = vector.load %arg2[%c0_3, %c0_4] : memref<1x128xf32, #tpu.memory_space<vmem>>, vector<1x128xf32>
    %5 = vector.broadcast %4 : vector<1x128xf32> to vector<2x128xf32>
    %6 = arith.addf %3, %5 : vector<2x128xf32>
    %cst_5 = arith.constant 0.000000e+00 : f32
    %7 = vector.broadcast %cst_5 : f32 to vector<2x128xf32>
    %8 = arith.maximumf %6, %7 : vector<2x128xf32>
    %c0_6 = arith.constant 0 : index
    %c0_7 = arith.constant 0 : index
    %9 = vector.load %arg3[%c0_6, %c0_7] : memref<2x128xf32, #tpu.memory_space<vmem>>, vector<2x128xf32>
    tpu.vector_store %arg3[%c0_6, %c0_7], %8 {strides = array<i32>} : memref<2x128xf32, #tpu.memory_space<vmem>>, vector<2x128xf32>,
    return
  }
}

module attributes {stable_mosaic.version = 11 : i64} {
  func.func @_bn_relu_add_kernel(%arg0: i32, %arg1: i32, %arg2: memref<1x16x16x128xbf16, #tpu.memory_space<vmem>>, %arg3: memref<1x128xf32, #tpu.memory_space<vmem>>, %arg4: memref<1x128xf32, #tpu.memory_space<vmem>>, %arg5: memref<1x1x1x128xf32, #tpu.memory_space<vmem>>, %arg6: memref<1x16x16x128xf32, #tpu.memory_space<vmem>>) attributes {dimension_semantics = [#tpu.dimension_semantics<parallel>, #tpu.dimension_semantics<parallel>], iteration_bounds = array<i64: 2, 1>, scalar_prefetch = 0 : i64, scratch_operands = 0 : i64, tpu.core_type = #tpu.core_type<tc>, window_params = [{transform_indices = @transform_0, window_bounds = array<i64: 1, 16, 16, 128>}, {pipeline_mode = #tpu.pipeline_mode<synchronous>, transform_indices = @transform_1, window_bounds = array<i64: 1, 128>}, {pipeline_mode = #tpu.pipeline_mode<synchronous>, transform_indices = @transform_2, window_bounds = array<i64: 1, 128>}, {transform_indices = @transform_3, window_bounds = array<i64: 1, 1, 1, 128>}, {transform_indices = @transform_4, window_bounds = array<i64: 1, 16, 16, 128>}]} {
    %c0 = arith.constant 0 : index
    %c0_0 = arith.constant 0 : index
    %c0_1 = arith.constant 0 : index
    %c0_2 = arith.constant 0 : index
    %0 = vector.load %arg2[%c0, %c0_0, %c0_1, %c0_2] : memref<1x16x16x128xbf16, #tpu.memory_space<vmem>>, vector<1x16x16x128xbf16>
    %1 = vector.shape_cast %0 : vector<1x16x16x128xbf16> to vector<16x16x128xbf16>
    %2 = arith.extf %1 : vector<16x16x128xbf16> to vector<16x16x128xf32>
    %c0_3 = arith.constant 0 : index
    %c0_4 = arith.constant 0 : index
    %3 = vector.load %arg3[%c0_3, %c0_4] : memref<1x128xf32, #tpu.memory_space<vmem>>, vector<1x128xf32>
    %4 = vector.shape_cast %3 : vector<1x128xf32> to vector<1x1x128xf32>
    %5 = vector.broadcast %4 : vector<1x1x128xf32> to vector<16x16x128xf32>
    %6 = arith.mulf %2, %5 : vector<16x16x128xf32>
    %c0_5 = arith.constant 0 : index
    %c0_6 = arith.constant 0 : index
    %7 = vector.load %arg4[%c0_5, %c0_6] : memref<1x128xf32, #tpu.memory_space<vmem>>, vector<1x128xf32>
    %8 = vector.shape_cast %7 : vector<1x128xf32> to vector<1x1x128xf32>
    %9 = vector.broadcast %8 : vector<1x1x128xf32> to vector<16x16x128xf32>
    %10 = arith.addf %6, %9 : vector<16x16x128xf32>
    %cst = arith.constant 0.000000e+00 : f32
    %11 = vector.broadcast %cst : f32 to vector<16x16x128xf32>
    %12 = arith.maximumf %10, %11 : vector<16x16x128xf32>
    %c0_7 = arith.constant 0 : index
    %c0_8 = arith.constant 0 : index
    %c0_9 = arith.constant 0 : index
    %c0_10 = arith.constant 0 : index
    %13 = vector.load %arg5[%c0_7, %c0_8, %c0_9, %c0_10] : memref<1x1x1x128xf32, #tpu.memory_space<vmem>>, vector<1x1x1x128xf32>
    %14 = vector.shape_cast %13 : vector<1x1x1x128xf32> to vector<1x128xf32>
    %15 = vector.shape_cast %14 : vector<1x128xf32> to vector<1x1x128xf32>
    %16 = vector.broadcast %15 : vector<1x1x128xf32> to vector<16x16x128xf32>
    %17 = arith.addf %12, %16 : vector<16x16x128xf32>
    %c0_11 = arith.constant 0 : index
    %c0_12 = arith.constant 0 : index
    %c0_13 = arith.constant 0 : index
    %c0_14 = arith.constant 0 : index
    %18 = vector.load %arg6[%c0_11, %c0_12, %c0_13, %c0_14] : memref<1x16x16x128xf32, #tpu.memory_space<vmem>>, vector<1x16x16x128xf32>
    %19 = vector.shape_cast %18 : vector<1x16x16x128xf32> to vector<16x16x128xf32>
    %20 = vector.shape_cast %17 : vector<16x16x128xf32> to vector<1x16x16x128xf32>
    tpu.vector_store %arg6[%c0_11, %c0_12, %c0_13, %c0_14], %20 {strides = array<i32>} : memref<1x16x16x128xf32, #tpu.memory_space<vmem>>, vector<1x16x16x128xf32>,
    return
  }
  func.func @transform_0(%arg0: i32, %arg1: i32) -> (i32, i32, i32, i32) {
    %c0_i32 = arith.constant 0 : i32
    %c0_i32_0 = arith.constant 0 : i32
    %c0_i32_1 = arith.constant 0 : i32
    return %arg0, %arg1, %c0_i32, %c0_i32_0 : i32, i32, i32, i32
  }
  func.func @transform_1(%arg0: i32, %arg1: i32) -> (i32, i32) {
    %c0_i32 = arith.constant 0 : i32
    %c0_i32_0 = arith.constant 0 : i32
    %c0_i32_1 = arith.constant 0 : i32
    return %c0_i32, %c0_i32_0 : i32, i32
  }
  func.func @transform_2(%arg0: i32, %arg1: i32) -> (i32, i32) {
    %c0_i32 = arith.constant 0 : i32
    %c0_i32_0 = arith.constant 0 : i32
    %c0_i32_1 = arith.constant 0 : i32
    return %c0_i32, %c0_i32_0 : i32, i32
  }
  func.func @transform_3(%arg0: i32, %arg1: i32) -> (i32, i32, i32, i32) {
    %c0_i32 = arith.constant 0 : i32
    %c0_i32_0 = arith.constant 0 : i32
    %c0_i32_1 = arith.constant 0 : i32
    %c0_i32_2 = arith.constant 0 : i32
    return %arg0, %c0_i32, %c0_i32_0, %c0_i32_1 : i32, i32, i32, i32
  }
  func.func @transform_4(%arg0: i32, %arg1: i32) -> (i32, i32, i32, i32) {
    %c0_i32 = arith.constant 0 : i32
    %c0_i32_0 = arith.constant 0 : i32
    %c0_i32_1 = arith.constant 0 : i32
    return %arg0, %arg1, %c0_i32, %c0_i32_0 : i32, i32, i32, i32
  }
}

</mosaic_0001>

<bundles_post_ra>
// kernel: double_conv_forward.6
= control target key start
LH: loop header
LB: loop body
LE: loop exit
PB: predicated region body
PF: predicated region fallthrough
CT: control target
= control target key end

     0   :  { %v109_v0 = vmov 0.0   ;;  %vm110_vm0 = vmmov 0   ;;  %vm40_vm1 = vcmask 261120   ;;  %s146_s1 = inlined_call_operand.vmem [shape: bf16[32,128], index: 1, kind: input, shape index: {}]   ;;  %s147_s0 = inlined_call_operand.vmem [shape: f32[2,32], index: 0, kind: input, shape index: {}]   ;;  %s148_s2 = inlined_call_operand.vmem [shape: f32[1,128], index: 2, kind: input, shape index: {}]   ;;  %s149_s3 = inlined_call_operand.vmem [shape: f32[2,128], index: 3, kind: output, shape index: {}]  }
   0x1   :  { %97 = vmatprep.subr.bf16.mxu0 %v109_v0  ;;  %v107_v1 = vld [vmem:[%s146_s1] sm:$0xff]   ;;  %101 = vmatprep.mubr.msk.bf16.mxu0 %vm110_vm0, %v109_v0  ;;  %v108_v2 = vld [vmem:[%s146_s1 + $0x8] sm:$0xff]  }
   0x2   :  { %98 = vmatpush3.bf16.msra.mxu0 %v107_v1  ;;  %v15_v3 = vld [vmem:[%s147_s0] sm:$0x3] }
   0x3   :  { %99 = vmatprep.subr.bf16.mxu0 %v109_v0  ;;  %v16_v4 = vpack.c.bf16 %v15_v3, %v15_v3  ;;  %v90_v5 = vld [vmem:[%s148_s2] ss:$0 sm:$0xff] }
   0x6   :  { %100 = vmatpush3.bf16.msra.mxu0 %v108_v2 }
   0x9   :  { %102 = vmatmul.mubr.msk.bf16.vlgmr.msra.gmra.mrb[0].mxu0 %vm40_vm1, %v16_v4 }
  0xdc   :  { %v78_v6 = vpop.f32.mrb[0].mxu0 }
  0xdd   :  { %v79_v7 = vadd.f32 %v90_v5, %v78_v6  ;;  %v103_v8 = vpop.f32.mrb[1].mxu0 }
  0xde   :  { %v81_v9 = vpop.f32.mrb[2].mxu0 }
  0xdf   :  { %v84_v10 = vmax.f32 %v79_v7, 0.0  ;;  %v104_v11 = vpop.f32.mrb[3].mxu0 }
  0xe1   :  { %85 = vst [vmem:[%s149_s3] sm:$0x3] %v84_v10 }

// kernel: double_conv_forward.4
= control target key start
LH: loop header
LB: loop body
LE: loop exit
PB: predicated region body
PF: predicated region fallthrough
CT: control target
= control target key end

     0   :  { %s1411_s12 = smov 0   ;;  %s1413_s13 = smov 0   ;;  %s1588_s0 = inlined_call_operand.vmem [shape: bf16[2,256,36], index: 0, kind: input, shape index: {}]   ;;  %s1589_s1 = inlined_call_operand.vmem [shape: bf16[36,128], index: 1, kind: input, shape index: {}]   ;;  %s1590_s2 = inlined_call_operand.vmem [shape: bf16[2,256,128], index: 2, kind: output, shape index: {0}]   ;;  %s1591_s3 = inlined_call_operand.vmem [shape: f32[2,1,2,128], index: 3, kind: output, shape index: {1}]  }
   0x1   :  { %s1415_s14 = smov 0  }
   0x2 LB: > { %s33_s15 = sadd.s32 1, %s1385_s13  ;;  %p1055_p0 = scmp.ge.s32.totalorder %s1389_s14, 1  ;;  %s1389_s14 = sphi %s1415_s14, %s14_s14   ;;  %s1385_s13 = sphi %s1413_s13, %s1593_s13   ;;  %s1381_s12 = sphi %s1411_s12, %s1592_s12  }
   0x3   : > { %p35_p1 = scmp.ge.s32.totalorder %s33_s15, 2  ;;  %p183_p2 = scmp.lt.s32.totalorder %s1389_s14, 3 }
   0x5   : > { %s1595_s15 = smov (%p35_p1, %s33_s15), 0  ;;  %p184_p3 = pnand %p1055_p0, %p183_p2 }
   0x6   : > { %v1348_v0 = vld [vmem:[%s1589_s1] sm:$0xff] (!%p184_p3)   ;;  %v1349_v1 = vld [vmem:[%s1589_s1 + $0x8] sm:$0xff] (!%p184_p3)   ;;  %p233_p4 = scmp.lt.s32.totalorder (!%p184_p3), %s1381_s12, 1  ;;  %v1350_v2 = vld [vmem:[%s1589_s1 + $0x10] ss:$0 sps:$4 sm:$0x33] (!%p184_p3)  }
   0x7   : > { %187 = sbr.rel (%p184_p3) target bundleno = 311 (0x137), region = 28  ;;  %1278 = vmatprep.subr.bf16.mxu0 (!%p184_p3), %v1348_v0  ;;  %1316 = vmatprep.subr.bf16.mxu1 (!%p184_p3), %v1348_v0  ;;  %vm451_vm0 = vcmask (!%p184_p3), 1041408   ;;  %vm402_vm1 = vcmask (!%p184_p3), 293888  }
   0x8   : > { %1279 = vmatpush3.bf16.msra.mxu0 (!%p184_p3), %v1348_v0  ;;  %1319 = vmatpush3.bf16.msra.mxu1 (!%p184_p3), %v1348_v0  ;;  %v453_v4 = vsel (!%p184_p3), %vm451_vm0, %v1350_v2, 0 }
   0x9   : > { %1280 = vmatprep.subr.bf16.mxu0 (!%p184_p3), %v1349_v1  ;;  %1317 = vmatprep.subr.bf16.mxu1 (!%p184_p3), %v1349_v1 }
   0xc   : > { %1281 = vmatpush3.bf16.msra.mxu0 (!%p184_p3), %v1349_v1  ;;  %1320 = vmatpush3.bf16.msra.mxu1 (!%p184_p3), %v1349_v1 }
   0xd   : > { %1322 = vmatprep.subr.msk.bf16.mxu0 (!%p184_p3), %vm451_vm0, %v1350_v2  ;;  %1323 = vmatprep.subr.msk.bf16.mxu1 (!%p184_p3), %vm451_vm0, %v1350_v2 }
   0xe   : > { %s1597_s12 = smov (!%p233_p4, %s1381_s12), 1 }
   0xf   : > { %s1130_s22 = sshll.u32 %s1597_s12, 7  ;;  %s1060_s29 = sshll.u32 %s1597_s12, 1 }
  0x10   : > { %s1446_s25 = scalar_lea.vmem %s1588_s0, %s1130_s22  ;;  %1283 = vmatpush3.bf16.msra.mxu0 %v453_v4  ;;  %1321 = vmatpush3.bf16.msra.mxu1 %v453_v4  ;;  %s1485_s28 = scalar_lea.vmem %s1590_s2, %s1130_s22 }
  0x11   : > { %v1351_v3 = vld [vmem:[%s1446_s25] sm:$0xff]   ;;  %v1352_v5 = vld [vmem:[%s1446_s25 + $0x8] sm:$0xff]   ;;  %v1353_v6 = vld [vmem:[%s1446_s25 + $0x10] sm:$0xff]   ;;  %s268_s5 = scalar_lea.vmem %s1591_s3, %s1060_s29 }
  0x12   : > { %1284 = vmatprep.mubr.msk.bf16.mxu0 %vm402_vm1, %v1351_v3  ;;  %v1359_v7 = vld [vmem:[%s1446_s25 + $0x40] sm:$0xff]   ;;  %v1360_v8 = vld [vmem:[%s1446_s25 + $0x48] sm:$0xff]   ;;  %v1361_v9 = vld [vmem:[%s1446_s25 + $0x50] sm:$0xff]  }
  0x13   : > { %1285 = vmatmul.mubr.msk.bf16.vlgmr.msra.gmra.mrb[0].mxu0 %vm402_vm1, %v1352_v5  ;;  %1300 = vmatprep.mubr.msk.bf16.mxu1 %vm402_vm1, %v1359_v7  ;;  %v1354_v10 = vld [vmem:[%s1446_s25 + $0x18] sm:$0xff]   ;;  %v1355_v11 = vld [vmem:[%s1446_s25 + $0x20] sm:$0xff]   ;;  %v1356_v14 = vld [vmem:[%s1446_s25 + $0x28] sm:$0xff]  }
  0x14   : > { %1288 = vmatprep.mubr.msk.bf16.mxu0 %vm402_vm1, %v1353_v6  ;;  %1301 = vmatmul.mubr.msk.bf16.vlgmr.msra.gmra.mrb[0].mxu1 %vm402_vm1, %v1360_v8  ;;  %v1362_v12 = vld [vmem:[%s1446_s25 + $0x58] sm:$0xff]   ;;  %v1363_v13 = vld [vmem:[%s1446_s25 + $0x60] sm:$0xff]   ;;  %v1357_v15 = vld [vmem:[%s1446_s25 + $0x30] sm:$0xff]  }
  0x15   : > { %1304 = vmatprep.mubr.msk.bf16.mxu1 %vm402_vm1, %v1361_v9  ;;  %v1364_v16 = vld [vmem:[%s1446_s25 + $0x68] sm:$0xff]   ;;  %v1365_v17 = vld [vmem:[%s1446_s25 + $0x70] sm:$0xff]   ;;  %v1358_v18 = vld [vmem:[%s1446_s25 + $0x38] sm:$0xff]  }
  0x16   : > { %v1366_v19 = vld [vmem:[%s1446_s25 + $0x78] sm:$0xff]  }
  0x1b   : > { %1289 = vmatmul.mubr.msk.bf16.gmra.mrb[4].mxu0 %vm402_vm1, %v1354_v10 }
  0x1c   : > { %1292 = vmatprep.mubr.msk.bf16.mxu0 %vm402_vm1, %v1355_v11  ;;  %1305 = vmatmul.mubr.msk.bf16.gmra.mrb[4].mxu1 %vm402_vm1, %v1362_v12 }
  0x1d   : > { %1308 = vmatprep.mubr.msk.bf16.mxu1 %vm402_vm1, %v1363_v13 }
  0x23   : > { %1293 = vmatmul.mubr.msk.bf16.gmra.mrb[8].mxu0 %vm402_vm1, %v1356_v14 }
  0x24   : > { %1296 = vmatprep.mubr.msk.bf16.mxu0 %vm402_vm1, %v1357_v15  ;;  %1309 = vmatmul.mubr.msk.bf16.gmra.mrb[8].mxu1 %vm402_vm1, %v1364_v16 }
  0x25   : > { %1312 = vmatprep.mubr.msk.bf16.mxu1 %vm402_vm1, %v1365_v17 }
  0x2b   : > { %1297 = vmatmul.mubr.msk.bf16.gmra.mrb[12].mxu0 %vm402_vm1, %v1358_v18 }
  0x2c   : > { %1313 = vmatmul.mubr.msk.bf16.gmra.mrb[12].mxu1 %vm402_vm1, %v1366_v19 }
  0xe6   : > { %v1286_v20 = vpop.f32.mrb[0].mxu0 }
  0xe7   : > { %v489_v21 = vpop.f32.mrb[1].mxu0  ;;  %v1487_v29 = vpop.f32.mrb[0].mxu1  ;;  %v816_v31 = vmul.f32 %v1286_v20, %v1286_v20 }
  0xe8   : > { %v1287_v22 = vpop.f32.mrb[2].mxu0  ;;  %v814_v25 = vmul.f32 %v489_v21, %v489_v21  ;;  %v1490_v30 = vpop.f32.mrb[1].mxu1 }
  0xe9   : > { %v1172_v23 = vpack.c.bf16 %v1287_v22, %v1286_v20  ;;  %v492_v24 = vpop.f32.mrb[3].mxu0  ;;  %v1493_v34 = vpop.f32.mrb[2].mxu1  ;;  %v817_v37 = vmul.f32 %v1287_v22, %v1287_v22 }
  0xea   : > { %v1167_v26 = vpack.c.bf16 %v492_v24, %v489_v21  ;;  %v776_v27 = vadd.f32 %v492_v24, %v489_v21  ;;  %v815_v28 = vmul.f32 %v492_v24, %v492_v24  ;;  %v1212_v35 = vpack.c.bf16 %v1493_v34, %v1487_v29  ;;  %v1497_v36 = vpop.f32.mrb[3].mxu1 }
  0xeb   : > { %1244 = vst [vmem:[%s1485_s28 + $0x8] sm:$0xff] %v1172_v23   ;;  %v1207_v41 = vpack.c.bf16 %v1497_v36, %v1490_v30 }
  0xec   : > { %1168 = vst [vmem:[%s1485_s28] sm:$0xff] %v1167_v26   ;;  %v777_v32 = vadd.f32 %v1286_v20, %v776_v27  ;;  %v846_v33 = vadd.f32 %v815_v28, %v814_v25  ;;  %1252 = vst [vmem:[%s1485_s28 + $0x48] sm:$0xff] %v1212_v35  }
  0xed   : > { %1251 = vst [vmem:[%s1485_s28 + $0x40] sm:$0xff] %v1207_v41  }
  0xee   : > { %v847_v38 = vadd.f32 %v846_v33, %v816_v31  ;;  %v1290_v39 = vpop.f32.mrb[4].mxu0  ;;  %v778_v40 = vadd.f32 %v1287_v22, %v777_v32 }
  0xef   : > { %v505_v42 = vpop.f32.mrb[5].mxu0  ;;  %v1503_v53 = vpop.f32.mrb[4].mxu1  ;;  %v820_v55 = vmul.f32 %v1290_v39, %v1290_v39 }
  0xf0   : > { %v779_v43 = vadd.f32 %v778_v40, %v505_v42  ;;  %v818_v44 = vmul.f32 %v505_v42, %v505_v42  ;;  %v848_v45 = vadd.f32 %v847_v38, %v817_v37  ;;  %v1291_v46 = vpop.f32.mrb[6].mxu0  ;;  %v1506_v54 = vpop.f32.mrb[5].mxu1 }
  0xf1   : > { %v1182_v47 = vpack.c.bf16 %v1291_v46, %v1290_v39  ;;  %v508_v48 = vpop.f32.mrb[7].mxu0  ;;  %v1509_v58 = vpop.f32.mrb[6].mxu1  ;;  %v821_v61 = vmul.f32 %v1291_v46, %v1291_v46 }
  0xf2   : > { %v849_v49 = vadd.f32 %v848_v45, %v818_v44  ;;  %v1177_v50 = vpack.c.bf16 %v508_v48, %v505_v42  ;;  %v780_v51 = vadd.f32 %v779_v43, %v508_v48  ;;  %v819_v52 = vmul.f32 %v508_v48, %v508_v48  ;;  %v1513_v60 = vpop.f32.mrb[7].mxu1 }
  0xf3   : > { %1246 = vst [vmem:[%s1485_s28 + $0x18] sm:$0xff] %v1182_v47   ;;  %v1222_v59 = vpack.c.bf16 %v1509_v58, %v1503_v53  ;;  %v1217_v1 = vpack.c.bf16 %v1513_v60, %v1506_v54  ;;  %v830_v47 = vmul.f32 %v1490_v30, %v1490_v30 }
  0xf4   : > { %1245 = vst [vmem:[%s1485_s28 + $0x10] sm:$0xff] %v1177_v50   ;;  %v781_v56 = vadd.f32 %v1290_v39, %v780_v51  ;;  %v850_v57 = vadd.f32 %v849_v49, %v819_v52 }
  0xf5   : > { %1254 = vst [vmem:[%s1485_s28 + $0x58] sm:$0xff] %v1222_v59   ;;  %1253 = vst [vmem:[%s1485_s28 + $0x50] sm:$0xff] %v1217_v1  }
  0xf6   : > { %v851_v62 = vadd.f32 %v850_v57, %v820_v55  ;;  %v1294_v63 = vpop.f32.mrb[8].mxu0  ;;  %v782_v0 = vadd.f32 %v1291_v46, %v781_v56 }
  0xf7   : > { %v521_v2 = vpop.f32.mrb[9].mxu0  ;;  %v1519_v13 = vpop.f32.mrb[8].mxu1  ;;  %v824_v15 = vmul.f32 %v1294_v63, %v1294_v63 }
  0xf8   : > { %v783_v3 = vadd.f32 %v782_v0, %v521_v2  ;;  %v822_v4 = vmul.f32 %v521_v2, %v521_v2  ;;  %v852_v5 = vadd.f32 %v851_v62, %v821_v61  ;;  %v1295_v6 = vpop.f32.mrb[10].mxu0  ;;  %v1522_v14 = vpop.f32.mrb[9].mxu1  ;;  %v831_v62 = vmul.f32 %v1497_v36, %v1497_v36 }
  0xf9   : > { %v1192_v7 = vpack.c.bf16 %v1295_v6, %v1294_v63  ;;  %v524_v8 = vpop.f32.mrb[11].mxu0  ;;  %v1525_v18 = vpop.f32.mrb[10].mxu1  ;;  %v825_v21 = vmul.f32 %v1295_v6, %v1295_v6 }
  0xfa   : > { %v853_v9 = vadd.f32 %v852_v5, %v822_v4  ;;  %v1187_v10 = vpack.c.bf16 %v524_v8, %v521_v2  ;;  %v784_v11 = vadd.f32 %v783_v3, %v524_v8  ;;  %v823_v12 = vmul.f32 %v524_v8, %v524_v8  ;;  %v1529_v20 = vpop.f32.mrb[11].mxu1 }
  0xfb   : > { %1248 = vst [vmem:[%s1485_s28 + $0x28] sm:$0xff] %v1192_v7   ;;  %v1232_v19 = vpack.c.bf16 %v1525_v18, %v1519_v13  ;;  %v1227_v25 = vpack.c.bf16 %v1529_v20, %v1522_v14  ;;  %v833_v2 = vmul.f32 %v1493_v34, %v1493_v34  ;;  %v834_v4 = vmul.f32 %v1506_v54, %v1506_v54 }
  0xfc   : > { %1247 = vst [vmem:[%s1485_s28 + $0x20] sm:$0xff] %v1187_v10   ;;  %v785_v16 = vadd.f32 %v1294_v63, %v784_v11  ;;  %v854_v17 = vadd.f32 %v853_v9, %v823_v12  ;;  %v832_v63 = vmul.f32 %v1487_v29, %v1487_v29  ;;  %v835_v8 = vmul.f32 %v1513_v60, %v1513_v60 }
  0xfd   : > { %1256 = vst [vmem:[%s1485_s28 + $0x68] sm:$0xff] %v1232_v19   ;;  %1255 = vst [vmem:[%s1485_s28 + $0x60] sm:$0xff] %v1227_v25   ;;  %v839_v19 = vmul.f32 %v1529_v20, %v1529_v20 }
  0xfe   : > { %v855_v22 = vadd.f32 %v854_v17, %v824_v15  ;;  %v1298_v23 = vpop.f32.mrb[12].mxu0  ;;  %v786_v24 = vadd.f32 %v1295_v6, %v785_v16 }
  0xff   : > { %v537_v26 = vpop.f32.mrb[13].mxu0  ;;  %v1314_v41 = vpop.f32.mrb[12].mxu1  ;;  %v828_v43 = vmul.f32 %v1298_v23, %v1298_v23 }
 0x100   : > { %v787_v27 = vadd.f32 %v786_v24, %v537_v26  ;;  %v826_v28 = vmul.f32 %v537_v26, %v537_v26  ;;  %v856_v31 = vadd.f32 %v855_v22, %v825_v21  ;;  %v1299_v32 = vpop.f32.mrb[14].mxu0  ;;  %v601_v42 = vpop.f32.mrb[13].mxu1 }
 0x101   : > { %v1202_v33 = vpack.c.bf16 %v1299_v32, %v1298_v23  ;;  %v540_v35 = vpop.f32.mrb[15].mxu0  ;;  %v1315_v46 = vpop.f32.mrb[14].mxu1  ;;  %v829_v50 = vmul.f32 %v1299_v32, %v1299_v32 }
 0x102   : > { %v857_v37 = vadd.f32 %v856_v31, %v826_v28  ;;  %v1197_v38 = vpack.c.bf16 %v540_v35, %v537_v26  ;;  %v788_v39 = vadd.f32 %v787_v27, %v540_v35  ;;  %v827_v40 = vmul.f32 %v540_v35, %v540_v35  ;;  %v604_v49 = vpop.f32.mrb[15].mxu1 }
 0x103   : > { %1250 = vst [vmem:[%s1485_s28 + $0x38] sm:$0xff] %v1202_v33   ;;  %v1242_v48 = vpack.c.bf16 %v1315_v46, %v1314_v41  ;;  %v1237_v55 = vpack.c.bf16 %v604_v49, %v601_v42  ;;  %v843_v31 = vmul.f32 %v604_v49, %v604_v49  ;;  %v845_v35 = vmul.f32 %v1315_v46, %v1315_v46 }
 0x104   : > { %1249 = vst [vmem:[%s1485_s28 + $0x30] sm:$0xff] %v1197_v38   ;;  %v789_v44 = vadd.f32 %v1298_v23, %v788_v39  ;;  %v858_v45 = vadd.f32 %v857_v37, %v827_v40 }
 0x105   : > { %1258 = vst [vmem:[%s1485_s28 + $0x78] sm:$0xff] %v1242_v48   ;;  %1257 = vst [vmem:[%s1485_s28 + $0x70] sm:$0xff] %v1237_v55  }
 0x106   : > { %v859_v51 = vadd.f32 %v858_v45, %v828_v43  ;;  %v790_v52 = vadd.f32 %v1299_v32, %v789_v44 }
 0x108   : > { %v791_v56 = vadd.f32 %v790_v52, %v1490_v30  ;;  %v860_v57 = vadd.f32 %v859_v51, %v829_v50 }
 0x10a   : > { %v861_v59 = vadd.f32 %v860_v57, %v830_v47  ;;  %v792_v61 = vadd.f32 %v791_v56, %v1497_v36 }
 0x10c   : > { %v793_v0 = vadd.f32 %v1487_v29, %v792_v61  ;;  %v862_v1 = vadd.f32 %v861_v59, %v831_v62  ;;  %v836_v29 = vmul.f32 %v1503_v53, %v1503_v53 }
 0x10e   : > { %v863_v3 = vadd.f32 %v862_v1, %v832_v63  ;;  %v794_v30 = vadd.f32 %v1493_v34, %v793_v0  ;;  %v837_v34 = vmul.f32 %v1509_v58, %v1509_v58 }
 0x110   : > { %v795_v5 = vadd.f32 %v794_v30, %v1506_v54  ;;  %v864_v6 = vadd.f32 %v863_v3, %v833_v2  ;;  %v838_v54 = vmul.f32 %v1522_v14, %v1522_v14 }
 0x112   : > { %v865_v7 = vadd.f32 %v864_v6, %v834_v4  ;;  %v796_v36 = vadd.f32 %v795_v5, %v1513_v60 }
 0x114   : > { %v797_v9 = vadd.f32 %v1503_v53, %v796_v36  ;;  %v866_v10 = vadd.f32 %v865_v7, %v835_v8  ;;  %v840_v53 = vmul.f32 %v1519_v13, %v1519_v13 }
 0x116   : > { %v867_v11 = vadd.f32 %v866_v10, %v836_v29  ;;  %v798_v12 = vadd.f32 %v1509_v58, %v797_v9  ;;  %v841_v58 = vmul.f32 %v1525_v18, %v1525_v18 }
 0x118   : > { %v799_v15 = vadd.f32 %v798_v12, %v1522_v14  ;;  %v868_v16 = vadd.f32 %v867_v11, %v837_v34  ;;  %v842_v14 = vmul.f32 %v601_v42, %v601_v42 }
 0x11a   : > { %v869_v17 = vadd.f32 %v868_v16, %v838_v54  ;;  %v800_v60 = vadd.f32 %v799_v15, %v1529_v20  ;;  %v844_v20 = vmul.f32 %v1314_v41, %v1314_v41 }
 0x11c   : > { %v801_v21 = vadd.f32 %v1519_v13, %v800_v60  ;;  %v870_v22 = vadd.f32 %v869_v17, %v839_v19 }
 0x11e   : > { %v871_v23 = vadd.f32 %v870_v22, %v840_v53  ;;  %v802_v24 = vadd.f32 %v1525_v18, %v801_v21 }
 0x120   : > { %v803_v25 = vadd.f32 %v802_v24, %v601_v42  ;;  %v872_v26 = vadd.f32 %v871_v23, %v841_v58 }
 0x122   : > { %v873_v27 = vadd.f32 %v872_v26, %v842_v14  ;;  %v804_v28 = vadd.f32 %v803_v25, %v604_v49 }
 0x124   : > { %v805_v32 = vadd.f32 %v1314_v41, %v804_v28  ;;  %v874_v33 = vadd.f32 %v873_v27, %v843_v31 }
 0x126   : > { %v806_v37 = vadd.f32 %v1315_v46, %v805_v32  ;;  %v875_v13 = vadd.f32 %v874_v33, %v844_v20 }
 0x128   : > { %v807_v38 = vrot.slane %v806_v37, 4  ;;  %v876_v39 = vadd.f32 %v875_v13, %v845_v35 }
 0x12a   : > { %v808_v40 = vadd.f32 %v807_v38, %v806_v37  ;;  %v877_v43 = vrot.slane %v876_v39, 4 }
 0x12c   : > { %v809_v44 = vrot.slane %v808_v40, 2  ;;  %v878_v45 = vadd.f32 %v877_v43, %v876_v39 }
 0x12e   : > { %v810_v18 = vadd.f32 %v809_v44, %v808_v40  ;;  %v879_v42 = vrot.slane %v878_v45, 2 }
 0x130   : > { %v811_v47 = vrot.slane %v810_v18, 1  ;;  %v880_v48 = vadd.f32 %v879_v42, %v878_v45 }
 0x132   : > { %v812_v41 = vadd.f32 %v811_v47, %v810_v18  ;;  %v881_v49 = vrot.slane %v880_v48, 1 }
 0x134   : > { %813 = vst [vmem:[%s268_s5] sm:$0x1] %v812_v41  ;;  %v882_v46 = vadd.f32 %v881_v49, %v880_v48 }
 0x136   : > { %883 = vst [vmem:[%s268_s5 + $0x1] sm:$0x1] %v882_v46 }
 0x137 PF: > { %s14_s14 = sadd.s32 1, %s1389_s14   ;;  %s1592_s12 = smov %s1385_s13 }
 0x138   : > { %p11_p5 = scmp.ge.s32.totalorder %s14_s14, 4   ;;  %s1593_s13 = smov %s1595_s15 }
 0x13a   :  { %13 = sbr.rel (!%p11_p5) target bundleno = 2 (0x2), region = 73 }

// kernel: double_conv_forward.7
= control target key start
LH: loop header
LB: loop body
LE: loop exit
PB: predicated region body
PF: predicated region fallthrough
CT: control target
= control target key end

     0   :  { %s774_s15 = smov 0   ;;  %s776_s16 = smov 0   ;;  %s975_s0 = inlined_call_operand.vmem [shape: bf16[2,16,16,128], index: 0, kind: input, shape index: {}]   ;;  %s976_s1 = inlined_call_operand.vmem [shape: f32[1,128], index: 1, kind: input, shape index: {}]   ;;  %s977_s2 = inlined_call_operand.vmem [shape: f32[1,128], index: 2, kind: input, shape index: {}]   ;;  %s978_s3 = inlined_call_operand.vmem [shape: f32[2,1,1,128], index: 3, kind: input, shape index: {}]   ;;  %s979_s4 = inlined_call_operand.vmem [shape: f32[2,16,16,128], index: 4, kind: output, shape index: {}]  }
   0x1   :  { %s778_s17 = smov 0  }
   0x2 LB: > { %s26_s18 = sadd.s32 1, %s743_s16  ;;  %p610_p0 = scmp.ge.s32.totalorder %s747_s17, 1  ;;  %s747_s17 = sphi %s778_s17, %s14_s17   ;;  %s743_s16 = sphi %s776_s16, %s981_s16   ;;  %s739_s15 = sphi %s774_s15, %s980_s15  }
   0x3   : > { %p28_p1 = scmp.ge.s32.totalorder %s26_s18, 2  ;;  %p192_p2 = scmp.lt.s32.totalorder %s747_s17, 3 }
   0x5   : > { %s983_s18 = smov (%p28_p1, %s26_s18), 0  ;;  %p193_p3 = pnand %p610_p0, %p192_p2 }
   0x6   : > { %p232_p4 = scmp.lt.s32.totalorder (!%p193_p3), %s739_s15, 1  ;;  %v803_v0 = vld [vmem:[%s976_s1] ss:$0 sm:$0xff] (!%p193_p3) }
   0x7   : > { %196 = sbr.rel (%p193_p3) target bundleno = 62 (0x3e), region = 36  ;;  %v812_v9 = vld [vmem:[%s977_s2] ss:$0 sm:$0xff] (!%p193_p3) }
   0xe   : > { %s985_s15 = smov (!%p232_p4, %s739_s15), 1 }
   0xf   : > { %s620_s19 = sshll.u32 %s985_s15, 7  ;;  %s244_s29 = scalar_lea.vmem %s978_s3, %s985_s15 }
  0x10   : > { %s798_s22 = scalar_lea.vmem %s975_s0, %s620_s19  ;;  %s621_s30 = sshll.u32 %s985_s15, 8  ;;  %v831_v26 = vld [vmem:[%s244_s29] ss:$0 sm:$0xff] }
  0x11   : > { %v623_v1 = vld [vmem:[%s798_s22] sm:$0xff]   ;;  %v686_v2 = vld [vmem:[%s798_s22 + $0x8] sm:$0xff]   ;;  %v687_v3 = vld [vmem:[%s798_s22 + $0x10] sm:$0xff]   ;;  %s840_s7 = scalar_lea.vmem %s979_s4, %s621_s30 }
  0x12   : > { %v624_v4 = vunpack.c.l.bf16 %v623_v1  ;;  %v625_v5 = vunpack.c.h.bf16 %v623_v1  ;;  %v628_v6 = vunpack.c.l.bf16 %v686_v2  ;;  %v629_v7 = vunpack.c.h.bf16 %v686_v2  ;;  %v688_v8 = vld [vmem:[%s798_s22 + $0x18] sm:$0xff]   ;;  %v689_v39 = vld [vmem:[%s798_s22 + $0x20] sm:$0xff]   ;;  %v690_v40 = vld [vmem:[%s798_s22 + $0x28] sm:$0xff]  }
  0x13   : > { %v632_v10 = vunpack.c.l.bf16 %v687_v3  ;;  %v633_v11 = vunpack.c.h.bf16 %v687_v3  ;;  %v636_v12 = vunpack.c.l.bf16 %v688_v8  ;;  %v637_v13 = vunpack.c.h.bf16 %v688_v8  ;;  %v691_v45 = vld [vmem:[%s798_s22 + $0x30] sm:$0xff]   ;;  %v692_v46 = vld [vmem:[%s798_s22 + $0x38] sm:$0xff]  }
  0x14   : > { %v327_v14 = vmul.f32 %v624_v4, %v803_v0  ;;  %v328_v15 = vmul.f32 %v625_v5, %v803_v0  ;;  %v329_v16 = vmul.f32 %v628_v6, %v803_v0  ;;  %v330_v17 = vmul.f32 %v629_v7, %v803_v0 }
  0x15   : > { %v331_v18 = vmul.f32 %v632_v10, %v803_v0  ;;  %v332_v19 = vmul.f32 %v633_v11, %v803_v0  ;;  %v333_v20 = vmul.f32 %v636_v12, %v803_v0  ;;  %v334_v21 = vmul.f32 %v637_v13, %v803_v0 }
  0x16   : > { %v366_v22 = vadd.f32 %v812_v9, %v327_v14  ;;  %v367_v23 = vadd.f32 %v812_v9, %v328_v15  ;;  %v368_v24 = vadd.f32 %v812_v9, %v329_v16  ;;  %v369_v25 = vadd.f32 %v812_v9, %v330_v17 }
  0x17   : > { %v370_v27 = vadd.f32 %v812_v9, %v331_v18  ;;  %v371_v28 = vadd.f32 %v812_v9, %v332_v19  ;;  %v372_v29 = vadd.f32 %v812_v9, %v333_v20  ;;  %v373_v30 = vadd.f32 %v812_v9, %v334_v21  ;;  %v693_v21 = vld [vmem:[%s798_s22 + $0x40] sm:$0xff]  }
  0x18   : > { %v398_v31 = vmax.f32 %v366_v22, 0.0  ;;  %v399_v32 = vmax.f32 %v367_v23, 0.0  ;;  %v400_v33 = vmax.f32 %v368_v24, 0.0  ;;  %v401_v34 = vmax.f32 %v369_v25, 0.0  ;;  %v694_v22 = vld [vmem:[%s798_s22 + $0x48] sm:$0xff]  }
  0x19   : > { %v402_v35 = vmax.f32 %v370_v27, 0.0  ;;  %v403_v36 = vmax.f32 %v371_v28, 0.0  ;;  %v404_v37 = vmax.f32 %v372_v29, 0.0  ;;  %v405_v38 = vmax.f32 %v373_v30, 0.0  ;;  %v695_v28 = vld [vmem:[%s798_s22 + $0x50] sm:$0xff]   ;;  %v696_v29 = vld [vmem:[%s798_s22 + $0x58] sm:$0xff]  }
  0x1a   : > { %v437_v41 = vadd.f32 %v831_v26, %v398_v31  ;;  %v438_v42 = vadd.f32 %v831_v26, %v399_v32  ;;  %v439_v43 = vadd.f32 %v831_v26, %v400_v33  ;;  %v440_v44 = vadd.f32 %v831_v26, %v401_v34 }
  0x1b   : > { %v441_v47 = vadd.f32 %v831_v26, %v402_v35  ;;  %v442_v48 = vadd.f32 %v831_v26, %v403_v36  ;;  %v443_v49 = vadd.f32 %v831_v26, %v404_v37  ;;  %v444_v50 = vadd.f32 %v831_v26, %v405_v38 }
  0x1c   : > { %469 = vst [vmem:[%s840_s7] sm:$0xff] %v437_v41  ;;  %470 = vst [vmem:[%s840_s7 + $0x8] sm:$0xff] %v438_v42  ;;  %v640_v51 = vunpack.c.l.bf16 %v689_v39  ;;  %v641_v52 = vunpack.c.h.bf16 %v689_v39  ;;  %v644_v53 = vunpack.c.l.bf16 %v690_v40  ;;  %v645_v54 = vunpack.c.h.bf16 %v690_v40 }
  0x1d   : > { %471 = vst [vmem:[%s840_s7 + $0x10] sm:$0xff] %v439_v43  ;;  %472 = vst [vmem:[%s840_s7 + $0x18] sm:$0xff] %v440_v44  ;;  %v648_v55 = vunpack.c.l.bf16 %v691_v45  ;;  %v649_v56 = vunpack.c.h.bf16 %v691_v45  ;;  %v652_v57 = vunpack.c.l.bf16 %v692_v46  ;;  %v653_v58 = vunpack.c.h.bf16 %v692_v46 }
  0x1e   : > { %473 = vst [vmem:[%s840_s7 + $0x20] sm:$0xff] %v441_v47  ;;  %474 = vst [vmem:[%s840_s7 + $0x28] sm:$0xff] %v442_v48  ;;  %v335_v59 = vmul.f32 %v640_v51, %v803_v0  ;;  %v336_v60 = vmul.f32 %v641_v52, %v803_v0  ;;  %v337_v61 = vmul.f32 %v644_v53, %v803_v0  ;;  %v656_v34 = vunpack.c.l.bf16 %v693_v21 }
  0x1f   : > { %475 = vst [vmem:[%s840_s7 + $0x30] sm:$0xff] %v443_v49  ;;  %476 = vst [vmem:[%s840_s7 + $0x38] sm:$0xff] %v444_v50  ;;  %v338_v62 = vmul.f32 %v645_v54, %v803_v0  ;;  %v339_v63 = vmul.f32 %v648_v55, %v803_v0  ;;  %v340_v1 = vmul.f32 %v649_v56, %v803_v0  ;;  %v657_v35 = vunpack.c.h.bf16 %v693_v21 }
  0x20   : > { %v341_v2 = vmul.f32 %v652_v57, %v803_v0  ;;  %v342_v3 = vmul.f32 %v653_v58, %v803_v0  ;;  %v374_v4 = vadd.f32 %v812_v9, %v335_v59  ;;  %v375_v5 = vadd.f32 %v812_v9, %v336_v60 }
  0x21   : > { %v376_v6 = vadd.f32 %v812_v9, %v337_v61  ;;  %v377_v7 = vadd.f32 %v812_v9, %v338_v62  ;;  %v378_v8 = vadd.f32 %v812_v9, %v339_v63  ;;  %v379_v10 = vadd.f32 %v812_v9, %v340_v1 }
  0x22   : > { %v380_v11 = vadd.f32 %v812_v9, %v341_v2  ;;  %v381_v12 = vadd.f32 %v812_v9, %v342_v3  ;;  %v406_v13 = vmax.f32 %v374_v4, 0.0  ;;  %v407_v14 = vmax.f32 %v375_v5, 0.0  ;;  %v697_v3 = vld [vmem:[%s798_s22 + $0x60] sm:$0xff]   ;;  %v698_v4 = vld [vmem:[%s798_s22 + $0x68] sm:$0xff]  }
  0x23   : > { %v408_v15 = vmax.f32 %v376_v6, 0.0  ;;  %v409_v16 = vmax.f32 %v377_v7, 0.0  ;;  %v410_v17 = vmax.f32 %v378_v8, 0.0  ;;  %v411_v18 = vmax.f32 %v379_v10, 0.0  ;;  %v699_v10 = vld [vmem:[%s798_s22 + $0x70] sm:$0xff]  }
  0x24   : > { %v412_v19 = vmax.f32 %v380_v11, 0.0  ;;  %v413_v20 = vmax.f32 %v381_v12, 0.0  ;;  %v445_v23 = vadd.f32 %v831_v26, %v406_v13  ;;  %v446_v24 = vadd.f32 %v831_v26, %v407_v14  ;;  %v700_v11 = vld [vmem:[%s798_s22 + $0x78] sm:$0xff]  }
  0x25   : > { %v447_v25 = vadd.f32 %v831_v26, %v408_v15  ;;  %v448_v27 = vadd.f32 %v831_v26, %v409_v16  ;;  %v449_v30 = vadd.f32 %v831_v26, %v410_v17  ;;  %v450_v31 = vadd.f32 %v831_v26, %v411_v18 }
  0x26   : > { %v451_v32 = vadd.f32 %v831_v26, %v412_v19  ;;  %v452_v33 = vadd.f32 %v831_v26, %v413_v20  ;;  %477 = vst [vmem:[%s840_s7 + $0x40] sm:$0xff] %v445_v23  ;;  %478 = vst [vmem:[%s840_s7 + $0x48] sm:$0xff] %v446_v24  ;;  %v660_v36 = vunpack.c.l.bf16 %v694_v22  ;;  %v661_v37 = vunpack.c.h.bf16 %v694_v22 }
  0x27   : > { %479 = vst [vmem:[%s840_s7 + $0x50] sm:$0xff] %v447_v25  ;;  %480 = vst [vmem:[%s840_s7 + $0x58] sm:$0xff] %v448_v27  ;;  %v664_v38 = vunpack.c.l.bf16 %v695_v28  ;;  %v665_v39 = vunpack.c.h.bf16 %v695_v28  ;;  %v668_v40 = vunpack.c.l.bf16 %v696_v29  ;;  %v669_v41 = vunpack.c.h.bf16 %v696_v29 }
  0x28   : > { %481 = vst [vmem:[%s840_s7 + $0x60] sm:$0xff] %v449_v30  ;;  %482 = vst [vmem:[%s840_s7 + $0x68] sm:$0xff] %v450_v31  ;;  %v343_v42 = vmul.f32 %v656_v34, %v803_v0  ;;  %v344_v43 = vmul.f32 %v657_v35, %v803_v0  ;;  %v345_v44 = vmul.f32 %v660_v36, %v803_v0  ;;  %v672_v16 = vunpack.c.l.bf16 %v697_v3 }
  0x29   : > { %483 = vst [vmem:[%s840_s7 + $0x70] sm:$0xff] %v451_v32  ;;  %484 = vst [vmem:[%s840_s7 + $0x78] sm:$0xff] %v452_v33  ;;  %v346_v45 = vmul.f32 %v661_v37, %v803_v0  ;;  %v347_v46 = vmul.f32 %v664_v38, %v803_v0  ;;  %v348_v47 = vmul.f32 %v665_v39, %v803_v0  ;;  %v673_v17 = vunpack.c.h.bf16 %v697_v3 }
  0x2a   : > { %v349_v48 = vmul.f32 %v668_v40, %v803_v0  ;;  %v350_v49 = vmul.f32 %v669_v41, %v803_v0  ;;  %v382_v50 = vadd.f32 %v812_v9, %v343_v42  ;;  %v383_v51 = vadd.f32 %v812_v9, %v344_v43 }
  0x2b   : > { %v384_v52 = vadd.f32 %v812_v9, %v345_v44  ;;  %v385_v53 = vadd.f32 %v812_v9, %v346_v45  ;;  %v386_v54 = vadd.f32 %v812_v9, %v347_v46  ;;  %v387_v55 = vadd.f32 %v812_v9, %v348_v47 }
  0x2c   : > { %v388_v56 = vadd.f32 %v812_v9, %v349_v48  ;;  %v389_v57 = vadd.f32 %v812_v9, %v350_v49  ;;  %v414_v58 = vmax.f32 %v382_v50, 0.0  ;;  %v415_v59 = vmax.f32 %v383_v51, 0.0 }
  0x2d   : > { %v416_v60 = vmax.f32 %v384_v52, 0.0  ;;  %v417_v61 = vmax.f32 %v385_v53, 0.0  ;;  %v418_v62 = vmax.f32 %v386_v54, 0.0  ;;  %v419_v63 = vmax.f32 %v387_v55, 0.0 }
  0x2e   : > { %v420_v1 = vmax.f32 %v388_v56, 0.0  ;;  %v421_v2 = vmax.f32 %v389_v57, 0.0  ;;  %v453_v5 = vadd.f32 %v831_v26, %v414_v58  ;;  %v454_v6 = vadd.f32 %v831_v26, %v415_v59 }
  0x2f   : > { %v455_v7 = vadd.f32 %v831_v26, %v416_v60  ;;  %v456_v8 = vadd.f32 %v831_v26, %v417_v61  ;;  %v457_v12 = vadd.f32 %v831_v26, %v418_v62  ;;  %v458_v13 = vadd.f32 %v831_v26, %v419_v63 }
  0x30   : > { %v459_v14 = vadd.f32 %v831_v26, %v420_v1  ;;  %v460_v15 = vadd.f32 %v831_v26, %v421_v2  ;;  %485 = vst [vmem:[%s840_s7 + $0x80] sm:$0xff] %v453_v5  ;;  %486 = vst [vmem:[%s840_s7 + $0x88] sm:$0xff] %v454_v6  ;;  %v676_v18 = vunpack.c.l.bf16 %v698_v4  ;;  %v677_v19 = vunpack.c.h.bf16 %v698_v4 }
  0x31   : > { %487 = vst [vmem:[%s840_s7 + $0x90] sm:$0xff] %v455_v7  ;;  %488 = vst [vmem:[%s840_s7 + $0x98] sm:$0xff] %v456_v8  ;;  %v680_v20 = vunpack.c.l.bf16 %v699_v10  ;;  %v681_v21 = vunpack.c.h.bf16 %v699_v10  ;;  %v684_v22 = vunpack.c.l.bf16 %v700_v11  ;;  %v685_v23 = vunpack.c.h.bf16 %v700_v11 }
  0x32   : > { %489 = vst [vmem:[%s840_s7 + $0xa0] sm:$0xff] %v457_v12  ;;  %490 = vst [vmem:[%s840_s7 + $0xa8] sm:$0xff] %v458_v13  ;;  %v351_v24 = vmul.f32 %v672_v16, %v803_v0  ;;  %v352_v25 = vmul.f32 %v673_v17, %v803_v0  ;;  %v353_v27 = vmul.f32 %v676_v18, %v803_v0 }
  0x33   : > { %491 = vst [vmem:[%s840_s7 + $0xb0] sm:$0xff] %v459_v14  ;;  %492 = vst [vmem:[%s840_s7 + $0xb8] sm:$0xff] %v460_v15  ;;  %v354_v28 = vmul.f32 %v677_v19, %v803_v0  ;;  %v355_v29 = vmul.f32 %v680_v20, %v803_v0  ;;  %v356_v30 = vmul.f32 %v681_v21, %v803_v0 }
  0x34   : > { %v357_v31 = vmul.f32 %v684_v22, %v803_v0  ;;  %v358_v32 = vmul.f32 %v685_v23, %v803_v0  ;;  %v390_v33 = vadd.f32 %v812_v9, %v351_v24  ;;  %v391_v34 = vadd.f32 %v812_v9, %v352_v25 }
  0x35   : > { %v392_v35 = vadd.f32 %v812_v9, %v353_v27  ;;  %v393_v36 = vadd.f32 %v812_v9, %v354_v28  ;;  %v394_v37 = vadd.f32 %v812_v9, %v355_v29  ;;  %v395_v38 = vadd.f32 %v812_v9, %v356_v30 }
  0x36   : > { %v396_v39 = vadd.f32 %v812_v9, %v357_v31  ;;  %v397_v40 = vadd.f32 %v812_v9, %v358_v32  ;;  %v422_v41 = vmax.f32 %v390_v33, 0.0  ;;  %v423_v42 = vmax.f32 %v391_v34, 0.0 }
  0x37   : > { %v424_v0 = vmax.f32 %v392_v35, 0.0  ;;  %v425_v43 = vmax.f32 %v393_v36, 0.0  ;;  %v426_v44 = vmax.f32 %v394_v37, 0.0  ;;  %v427_v45 = vmax.f32 %v395_v38, 0.0 }
  0x38   : > { %v428_v46 = vmax.f32 %v396_v39, 0.0  ;;  %v429_v47 = vmax.f32 %v397_v40, 0.0  ;;  %v461_v48 = vadd.f32 %v831_v26, %v422_v41  ;;  %v462_v9 = vadd.f32 %v831_v26, %v423_v42 }
  0x39   : > { %v463_v49 = vadd.f32 %v831_v26, %v424_v0  ;;  %v464_v50 = vadd.f32 %v831_v26, %v425_v43  ;;  %v465_v51 = vadd.f32 %v831_v26, %v426_v44  ;;  %v466_v52 = vadd.f32 %v831_v26, %v427_v45 }
  0x3a   : > { %v467_v53 = vadd.f32 %v831_v26, %v428_v46  ;;  %v468_v54 = vadd.f32 %v831_v26, %v429_v47  ;;  %493 = vst [vmem:[%s840_s7 + $0xc0] sm:$0xff] %v461_v48  ;;  %494 = vst [vmem:[%s840_s7 + $0xc8] sm:$0xff] %v462_v9 }
  0x3b   : > { %495 = vst [vmem:[%s840_s7 + $0xd0] sm:$0xff] %v463_v49  ;;  %496 = vst [vmem:[%s840_s7 + $0xd8] sm:$0xff] %v464_v50 }
  0x3c   : > { %497 = vst [vmem:[%s840_s7 + $0xe0] sm:$0xff] %v465_v51  ;;  %498 = vst [vmem:[%s840_s7 + $0xe8] sm:$0xff] %v466_v52 }
  0x3d   : > { %499 = vst [vmem:[%s840_s7 + $0xf0] sm:$0xff] %v467_v53  ;;  %500 = vst [vmem:[%s840_s7 + $0xf8] sm:$0xff] %v468_v54 }
  0x3e PF: > { %s14_s17 = sadd.s32 1, %s747_s17   ;;  %s980_s15 = smov %s743_s16 }
  0x3f   : > { %p11_p5 = scmp.ge.s32.totalorder %s14_s17, 4   ;;  %s981_s16 = smov %s983_s18 }
  0x41   :  { %13 = sbr.rel (!%p11_p5) target bundleno = 2 (0x2), region = 69 }

// kernel: double_conv_forward.5
= control target key start
LH: loop header
LB: loop body
LE: loop exit
PB: predicated region body
PF: predicated region fallthrough
CT: control target
= control target key end

     0   :  { %s8447_s18 = smov 0   ;;  %s8449_s19 = smov 0   ;;  %s10289_s0 = inlined_call_operand.vmem [shape: bf16[2,16,16,128], index: 0, kind: input, shape index: {}]   ;;  %s10290_s1 = inlined_call_operand.vmem [shape: f32[1,128], index: 1, kind: input, shape index: {}]   ;;  %s10291_s2 = inlined_call_operand.vmem [shape: f32[1,128], index: 2, kind: input, shape index: {}]   ;;  %s10292_s3 = inlined_call_operand.vmem [shape: bf16[3,3,128,128], index: 3, kind: input, shape index: {}]   ;;  %s10293_s4 = inlined_call_operand.vmem [shape: bf16[2,16,16,128], index: 4, kind: output, shape index: {0}]   ;;  %s10294_s5 = inlined_call_operand.vmem [shape: f32[2,1,2,128], index: 5, kind: output, shape index: {1}]  }
   0x1   :  { %s8451_s20 = smov 0  }
   0x2 LB: > { %s35_s21 = sadd.s32 1, %s8410_s19  ;;  %p6347_p0 = scmp.ge.s32.totalorder %s8414_s20, 1  ;;  %s8414_s20 = sphi %s8451_s20, %s16_s20   ;;  %s8410_s19 = sphi %s8449_s19, %s10368_s19   ;;  %s8406_s18 = sphi %s8447_s18, %s10367_s18  }
   0x3   : > { %p37_p1 = scmp.ge.s32.totalorder %s35_s21, 2  ;;  %p226_p2 = scmp.lt.s32.totalorder %s8414_s20, 3 }
   0x5   : > { %s10370_s21 = smov (%p37_p1, %s35_s21), 0  ;;  %p227_p3 = pnand %p6347_p0, %p226_p2 }
   0x7   : > { %230 = sbr.rel (%p227_p3) target bundleno = 714 (0x2ca), region = 36 }
   0xe   : > { %v8190_v0 = vld [vmem:[%s10292_s3 + $0x40] sm:$0xff]   ;;  %v8416_v2 = vmov 0   ;;  %v8192_v3 = vld [vmem:[%s10292_s3 + $0x48] sm:$0xff]   ;;  %v8194_v5 = vld [vmem:[%s10292_s3 + $0x50] sm:$0xff]   ;;  %p276_p4 = scmp.lt.s32.totalorder %s8406_s18, 1  ;;  %vm962_vm3 = vcmask 1043456  }
   0xf   : > { %v8191_v1 = vld [vmem:[%s10292_s3 + $0x100] sm:$0xff]   ;;  %314 = vst [vmem:[#allocation2] sm:$0xf] %v8416_v2  ;;  %315 = vst [vmem:[#allocation2 + $0x4] sm:$0xf] %v8416_v2  ;;  %7461 = vmatprep.subr.bf16.mxu1 %v8190_v0  ;;  %v8193_v4 = vld [vmem:[%s10292_s3 + $0x108] sm:$0xff]  }
  0x10   : > { %316 = vst [vmem:[#allocation2 + $0x8] sm:$0x1] %v8416_v2  ;;  %317 = vst [vmem:[#allocation2 + $0xc] sm:$0xf] %v8416_v2  ;;  %7653 = vmatprep.subr.bf16.mxu0 %v8191_v1  ;;  %7462 = vmatpush3.bf16.msra.mxu1 %v8190_v0  ;;  %v8195_v6 = vld [vmem:[%s10292_s3 + $0x110] sm:$0xff]   ;;  %v8196_v7 = vld [vmem:[%s10292_s3 + $0x58] sm:$0xff]  }
  0x11   : > { %318 = vst [vmem:[#allocation2 + $0x10] sm:$0xf] %v8416_v2  ;;  %319 = vst [vmem:[#allocation2 + $0x14] sm:$0x1] %v8416_v2  ;;  %7654 = vmatpush3.bf16.msra.mxu0 %v8191_v1  ;;  %7463 = vmatprep.subr.bf16.mxu1 %v8192_v3  ;;  %s10372_s18 = smov (!%p276_p4, %s8406_s18), 1  ;;  %v8197_v8 = vld [vmem:[%s10292_s3 + $0x118] sm:$0xff]  }
  0x12   : > { %320 = vst [vmem:[#allocation2 + $0x18] sm:$0xf] %v8416_v2  ;;  %321 = vst [vmem:[#allocation2 + $0x1c] sm:$0xf] %v8416_v2  ;;  %7655 = vmatprep.subr.bf16.mxu0 %v8193_v4  ;;  %v8198_v9 = vld [vmem:[%s10292_s3 + $0x60] sm:$0xff]   ;;  %s7005_s15 = sshll.u32 %s10372_s18, 7 }
  0x13   : > { %322 = vst [vmem:[#allocation2 + $0x20] sm:$0x1] %v8416_v2  ;;  %323 = vst [vmem:[#allocation2 + $0x24] sm:$0xf] %v8416_v2  ;;  %v8199_v10 = vld [vmem:[%s10292_s3 + $0x120] sm:$0xff]   ;;  %v8200_v11 = vld [vmem:[%s10292_s3 + $0x68] sm:$0xff]   ;;  %s8510_s26 = scalar_lea.vmem %s10289_s0, %s7005_s15 }
  0x14   : > { %324 = vst [vmem:[#allocation2 + $0x28] sm:$0xf] %v8416_v2  ;;  %325 = vst [vmem:[#allocation2 + $0x2c] sm:$0x1] %v8416_v2  ;;  %7464 = vmatpush3.bf16.msra.mxu1 %v8192_v3  ;;  %v8201_v15 = vld [vmem:[%s10292_s3 + $0x128] sm:$0xff]   ;;  %v7072_v21 = vld [vmem:[%s8510_s26] sm:$0xff]  }
  0x15   : > { %326 = vst [vmem:[#allocation2 + $0x30] sm:$0xf] %v8416_v2  ;;  %327 = vst [vmem:[#allocation2 + $0x34] sm:$0xf] %v8416_v2  ;;  %7656 = vmatpush3.bf16.msra.mxu0 %v8193_v4  ;;  %7465 = vmatprep.subr.bf16.mxu1 %v8194_v5  ;;  %vm1147_vm0 = vsmask.f32 3328  ;;  %v7073_v24 = vunpack.c.l.bf16 %v7072_v21  ;;  %v7074_v25 = vunpack.c.h.bf16 %v7072_v21 }
  0x16   : > { %328 = vst [vmem:[#allocation2 + $0x38] sm:$0x1] %v8416_v2  ;;  %329 = vst [vmem:[#allocation2 + $0x3c] sm:$0xf] %v8416_v2  ;;  %7657 = vmatprep.subr.bf16.mxu0 %v8195_v6  ;;  %v1083_v12 = vld [vmem:[#allocation2] sm:$0xf] }
  0x17   : > { %330 = vst [vmem:[#allocation2 + $0x40] sm:$0xf] %v8416_v2  ;;  %331 = vst [vmem:[#allocation2 + $0x44] sm:$0x1] %v8416_v2  ;;  %v1084_v13 = vld [vmem:[#allocation2 + $0x4] sm:$0xf] }
  0x18   : > { %332 = vst [vmem:[#allocation2 + $0x48] sm:$0xf] %v8416_v2  ;;  %333 = vst [vmem:[#allocation2 + $0x4c] sm:$0xf] %v8416_v2  ;;  %7466 = vmatpush3.bf16.msra.mxu1 %v8194_v5  ;;  %v1131_v14 = vld [vmem:[#allocation2 + $0x8] sm:$0x1] }
  0x19   : > { %334 = vst [vmem:[#allocation2 + $0x50] sm:$0x1] %v8416_v2  ;;  %335 = vst [vmem:[#allocation2 + $0x54] sm:$0xf] %v8416_v2  ;;  %7658 = vmatpush3.bf16.msra.mxu0 %v8195_v6  ;;  %7467 = vmatprep.subr.bf16.mxu1 %v8196_v7  ;;  %v1151_v16 = vshrl.u32 %v1083_v12, 16  ;;  %v1154_v17 = vshll.u32 %v1083_v12, 16 }
  0x1a   : > { %336 = vst [vmem:[#allocation2 + $0x58] sm:$0xf] %v8416_v2  ;;  %337 = vst [vmem:[#allocation2 + $0x5c] sm:$0x1] %v8416_v2  ;;  %7659 = vmatprep.subr.bf16.mxu0 %v8197_v8  ;;  %vm1148_vm1 = vsmask.f32 7440 }
  0x1b   : > { %338 = vst [vmem:[#allocation2 + $0x60] sm:$0xf] %v8416_v2  ;;  %339 = vst [vmem:[#allocation2 + $0x64] sm:$0xf] %v8416_v2  ;;  %v1160_v18 = vshll.u32 %v1084_v13, 16  ;;  %v1164_v19 = vshrl.u32 %v1084_v13, 16 }
  0x1c   : > { %340 = vst [vmem:[#allocation2 + $0x68] sm:$0x1] %v8416_v2  ;;  %341 = vst [vmem:[#allocation2 + $0x6c] sm:$0xf] %v8416_v2  ;;  %7468 = vmatpush3.bf16.msra.mxu1 %v8196_v7  ;;  %v1170_v20 = vshll.u32 %v1131_v14, 16  ;;  %v1153_v22 = vrot.slane %v1151_v16, 4 }
  0x1d   : > { %342 = vst [vmem:[#allocation2 + $0x70] sm:$0xf] %v8416_v2  ;;  %343 = vst [vmem:[#allocation2 + $0x74] sm:$0x1] %v8416_v2  ;;  %7660 = vmatpush3.bf16.msra.mxu0 %v8197_v8  ;;  %7469 = vmatprep.subr.bf16.mxu1 %v8198_v9  ;;  %v1156_v23 = vrot.slane %v1154_v17, 5  ;;  %v8202_v27 = vld [vmem:[%s10292_s3 + $0x70] sm:$0xff]  }
  0x1e   : > { %344 = vst [vmem:[#allocation2 + $0x78] sm:$0xf] %v8416_v2  ;;  %345 = vst [vmem:[#allocation2 + $0x7c] sm:$0xf] %v8416_v2  ;;  %7661 = vmatprep.subr.bf16.mxu0 %v8199_v10  ;;  %v8519_v26 = vld [vmem:[%s10290_s1] ss:$0 sm:$0xff] }
  0x1f   : > { %346 = vst [vmem:[#allocation2 + $0x80] sm:$0x1] %v8416_v2  ;;  %347 = vst [vmem:[#allocation2 + $0x84] sm:$0xf] %v8416_v2  ;;  %v1162_v28 = vrot.slane %v1160_v18, 5  ;;  %v1166_v29 = vrot.slane %v1164_v19, 4  ;;  %v1157_v32 = vor.u32 %v1156_v23, %v1153_v22  ;;  %v439_v33 = vmul.f32 %v7073_v24, %v8519_v26 }
  0x20   : > { %348 = vst [vmem:[#allocation2 + $0x88] sm:$0xf] %v8416_v2  ;;  %349 = vst [vmem:[#allocation2 + $0x8c] sm:$0x1] %v8416_v2  ;;  %7470 = vmatpush3.bf16.msra.mxu1 %v8198_v9  ;;  %v8527_v30 = vld [vmem:[%s10291_s2] ss:$0 sm:$0xff]  ;;  %v440_v34 = vmul.f32 %v7074_v25, %v8519_v26 }
  0x21   : > { %350 = vst [vmem:[#allocation2 + $0x90] sm:$0xf] %v8416_v2  ;;  %351 = vst [vmem:[#allocation2 + $0x94] sm:$0xf] %v8416_v2  ;;  %7662 = vmatpush3.bf16.msra.mxu0 %v8199_v10  ;;  %7471 = vmatprep.subr.bf16.mxu1 %v8200_v11  ;;  %v8203_v31 = vld [vmem:[%s10292_s3 + $0x130] sm:$0xff]   ;;  %v1167_v36 = vor.u32 %v1166_v29, %v1162_v28  ;;  %v1172_v37 = vrot.slane %v1170_v20, 5  ;;  %v478_v39 = vadd.f32 %v8527_v30, %v439_v33 }
  0x22   : > { %352 = vst [vmem:[#allocation2 + $0x98] sm:$0x1] %v8416_v2  ;;  %353 = vst [vmem:[#allocation2 + $0x9c] sm:$0xf] %v8416_v2  ;;  %7663 = vmatprep.subr.bf16.mxu0 %v8201_v15  ;;  %v1158_v38 = vrot.slane %v1157_v32, 4  ;;  %v479_v40 = vadd.f32 %v8527_v30, %v440_v34  ;;  %v8204_v41 = vld [vmem:[%s10292_s3 + $0x78] sm:$0xff]  }
  0x23   : > { %354 = vst [vmem:[#allocation2 + $0xa0] sm:$0xf] %v8416_v2  ;;  %355 = vst [vmem:[#allocation2 + $0xa4] sm:$0x1] %v8416_v2  ;;  %v8205_v42 = vld [vmem:[%s10292_s3 + $0x138] sm:$0xff]   ;;  %v1168_v43 = vrot.slane %v1167_v36, 4 }
  0x24   : > { %356 = vst [vmem:[#allocation2 + $0xa8] sm:$0xf] %v8416_v2  ;;  %357 = vst [vmem:[#allocation2 + $0xac] sm:$0xf] %v8416_v2  ;;  %7472 = vmatpush3.bf16.msra.mxu1 %v8200_v11  ;;  %vm969_vm4 = vcmask 1040384   ;;  %v7215_v44 = vld [vmem:[%s8510_s26 + $0x8] sm:$0xff]  }
  0x25   : > { %358 = vst [vmem:[#allocation2 + $0xb0] sm:$0x1] %v8416_v2  ;;  %359 = vst [vmem:[#allocation2 + $0xb4] sm:$0xf] %v8416_v2  ;;  %7664 = vmatpush3.bf16.msra.mxu0 %v8201_v15  ;;  %7473 = vmatprep.subr.bf16.mxu1 %v8202_v27  ;;  %v510_v46 = vmax.f32 %v478_v39, 0.0  ;;  %v511_v47 = vmax.f32 %v479_v40, 0.0  ;;  %v7077_v48 = vunpack.c.l.bf16 %v7215_v44  ;;  %v7078_v50 = vunpack.c.h.bf16 %v7215_v44 }
  0x26   : > { %360 = vst [vmem:[#allocation2 + $0xb8] sm:$0xf] %v8416_v2  ;;  %361 = vst [vmem:[#allocation2 + $0xbc] sm:$0x1] %v8416_v2  ;;  %7665 = vmatprep.subr.bf16.mxu0 %v8203_v31  ;;  %vm638_vm5 = vsmask.f32 256 }
  0x27   : > { %362 = vst [vmem:[#allocation2 + $0xc0] sm:$0xf] %v8416_v2  ;;  %363 = vst [vmem:[#allocation2 + $0xc4] sm:$0xf] %v8416_v2  ;;  %vm639_vm6 = vsmask.f32 4368  ;;  %v7007_v53 = vpack.c.bf16 %v510_v46, %v510_v46  ;;  %v7008_v54 = vpack.c.bf16 %v511_v47, %v511_v47  ;;  %v441_v56 = vmul.f32 %v7077_v48, %v8519_v26 }
  0x28   : > { %364 = vst [vmem:[#allocation2 + $0xc8] sm:$0x1] %v8416_v2  ;;  %365 = vst [vmem:[#allocation2 + $0xcc] sm:$0xf] %v8416_v2  ;;  %v7216_v51 = vld [vmem:[%s8510_s26 + $0x10] sm:$0xff]   ;;  %7474 = vmatpush3.bf16.msra.mxu1 %v8202_v27  ;;  %v8557_v55 = vld [vmem:[%s10292_s3] sm:$0xff]   ;;  %v442_v57 = vmul.f32 %v7078_v50, %v8519_v26 }
  0x29   : > { %366 = vst [vmem:[#allocation2 + $0xd0] sm:$0xf] %v8416_v2  ;;  %367 = vst [vmem:[#allocation2 + $0xd4] sm:$0x1] %v8416_v2  ;;  %7666 = vmatpush3.bf16.msra.mxu0 %v8203_v31  ;;  %7475 = vmatprep.subr.bf16.mxu1 %v8204_v41  ;;  %vm963_vm7 = vsmask.f32 7938  ;;  %v7081_v58 = vunpack.c.l.bf16 %v7216_v51  ;;  %v7082_v59 = vunpack.c.h.bf16 %v7216_v51  ;;  %v480_v3 = vadd.f32 %v8527_v30, %v441_v56 }
  0x2a   : > { %vm8536_vm2 = vmor %vm1147_vm0, %vm1148_vm1  ;;  %7667 = vmatprep.subr.bf16.mxu0 %v8205_v42  ;;  %v642_v60 = vshrl.u32 %v7007_v53, 16  ;;  %v645_v61 = vshll.u32 %v7007_v53, 16  ;;  %v650_v62 = vshrl.u32 %v7008_v54, 16  ;;  %v653_v63 = vshll.u32 %v7008_v54, 16  ;;  %v8564_v0 = vld [vmem:[%s10292_s3 + $0x140] sm:$0xff]   ;;  %v7217_v1 = vld [vmem:[%s8510_s26 + $0x18] sm:$0xff]  }
  0x2b   : > { %v1163_v45 = vsel %vm8536_vm2, %v1158_v38, %v1162_v28  ;;  %v1173_v49 = vsel %vm8536_vm2, %v1168_v43, %v1172_v37  ;;  %vm8569_vm8 = vmand %vm969_vm4, %vm638_vm5  ;;  %v481_v4 = vadd.f32 %v8527_v30, %v442_v57  ;;  %v443_v5 = vmul.f32 %v7081_v58, %v8519_v26  ;;  %v965_v13 = vld [vmem:[#allocation2 + $0xc] sm:$0xf]  ;;  %v971_v14 = vld [vmem:[#allocation2 + $0x14] sm:$0x1] }
  0x2c   : > { %v6403_v52 = vcombine.low %v1163_v45, %v1173_v49  ;;  %v444_v6 = vmul.f32 %v7082_v59, %v8519_v26  ;;  %7476 = vmatpush3.bf16.msra.mxu1 %v8204_v41  ;;  %vm8579_vm9 = vmor %vm638_vm5, %vm639_vm6  ;;  %v644_v8 = vrot.slane %v642_v60, 7  ;;  %v652_v9 = vrot.slane %v650_v62, 7  ;;  %v7218_v33 = vld [vmem:[%s8510_s26 + $0x20] sm:$0xff]   ;;  %v974_v44 = vld [vmem:[#allocation2 + $0x18] sm:$0xf] }
  0x2d   : > { %v7085_v10 = vunpack.c.l.bf16 %v7217_v1  ;;  %v7086_v11 = vunpack.c.h.bf16 %v7217_v1  ;;  %7668 = vmatpush3.bf16.msra.mxu0 %v8205_v42  ;;  %vm8585_vm10 = vmand %vm962_vm3, %vm963_vm7  ;;  %7509 = vmatprep.subr.bf16.mxu1 %v8557_v55  ;;  %v512_v15 = vmax.f32 %v480_v3, 0.0  ;;  %v513_v16 = vmax.f32 %v481_v4, 0.0  ;;  %v978_v47 = vld [vmem:[#allocation2 + $0x20] sm:$0x1]  ;;  %v981_v1 = vld [vmem:[#allocation2 + $0x24] sm:$0xf] }
  0x2e   : > { %7477 = vmatprep.mubr.bf16.mxu1 %v6403_v52  ;;  %v482_v17 = vadd.f32 %v8527_v30, %v443_v5  ;;  %v483_v18 = vadd.f32 %v8527_v30, %v444_v6  ;;  %v647_v19 = vor.u32 %v645_v61, %v644_v8  ;;  %v648_v20 = vrot.slane %v644_v8, 4  ;;  %7701 = vmatprep.subr.bf16.mxu0 %v8564_v0  ;;  %v8250_v2 = vld [vmem:[%s10292_s3 + $0xa8] sm:$0xff]  }
  0x2f   : > { %v655_v21 = vor.u32 %v653_v63, %v652_v9  ;;  %v657_v22 = vrot.slane %v652_v9, 4  ;;  %v7009_v23 = vpack.c.bf16 %v512_v15, %v512_v15  ;;  %v7010_v24 = vpack.c.bf16 %v513_v16, %v513_v16 }
  0x30   : > { %v514_v25 = vmax.f32 %v482_v17, 0.0  ;;  %v515_v27 = vmax.f32 %v483_v18, 0.0  ;;  %v966_v29 = vsel %vm8585_vm10, %v647_v19, %v965_v13  ;;  %v445_v32 = vmul.f32 %v7085_v10, %v8519_v26 }
  0x31   : > { %v656_v28 = vsel %vm8579_vm9, %v648_v20, %v655_v21  ;;  %v972_v31 = vsel %vm8569_vm8, %v657_v22, %v971_v14  ;;  %967 = vst [vmem:[#allocation2 + $0xc] sm:$0xf] %v966_v29  ;;  %v659_v34 = vshrl.u32 %v7009_v23, 16  ;;  %v662_v36 = vshll.u32 %v7009_v23, 16 }
  0x32   : > { %968 = vst [vmem:[#allocation2 + $0x10] sm:$0xf] %v656_v28  ;;  %973 = vst [vmem:[#allocation2 + $0x14] sm:$0x1] %v972_v31  ;;  %v667_v37 = vshrl.u32 %v7010_v24, 16  ;;  %v670_v38 = vshll.u32 %v7010_v24, 16  ;;  %v7011_v39 = vpack.c.bf16 %v514_v25, %v514_v25  ;;  %v7012_v40 = vpack.c.bf16 %v515_v27, %v515_v27 }
  0x33   : > { %v484_v41 = vadd.f32 %v8527_v30, %v445_v32  ;;  %v661_v42 = vrot.slane %v659_v34, 7  ;;  %v446_v45 = vmul.f32 %v7086_v11, %v8519_v26  ;;  %v7089_v46 = vunpack.c.l.bf16 %v7218_v33 }
  0x34   : > { %v669_v43 = vrot.slane %v667_v37, 7  ;;  %v676_v48 = vshrl.u32 %v7011_v39, 16  ;;  %v679_v49 = vshll.u32 %v7011_v39, 16  ;;  %v684_v50 = vshrl.u32 %v7012_v40, 16 }
  0x35   : > { %v687_v51 = vshll.u32 %v7012_v40, 16  ;;  %v664_v52 = vor.u32 %v662_v36, %v661_v42  ;;  %v665_v53 = vrot.slane %v661_v42, 4  ;;  %v516_v59 = vmax.f32 %v484_v41, 0.0 }
  0x36   : > { %v672_v54 = vor.u32 %v670_v38, %v669_v43  ;;  %v674_v56 = vrot.slane %v669_v43, 4  ;;  %v8603_v57 = vrot.slane %v676_v48, 7  ;;  %v8605_v58 = vrot.slane %v684_v50, 7 }
  0x37   : > { %v7090_v60 = vunpack.c.h.bf16 %v7218_v33  ;;  %v975_v62 = vsel %vm8585_vm10, %v664_v52, %v974_v44  ;;  %v447_v3 = vmul.f32 %v7089_v46, %v8519_v26  ;;  %v8619_v10 = vadd.f32 %v8527_v30, %v446_v45 }
  0x38   : > { %v673_v61 = vsel %vm8579_vm9, %v665_v53, %v672_v54  ;;  %v979_v63 = vsel %vm8569_vm8, %v674_v56, %v978_v47  ;;  %v1085_v4 = vld [vmem:[#allocation2 + $0xc] sm:$0xf]  ;;  %976 = vst [vmem:[#allocation2 + $0x18] sm:$0xf] %v975_v62  ;;  %v681_v8 = vor.u32 %v679_v49, %v8603_v57  ;;  %v8616_v9 = vor.u32 %v687_v51, %v8605_v58 }
  0x39   : > { %v1086_v5 = vld [vmem:[#allocation2 + $0x10] sm:$0xf]  ;;  %v1132_v6 = vld [vmem:[#allocation2 + $0x14] sm:$0x1]  ;;  %977 = vst [vmem:[#allocation2 + $0x1c] sm:$0xf] %v673_v61  ;;  %v8621_v11 = vpack.c.bf16 %v516_v59, %v516_v59  ;;  %v448_v22 = vmul.f32 %v7090_v60, %v8519_v26  ;;  %v8629_v23 = vadd.f32 %v8527_v30, %v447_v3 }
  0x3a   : > { %980 = vst [vmem:[#allocation2 + $0x20] sm:$0x1] %v979_v63  ;;  %v1175_v13 = vshrl.u32 %v1085_v4, 16  ;;  %v1178_v14 = vshll.u32 %v1085_v4, 16  ;;  %v1184_v15 = vshll.u32 %v1086_v5, 16  ;;  %v1188_v16 = vshrl.u32 %v1086_v5, 16 }
  0x3b   : > { %v6579_v17 = vld [vmem:[#allocation2 + $0xc] sm:$0xf]  ;;  %v1194_v18 = vshll.u32 %v1132_v6, 16  ;;  %v6580_v19 = vld [vmem:[#allocation2 + $0x10] sm:$0xf]  ;;  %v982_v21 = vsel %vm8585_vm10, %v681_v8, %v981_v1  ;;  %v8638_v53 = vadd.f32 %v8527_v30, %v448_v22  ;;  %vm2177_vm11 = vcmask 1042432  }
  0x3c   : > { %v8623_v20 = vld [vmem:[#allocation2 + $0x14] sm:$0x1]  ;;  %v1177_v24 = vrot.slane %v1175_v13, 4  ;;  %v1180_v25 = vrot.slane %v1178_v14, 5  ;;  %v1186_v27 = vrot.slane %v1184_v15, 5  ;;  %v1190_v28 = vrot.slane %v1188_v16, 4 }
  0x3d   : > { %983 = vst [vmem:[#allocation2 + $0x24] sm:$0xf] %v982_v21  ;;  %v1196_v29 = vrot.slane %v1194_v18, 5  ;;  %v3053_v31 = vshrl.u32 %v6579_v17, 16  ;;  %v3056_v32 = vshll.u32 %v6579_v17, 16  ;;  %v3062_v33 = vshll.u32 %v6580_v19, 16 }
  0x3e   : > { %v1181_v34 = vor.u32 %v1180_v25, %v1177_v24  ;;  %v1191_v36 = vor.u32 %v1190_v28, %v1186_v27  ;;  %v3066_v37 = vshrl.u32 %v6580_v19, 16  ;;  %v3072_v38 = vshll.u32 %v8623_v20, 16  ;;  %v8209_v4 = vld [vmem:[%s10292_s3 + $0x8] sm:$0xff]  }
  0x3f   : > { %v3055_v39 = vrot.slane %v3053_v31, 4  ;;  %v3058_v40 = vrot.slane %v3056_v32, 5  ;;  %v3064_v41 = vrot.slane %v3062_v33, 5  ;;  %v3827_v42 = vrot.slane %v8623_v20, 5  ;;  %v6582_v47 = vld [vmem:[#allocation2 + $0x18] sm:$0xf] }
  0x40   : > { %v1182_v43 = vrot.slane %v1181_v34, 4  ;;  %v1192_v44 = vrot.slane %v1191_v36, 4  ;;  %v3068_v45 = vrot.slane %v3066_v37, 4  ;;  %v3074_v46 = vrot.slane %v3072_v38, 5  ;;  %v8633_v49 = vld [vmem:[#allocation2 + $0x1c] sm:$0xf] }
  0x41   : > { %v3059_v48 = vor.u32 %v3058_v40, %v3055_v39  ;;  %v8635_v50 = vld [vmem:[#allocation2 + $0x20] sm:$0x1]  ;;  %v3077_v51 = vshrl.u32 %v6582_v47, 16  ;;  %v3080_v52 = vshll.u32 %v6582_v47, 16  ;;  %v3086_v60 = vshll.u32 %v8633_v49, 16  ;;  %v8212_v34 = vld [vmem:[%s10292_s3 + $0x10] sm:$0xff]  }
  0x42   : > { %v1187_v54 = vsel %vm8536_vm2, %v1182_v43, %v1186_v27  ;;  %v1197_v56 = vsel %vm8536_vm2, %v1192_v44, %v1196_v29  ;;  %v3069_v59 = vor.u32 %v3068_v45, %v3064_v41  ;;  %v1087_v3 = vld [vmem:[#allocation2 + $0x18] sm:$0xf]  ;;  %v3090_v8 = vshrl.u32 %v8633_v49, 16  ;;  %v1088_v18 = vld [vmem:[#allocation2 + $0x1c] sm:$0xf] }
  0x43   : > { %v6404_v61 = vcombine.low %v1187_v54, %v1197_v56  ;;  %v3060_v62 = vrot.slane %v3059_v48, 4  ;;  %v3079_v63 = vrot.slane %v3077_v51, 4  ;;  %v3082_v1 = vrot.slane %v3080_v52, 5  ;;  %v1133_v19 = vld [vmem:[#allocation2 + $0x20] sm:$0x1] }
  0x44   : > { %v3070_v5 = vrot.slane %v3069_v59, 4  ;;  %v3088_v6 = vrot.slane %v3086_v60, 5  ;;  %v3096_v13 = vshll.u32 %v8635_v50, 16  ;;  %v3831_v16 = vrot.slane %v8633_v49, 5  ;;  %v1089_v27 = vld [vmem:[#allocation2 + $0x24] sm:$0xf] }
  0x45   : > { %7478 = vmatmul.mubr.bf16.vlgmr.msra.gmra.mrb[0].mxu1 %v6404_v61  ;;  %v3065_v14 = vsel %vm8536_vm2, %v3060_v62, %v3064_v41  ;;  %v3083_v15 = vor.u32 %v3082_v1, %v3079_v63  ;;  %v3834_v17 = vrot.slane %v8635_v50, 5  ;;  %v3092_v22 = vrot.slane %v3090_v8, 4  ;;  %v985_v33 = vld [vmem:[#allocation2 + $0x2c] sm:$0x1]  ;;  %v6585_v39 = vld [vmem:[#allocation2 + $0x24] sm:$0xf] }
  0x46   : > { %v3075_v21 = vsel %vm8536_vm2, %v3070_v5, %v3074_v46  ;;  %7510 = vmatpush3.bf16.msra.mxu1 %v8557_v55  ;;  %v3098_v24 = vrot.slane %v3096_v13, 5  ;;  %v1199_v25 = vshrl.u32 %v1087_v3, 16  ;;  %v8659_v31 = vrot.slane %v3831_v16, 4  ;;  %v8215_v59 = vld [vmem:[%s10292_s3 + $0x18] sm:$0xff]   ;;  %v1027_v49 = vld [vmem:[#allocation2 + $0x74] sm:$0x1] }
  0x47   : > { %v6643_v28 = vcombine.low %v3065_v14, %v3075_v21  ;;  %v3084_v29 = vrot.slane %v3083_v15, 4  ;;  %v1202_v32 = vshll.u32 %v1087_v3, 16  ;;  %7511 = vmatprep.subr.bf16.mxu1 %v8209_v4  ;;  %v3093_v36 = vor.u32 %v3092_v22, %v3088_v6 }
  0x48   : > { %v1201_v37 = vrot.slane %v1199_v25, 4  ;;  %v1208_v55 = vshll.u32 %v1088_v18, 16  ;;  %v1212_v38 = vshrl.u32 %v1088_v18, 16  ;;  %v1218_v43 = vshll.u32 %v1133_v19, 16  ;;  %v8218_v19 = vld [vmem:[%s10292_s3 + $0x20] sm:$0xff]  }
  0x49   : > { %7669 = vmatprep.mubr.bf16.mxu0 %v6643_v28  ;;  %v3089_v40 = vsel %vm8536_vm2, %v3084_v29, %v3088_v6  ;;  %v1204_v41 = vrot.slane %v1202_v32, 5  ;;  %v682_v44 = vrot.slane %v8603_v57, 4  ;;  %v3094_v45 = vrot.slane %v3093_v36, 4  ;;  %v8698_v32 = vld [vmem:[%s8510_s26 + $0x28] sm:$0xff]  }
  0x4a   : > { %v1210_v46 = vrot.slane %v1208_v55, 5  ;;  %v1214_v47 = vrot.slane %v1212_v38, 4  ;;  %v691_v48 = vrot.slane %v8605_v58, 4  ;;  %7512 = vmatpush3.bf16.msra.mxu1 %v8209_v4  ;;  %v1220_v52 = vrot.slane %v1218_v43, 5 }
  0x4b   : > { %v1205_v51 = vor.u32 %v1204_v41, %v1201_v37  ;;  %v690_v54 = vsel %vm8579_vm9, %v682_v44, %v8616_v9  ;;  %v1223_v56 = vshrl.u32 %v1089_v27, 16  ;;  %7513 = vmatprep.subr.bf16.mxu1 %v8212_v34  ;;  %v3099_v57 = vsel %vm8536_vm2, %v3094_v45, %v3098_v24  ;;  %v8208_v9 = vld [vmem:[%s10292_s3 + $0x148] sm:$0xff]   ;;  %v8210_v24 = vld [vmem:[%s10292_s3 + $0x150] sm:$0xff]  }
  0x4c   : > { %v1215_v60 = vor.u32 %v1214_v47, %v1210_v46  ;;  %984 = vst [vmem:[#allocation2 + $0x28] sm:$0xf] %v690_v54  ;;  %v986_v58 = vsel %vm8569_vm8, %v691_v48, %v985_v33  ;;  %v1226_v61 = vshll.u32 %v1089_v27, 16  ;;  %v6644_v62 = vcombine.low %v3089_v40, %v3099_v57  ;;  %v988_v37 = vld [vmem:[#allocation2 + $0x30] sm:$0xf] }
  0x4d   : > { %v1206_v63 = vrot.slane %v1205_v51, 4  ;;  %987 = vst [vmem:[#allocation2 + $0x2c] sm:$0x1] %v986_v58  ;;  %v1225_v1 = vrot.slane %v1223_v56, 4  ;;  %v3101_v3 = vshrl.u32 %v6585_v39, 16  ;;  %v3104_v6 = vshll.u32 %v6585_v39, 16 }
  0x4e   : > { %v1216_v4 = vrot.slane %v1215_v60, 4  ;;  %v1228_v5 = vrot.slane %v1226_v61, 5  ;;  %v517_v8 = vmax.f32 %v8619_v10, 0.0  ;;  %7514 = vmatpush3.bf16.msra.mxu1 %v8212_v34  ;;  %7670 = vmatmul.mubr.bf16.vlgmr.msra.gmra.mrb[0].mxu0 %v6644_v62  ;;  %v693_v15 = vshrl.u32 %v8621_v11, 16 }
  0x4f   : > { %v1211_v13 = vsel %vm8536_vm2, %v1206_v63, %v1210_v46  ;;  %v3103_v14 = vrot.slane %v3101_v3, 4  ;;  %v696_v18 = vshll.u32 %v8621_v11, 16  ;;  %7515 = vmatprep.subr.bf16.mxu1 %v8215_v59  ;;  %7702 = vmatpush3.bf16.msra.mxu0 %v8564_v0  ;;  %v3106_v22 = vrot.slane %v3104_v6, 5  ;;  %v992_v3 = vld [vmem:[#allocation2 + $0x38] sm:$0x1] }
  0x50   : > { %v1221_v10 = vsel %vm8536_vm2, %v1216_v4, %v1220_v52  ;;  %v1229_v21 = vor.u32 %v1228_v5, %v1225_v1  ;;  %v7014_v25 = vpack.c.bf16 %v517_v8, %v517_v8  ;;  %7703 = vmatprep.subr.bf16.mxu0 %v8208_v9  ;;  %v695_v11 = vrot.slane %v693_v15, 7 }
  0x51   : > { %v6405_v27 = vcombine.low %v1211_v13, %v1221_v10  ;;  %v518_v28 = vmax.f32 %v8629_v23, 0.0  ;;  %v519_v29 = vmax.f32 %v8638_v53, 0.0  ;;  %v3107_v33 = vor.u32 %v3106_v22, %v3103_v14  ;;  %v8220_v23 = vld [vmem:[%s10292_s3 + $0x28] sm:$0xff]   ;;  %v8213_v13 = vld [vmem:[%s10292_s3 + $0x160] sm:$0xff]  }
  0x52   : > { %v8700_v0 = vrot.slane %v1229_v21, 4  ;;  %v701_v34 = vshrl.u32 %v7014_v25, 16  ;;  %v704_v36 = vshll.u32 %v7014_v25, 16  ;;  %7516 = vmatpush3.bf16.msra.mxu1 %v8215_v59  ;;  %v698_v39 = vor.u32 %v696_v18, %v695_v11  ;;  %v8211_v59 = vld [vmem:[%s10292_s3 + $0x158] sm:$0xff]  }
  0x53   : > { %7481 = vmatprep.mubr.bf16.mxu1 %v6405_v27  ;;  %v1090_v55 = vld [vmem:[#allocation2 + $0x28] sm:$0xf]  ;;  %v699_v40 = vrot.slane %v695_v11, 4  ;;  %v7015_v41 = vpack.c.bf16 %v518_v28, %v518_v28  ;;  %v8702_v43 = vpack.c.bf16 %v519_v29, %v519_v29  ;;  %7517 = vmatprep.subr.bf16.mxu1 %v8218_v19  ;;  %v7093_v47 = vunpack.c.l.bf16 %v8698_v32 }
  0x54   : > { %v6586_v38 = vld [vmem:[#allocation2 + $0x28] sm:$0xf]  ;;  %7704 = vmatpush3.bf16.msra.mxu0 %v8208_v9  ;;  %v1134_v53 = vld [vmem:[#allocation2 + $0x2c] sm:$0x1]  ;;  %v1232_v44 = vshll.u32 %v1090_v55, 16  ;;  %v1236_v45 = vshrl.u32 %v1090_v55, 16  ;;  %v7094_v48 = vunpack.c.h.bf16 %v8698_v32  ;;  %v989_v1 = vsel %vm8585_vm10, %v698_v39, %v988_v37 }
  0x55   : > { %v6587_v46 = vld [vmem:[#allocation2 + $0x2c] sm:$0x1]  ;;  %v1242_v51 = vshll.u32 %v1134_v53, 16  ;;  %v3108_v52 = vrot.slane %v3107_v33, 4  ;;  %v3110_v54 = vshll.u32 %v6586_v38, 16  ;;  %v3114_v56 = vshrl.u32 %v6586_v38, 16  ;;  %7705 = vmatprep.subr.bf16.mxu0 %v8210_v24 }
  0x56   : > { %v1234_v57 = vrot.slane %v1232_v44, 5  ;;  %v1238_v60 = vrot.slane %v1236_v45, 4  ;;  %v3120_v58 = vshll.u32 %v6587_v46, 16  ;;  %v703_v61 = vrot.slane %v701_v34, 7  ;;  %7518 = vmatpush3.bf16.msra.mxu1 %v8218_v19  ;;  %990 = vst [vmem:[#allocation2 + $0x30] sm:$0xf] %v989_v1 }
  0x57   : > { %v1244_v62 = vrot.slane %v1242_v51, 5  ;;  %v3112_v9 = vrot.slane %v3110_v54, 5  ;;  %v3116_v63 = vrot.slane %v3114_v56, 4  ;;  %7519 = vmatprep.subr.bf16.mxu1 %v8220_v23  ;;  %v710_v19 = vshrl.u32 %v7015_v41, 16 }
  0x58   : > { %v1235_v4 = vsel %vm8536_vm2, %v8700_v0, %v1234_v57  ;;  %v1239_v5 = vor.u32 %v1238_v60, %v1234_v57  ;;  %v3122_v6 = vrot.slane %v3120_v58, 5  ;;  %v706_v8 = vor.u32 %v704_v36, %v703_v61  ;;  %7706 = vmatpush3.bf16.msra.mxu0 %v8210_v24  ;;  %v995_v24 = vld [vmem:[#allocation2 + $0x3c] sm:$0xf]  ;;  %v7220_v36 = vld [vmem:[%s8510_s26 + $0x30] sm:$0xff]  }
  0x59   : > { %v3113_v14 = vsel %vm8536_vm2, %v3108_v52, %v3112_v9  ;;  %v3117_v15 = vor.u32 %v3116_v63, %v3112_v9  ;;  %v708_v18 = vrot.slane %v703_v61, 4  ;;  %7707 = vmatprep.subr.bf16.mxu0 %v8211_v59  ;;  %v713_v22 = vshll.u32 %v7015_v41, 16  ;;  %v8214_v41 = vld [vmem:[%s10292_s3 + $0x168] sm:$0xff]   ;;  %v8216_v9 = vld [vmem:[%s10292_s3 + $0x170] sm:$0xff]  }
  0x5a   : > { %v1240_v10 = vrot.slane %v1239_v5, 4  ;;  %v707_v21 = vsel %vm8579_vm9, %v699_v40, %v706_v8  ;;  %v718_v25 = vshrl.u32 %v8702_v43, 16  ;;  %7520 = vmatpush3.bf16.msra.mxu1 %v8220_v23  ;;  %v712_v28 = vrot.slane %v710_v19, 7  ;;  %v999_v40 = vld [vmem:[#allocation2 + $0x44] sm:$0x1] }
  0x5b   : > { %v3118_v27 = vrot.slane %v3117_v15, 4  ;;  %991 = vst [vmem:[#allocation2 + $0x34] sm:$0xf] %v707_v21  ;;  %v993_v11 = vsel %vm8569_vm8, %v708_v18, %v992_v3  ;;  %v721_v29 = vshll.u32 %v8702_v43, 16  ;;  %v449_v33 = vmul.f32 %v7093_v47, %v8519_v26 }
  0x5c   : > { %v1245_v32 = vsel %vm8536_vm2, %v1240_v10, %v1244_v62  ;;  %994 = vst [vmem:[#allocation2 + $0x38] sm:$0x1] %v993_v11  ;;  %7708 = vmatpush3.bf16.msra.mxu0 %v8211_v59  ;;  %v720_v0 = vrot.slane %v718_v25, 7  ;;  %v450_v34 = vmul.f32 %v7094_v48, %v8519_v26  ;;  %v715_v38 = vor.u32 %v713_v22, %v712_v28 }
  0x5d   : > { %v6406_v37 = vcombine.low %v1235_v4, %v1245_v32  ;;  %v3123_v55 = vsel %vm8536_vm2, %v3118_v27, %v3122_v6  ;;  %v716_v39 = vrot.slane %v712_v28, 4  ;;  %7709 = vmatprep.subr.bf16.mxu0 %v8213_v13  ;;  %v488_v44 = vadd.f32 %v8527_v30, %v449_v33  ;;  %v6588_v45 = vld [vmem:[#allocation2 + $0x30] sm:$0xf] }
  0x5e   : > { %v6645_v43 = vcombine.low %v3113_v14, %v3123_v55  ;;  %v723_v23 = vor.u32 %v721_v29, %v720_v0  ;;  %v725_v53 = vrot.slane %v720_v0, 4  ;;  %v1091_v46 = vld [vmem:[#allocation2 + $0x30] sm:$0xf]  ;;  %v996_v47 = vsel %vm8585_vm10, %v715_v38, %v995_v24  ;;  %v8217_v29 = vld [vmem:[%s10292_s3 + $0x178] sm:$0xff]  }
  0x5f   : > { %7482 = vmatmul.mubr.bf16.gmra.mrb[4].mxu1 %v6406_v37  ;;  %v489_v48 = vadd.f32 %v8527_v30, %v450_v34  ;;  %v7097_v51 = vunpack.c.l.bf16 %v7220_v36  ;;  %v7098_v52 = vunpack.c.h.bf16 %v7220_v36  ;;  %v3125_v54 = vshrl.u32 %v6588_v45, 16  ;;  %997 = vst [vmem:[#allocation2 + $0x3c] sm:$0xf] %v996_v47 }
  0x60   : > { %7673 = vmatprep.mubr.bf16.mxu0 %v6645_v43  ;;  %v3128_v56 = vshll.u32 %v6588_v45, 16  ;;  %v1247_v59 = vshrl.u32 %v1091_v46, 16  ;;  %v1250_v57 = vshll.u32 %v1091_v46, 16  ;;  %7710 = vmatpush3.bf16.msra.mxu0 %v8213_v13  ;;  %v724_v60 = vsel %vm8579_vm9, %v716_v39, %v723_v23 }
  0x61   : > { %v1000_v58 = vsel %vm8569_vm8, %v725_v53, %v999_v40  ;;  %v520_v61 = vmax.f32 %v488_v44, 0.0  ;;  %v521_v62 = vmax.f32 %v489_v48, 0.0  ;;  %7711 = vmatprep.subr.bf16.mxu0 %v8214_v41  ;;  %v3127_v1 = vrot.slane %v3125_v54, 4  ;;  %998 = vst [vmem:[#allocation2 + $0x40] sm:$0xf] %v724_v60  ;;  %v8776_v44 = vld [vmem:[%s10292_s3 + $0x180] sm:$0xff]  }
  0x62   : > { %v8749_v63 = vld [vmem:[#allocation2 + $0x34] sm:$0xf]  ;;  %v3130_v3 = vrot.slane %v3128_v56, 5  ;;  %1001 = vst [vmem:[#allocation2 + $0x44] sm:$0x1] %v1000_v58  ;;  %v451_v5 = vmul.f32 %v7097_v51, %v8519_v26  ;;  %v452_v6 = vmul.f32 %v7098_v52, %v8519_v26  ;;  %v1249_v22 = vrot.slane %v1247_v59, 4 }
  0x63   : > { %v1092_v4 = vld [vmem:[#allocation2 + $0x34] sm:$0xf]  ;;  %v8753_v8 = vld [vmem:[#allocation2 + $0x38] sm:$0x1]  ;;  %v3134_v13 = vshll.u32 %v8749_v63, 16  ;;  %v3138_v14 = vshrl.u32 %v8749_v63, 16  ;;  %v8757_v18 = vpack.c.bf16 %v520_v61, %v520_v61  ;;  %v8759_v19 = vpack.c.bf16 %v521_v62, %v521_v62 }
  0x64   : > { %v1135_v15 = vld [vmem:[#allocation2 + $0x38] sm:$0x1]  ;;  %v3131_v10 = vor.u32 %v3130_v3, %v3127_v1  ;;  %v3144_v21 = vshll.u32 %v8753_v8, 16  ;;  %v1252_v25 = vrot.slane %v1250_v57, 5  ;;  %7712 = vmatpush3.bf16.msra.mxu0 %v8214_v41  ;;  %v8222_v26 = vld [vmem:[%s10292_s3 + $0x30] sm:$0xff]   ;;  %v1256_v11 = vshll.u32 %v1092_v4, 16 }
  0x65   : > { %v3136_v24 = vrot.slane %v3134_v13, 5  ;;  %v3140_v27 = vrot.slane %v3138_v14, 4  ;;  %v1260_v28 = vshrl.u32 %v1092_v4, 16  ;;  %7713 = vmatprep.subr.bf16.mxu0 %v8216_v9  ;;  %v1266_v34 = vshll.u32 %v1135_v15, 16  ;;  %7521 = vmatprep.subr.bf16.mxu1 %v8222_v26 }
  0x66   : > { %v3132_v32 = vrot.slane %v3131_v10, 4  ;;  %v3146_v0 = vrot.slane %v3144_v21, 5  ;;  %v1253_v33 = vor.u32 %v1252_v25, %v1249_v22  ;;  %v1258_v37 = vrot.slane %v1256_v11, 5  ;;  %v1093_v38 = vld [vmem:[#allocation2 + $0x3c] sm:$0xf]  ;;  %7522 = vmatpush3.bf16.msra.mxu1 %v8222_v26 }
  0x67   : > { %v3141_v36 = vor.u32 %v3140_v27, %v3136_v24  ;;  %v1262_v55 = vrot.slane %v1260_v28, 4  ;;  %v8769_v39 = vadd.f32 %v8527_v30, %v451_v5  ;;  %v1268_v43 = vrot.slane %v1266_v34, 5  ;;  %v6591_v53 = vld [vmem:[#allocation2 + $0x3c] sm:$0xf] }
  0x68   : > { %v3137_v40 = vsel %vm8536_vm2, %v3132_v32, %v3136_v24  ;;  %v1254_v41 = vrot.slane %v1253_v33, 4  ;;  %v1271_v23 = vshrl.u32 %v1093_v38, 16  ;;  %7714 = vmatpush3.bf16.msra.mxu0 %v8216_v9  ;;  %v1094_v47 = vld [vmem:[#allocation2 + $0x40] sm:$0xf]  ;;  %v1274_v51 = vshll.u32 %v1093_v38, 16 }
  0x69   : > { %v3142_v45 = vrot.slane %v3141_v36, 4  ;;  %v1263_v46 = vor.u32 %v1262_v55, %v1258_v37  ;;  %v1136_v48 = vld [vmem:[#allocation2 + $0x44] sm:$0x1]  ;;  %v8779_v52 = vadd.f32 %v8527_v30, %v452_v6  ;;  %7715 = vmatprep.subr.bf16.mxu0 %v8217_v29  ;;  %v1280_v59 = vshll.u32 %v1094_v47, 16  ;;  %v8785_v9 = vld [vmem:[#allocation2 + $0x40] sm:$0xf] }
  0x6a   : > { %v1259_v54 = vsel %vm8536_vm2, %v1254_v41, %v1258_v37  ;;  %v1273_v56 = vrot.slane %v1271_v23, 4  ;;  %v1284_v57 = vshrl.u32 %v1094_v47, 16  ;;  %v1276_v61 = vrot.slane %v1274_v51, 5  ;;  %v8787_v30 = vld [vmem:[#allocation2 + $0x44] sm:$0x1]  ;;  %v7221_v23 = vld [vmem:[%s8510_s26 + $0x38] sm:$0xff]  }
  0x6b   : > { %v3147_v60 = vsel %vm8536_vm2, %v3142_v45, %v3146_v0  ;;  %v1264_v58 = vrot.slane %v1263_v46, 4  ;;  %v1290_v62 = vshll.u32 %v1136_v48, 16  ;;  %v1282_v3 = vrot.slane %v1280_v59, 5  ;;  %v1002_v55 = vld [vmem:[#allocation2 + $0x48] sm:$0xf] }
  0x6c   : > { %v6646_v1 = vcombine.low %v3137_v40, %v3147_v60  ;;  %v1286_v4 = vrot.slane %v1284_v57, 4  ;;  %v3149_v5 = vshrl.u32 %v6591_v53, 16  ;;  %7716 = vmatpush3.bf16.msra.mxu0 %v8217_v29  ;;  %v1277_v13 = vor.u32 %v1276_v61, %v1273_v56 }
  0x6d   : > { %v1269_v6 = vsel %vm8536_vm2, %v1264_v58, %v1268_v43  ;;  %v1292_v14 = vrot.slane %v1290_v62, 5  ;;  %v3152_v15 = vshll.u32 %v6591_v53, 16  ;;  %7749 = vmatprep.subr.bf16.mxu0 %v8776_v44  ;;  %v3158_v25 = vshll.u32 %v8785_v9, 16 }
  0x6e   : > { %7674 = vmatmul.mubr.bf16.gmra.mrb[4].mxu0 %v6646_v1  ;;  %v6407_v10 = vcombine.low %v1259_v54, %v1269_v6  ;;  %v1287_v21 = vor.u32 %v1286_v4, %v1282_v3  ;;  %v3151_v22 = vrot.slane %v3149_v5, 4  ;;  %v1278_v26 = vrot.slane %v1277_v13, 4 }
  0x6f   : > { %v3154_v24 = vrot.slane %v3152_v15, 5  ;;  %v3162_v27 = vshrl.u32 %v8785_v9, 16  ;;  %v3168_v11 = vshll.u32 %v8787_v30, 16  ;;  %v3160_v29 = vrot.slane %v3158_v25, 5  ;;  %v8820_v25 = vld [vmem:[%s10290_s1] ss:$0 sm:$0xff] }
  0x70   : > { %7485 = vmatprep.mubr.bf16.mxu1 %v6407_v10  ;;  %v1288_v28 = vrot.slane %v1287_v21, 4  ;;  %v727_v32 = vshrl.u32 %v8757_v18, 16  ;;  %v730_v0 = vshll.u32 %v8757_v18, 16  ;;  %v1283_v33 = vsel %vm8536_vm2, %v1278_v26, %v1282_v3  ;;  %v1006_v18 = vld [vmem:[#allocation2 + $0x50] sm:$0x1]  ;;  %v7222_v3 = vld [vmem:[%s8510_s26 + $0x40] sm:$0xff]  }
  0x71   : > { %v3155_v34 = vor.u32 %v3154_v24, %v3151_v22  ;;  %v3164_v36 = vrot.slane %v3162_v27, 4  ;;  %v3170_v37 = vrot.slane %v3168_v11, 5  ;;  %v735_v41 = vshrl.u32 %v8759_v19, 16  ;;  %v1009_v10 = vld [vmem:[#allocation2 + $0x54] sm:$0xf] }
  0x72   : > { %v1293_v38 = vsel %vm8536_vm2, %v1288_v28, %v1292_v14  ;;  %v729_v40 = vrot.slane %v727_v32, 7  ;;  %v738_v43 = vshll.u32 %v8759_v19, 16  ;;  %v522_v47 = vmax.f32 %v8769_v39, 0.0  ;;  %v1013_v11 = vld [vmem:[#allocation2 + $0x5c] sm:$0x1] }
  0x73   : > { %v6408_v53 = vcombine.low %v1283_v33, %v1293_v38  ;;  %v3156_v45 = vrot.slane %v3155_v34, 4  ;;  %v3165_v46 = vor.u32 %v3164_v36, %v3160_v29  ;;  %v737_v54 = vrot.slane %v735_v41, 7  ;;  %v8224_v32 = vld [vmem:[%s10292_s3 + $0x38] sm:$0xff]   ;;  %v8830_v34 = vld [vmem:[%s10291_s2] ss:$0 sm:$0xff] }
  0x74   : > { %v732_v48 = vor.u32 %v730_v0, %v729_v40  ;;  %v733_v51 = vrot.slane %v729_v40, 4  ;;  %v523_v56 = vmax.f32 %v8779_v52, 0.0  ;;  %v7019_v60 = vpack.c.bf16 %v522_v47, %v522_v47  ;;  %7523 = vmatprep.subr.bf16.mxu1 %v8224_v32 }
  0x75   : > { %7486 = vmatmul.mubr.bf16.gmra.mrb[8].mxu1 %v6408_v53  ;;  %v3161_v59 = vsel %vm8536_vm2, %v3156_v45, %v3160_v29  ;;  %v3166_v57 = vrot.slane %v3165_v46, 4  ;;  %v7101_v19 = vunpack.c.l.bf16 %v7221_v23  ;;  %v740_v58 = vor.u32 %v738_v43, %v737_v54  ;;  %v8839_v45 = vld [vmem:[%s8510_s26 + $0x48] sm:$0xff]  }
  0x76   : > { %v742_v61 = vrot.slane %v737_v54, 4  ;;  %v1003_v62 = vsel %vm8585_vm10, %v732_v48, %v1002_v55  ;;  %v7020_v1 = vpack.c.bf16 %v523_v56, %v523_v56  ;;  %v744_v4 = vshrl.u32 %v7019_v60, 16  ;;  %7524 = vmatpush3.bf16.msra.mxu1 %v8224_v32 }
  0x77   : > { %v3171_v39 = vsel %vm8536_vm2, %v3166_v57, %v3170_v37  ;;  %1004 = vst [vmem:[#allocation2 + $0x48] sm:$0xf] %v1003_v62  ;;  %v747_v52 = vshll.u32 %v7019_v60, 16  ;;  %v7102_v5 = vunpack.c.h.bf16 %v7221_v23  ;;  %v741_v13 = vsel %vm8579_vm9, %v733_v51, %v740_v58 }
  0x78   : > { %v6647_v6 = vcombine.low %v3161_v59, %v3171_v39  ;;  %v1007_v14 = vsel %vm8569_vm8, %v742_v61, %v1006_v18  ;;  %v752_v15 = vshrl.u32 %v7020_v1, 16  ;;  %1005 = vst [vmem:[#allocation2 + $0x4c] sm:$0xf] %v741_v13  ;;  %v746_v21 = vrot.slane %v744_v4, 7 }
  0x79   : > { %1008 = vst [vmem:[#allocation2 + $0x50] sm:$0x1] %v1007_v14  ;;  %v755_v22 = vshll.u32 %v7020_v1, 16  ;;  %v453_v26 = vmul.f32 %v8820_v25, %v7101_v19  ;;  %v454_v24 = vmul.f32 %v8820_v25, %v7102_v5  ;;  %v7105_v28 = vunpack.c.l.bf16 %v7222_v3 }
  0x7a   : > { %7677 = vmatprep.mubr.bf16.mxu0 %v6647_v6  ;;  %v754_v27 = vrot.slane %v752_v15, 7  ;;  %v7106_v29 = vunpack.c.h.bf16 %v7222_v3  ;;  %v749_v0 = vor.u32 %v747_v52, %v746_v21  ;;  %v750_v33 = vrot.slane %v746_v21, 4 }
  0x7b   : > { %v492_v36 = vadd.f32 %v8830_v34, %v453_v26  ;;  %v493_v37 = vadd.f32 %v8830_v34, %v454_v24  ;;  %v455_v40 = vmul.f32 %v8820_v25, %v7105_v28  ;;  %vm2178_vm12 = vcmask 1046532  }
  0x7c   : > { %v757_v55 = vor.u32 %v755_v22, %v754_v27  ;;  %v759_v38 = vrot.slane %v754_v27, 4  ;;  %v456_v41 = vmul.f32 %v8820_v25, %v7106_v29  ;;  %v1010_v43 = vsel %vm8585_vm10, %v749_v0, %v1009_v10  ;;  %vm8852_vm13 = vmor %vm2177_vm11, %vm2178_vm12  ;;  %v8879_v27 = vld [vmem:[%s8510_s26 + $0x50] sm:$0xff]  }
  0x7d   : > { %v524_v23 = vmax.f32 %v492_v36, 0.0  ;;  %v525_v53 = vmax.f32 %v493_v37, 0.0  ;;  %1011 = vst [vmem:[#allocation2 + $0x54] sm:$0xf] %v1010_v43  ;;  %v8846_v51 = vadd.f32 %v8830_v34, %v455_v40  ;;  %v8869_v39 = vsel %vm8852_vm13, %v8659_v31, %v3834_v17  ;;  %v8228_v17 = vld [vmem:[%s10292_s3 + $0x80] sm:$0xff]  }
  0x7e   : > { %v6594_v46 = vld [vmem:[#allocation2 + $0x48] sm:$0xf]  ;;  %v758_v47 = vsel %vm8579_vm9, %v750_v33, %v757_v55  ;;  %v1014_v48 = vsel %vm8569_vm8, %v759_v38, %v1013_v11  ;;  %v8849_v54 = vadd.f32 %v8830_v34, %v456_v41  ;;  %v7109_v4 = vunpack.c.l.bf16 %v8839_v45  ;;  %7557 = vmatprep.subr.bf16.mxu1 %v8228_v17 }
  0x7f   : > { %v1095_v18 = vld [vmem:[#allocation2 + $0x48] sm:$0xf]  ;;  %v3173_v59 = vshrl.u32 %v6594_v46, 16  ;;  %v3176_v57 = vshll.u32 %v6594_v46, 16  ;;  %1012 = vst [vmem:[#allocation2 + $0x58] sm:$0xf] %v758_v47  ;;  %v8860_v1 = vpack.c.bf16 %v524_v23, %v524_v23  ;;  %v8862_v3 = vpack.c.bf16 %v525_v53, %v525_v53 }
  0x80   : > { %v1295_v60 = vshrl.u32 %v1095_v18, 16  ;;  %v1298_v19 = vshll.u32 %v1095_v18, 16  ;;  %1015 = vst [vmem:[#allocation2 + $0x5c] sm:$0x1] %v1014_v48  ;;  %v8856_v58 = vld [vmem:[#allocation2 + $0x4c] sm:$0xf]  ;;  %v7110_v55 = vunpack.c.h.bf16 %v8839_v45  ;;  %v8883_v23 = vmul.f32 %v8820_v25, %v7109_v4 }
  0x81   : > { %v8858_v61 = vld [vmem:[#allocation2 + $0x50] sm:$0x1]  ;;  %v1096_v62 = vld [vmem:[#allocation2 + $0x4c] sm:$0xf]  ;;  %v3175_v52 = vrot.slane %v3173_v59, 4  ;;  %v3178_v5 = vrot.slane %v3176_v57, 5  ;;  %v7113_v53 = vunpack.c.l.bf16 %v8879_v27 }
  0x82   : > { %v3182_v6 = vshll.u32 %v8856_v58, 16  ;;  %v3186_v13 = vshrl.u32 %v8856_v58, 16  ;;  %v1137_v14 = vld [vmem:[#allocation2 + $0x50] sm:$0x1]  ;;  %v3192_v15 = vshll.u32 %v8858_v61, 16  ;;  %v1297_v10 = vrot.slane %v1295_v60, 4 }
  0x83   : > { %v1300_v21 = vrot.slane %v1298_v19, 5  ;;  %v1304_v50 = vshll.u32 %v1096_v62, 16  ;;  %v3179_v31 = vor.u32 %v3178_v5, %v3175_v52  ;;  %v1308_v24 = vshrl.u32 %v1096_v62, 16  ;;  %v8332_v7 = vld [vmem:[#allocation2 + $0x48] sm:$0xf] }
  0x84   : > { %v3184_v22 = vrot.slane %v3182_v6, 5  ;;  %v3188_v26 = vrot.slane %v3186_v13, 4  ;;  %v3194_v11 = vrot.slane %v3192_v15, 5  ;;  %v1314_v32 = vshll.u32 %v1137_v14, 16  ;;  %v1097_v37 = vld [vmem:[#allocation2 + $0x54] sm:$0xf] }
  0x85   : > { %v1301_v28 = vor.u32 %v1300_v21, %v1297_v10  ;;  %v1306_v29 = vrot.slane %v1304_v50, 5  ;;  %v3180_v0 = vrot.slane %v3179_v31, 4  ;;  %v1310_v36 = vrot.slane %v1308_v24, 4  ;;  %v6597_v59 = vld [vmem:[#allocation2 + $0x54] sm:$0xf] }
  0x86   : > { %v3189_v33 = vor.u32 %v3188_v26, %v3184_v22  ;;  %v1316_v40 = vrot.slane %v1314_v32, 5  ;;  %v1098_v41 = vld [vmem:[#allocation2 + $0x58] sm:$0xf]  ;;  %v1319_v48 = vshrl.u32 %v1097_v37, 16  ;;  %v1322_v60 = vshll.u32 %v1097_v37, 16 }
  0x87   : > { %v1302_v38 = vrot.slane %v1301_v28, 4  ;;  %v1138_v43 = vld [vmem:[#allocation2 + $0x5c] sm:$0x1]  ;;  %v3185_v46 = vsel %vm8536_vm2, %v3180_v0, %v3184_v22  ;;  %v1311_v47 = vor.u32 %v1310_v36, %v1306_v29  ;;  %v1328_v19 = vshll.u32 %v1098_v41, 16  ;;  %v6598_v52 = vld [vmem:[#allocation2 + $0x58] sm:$0xf] }
  0x88   : > { %v3190_v18 = vrot.slane %v3189_v33, 4  ;;  %v1332_v62 = vshrl.u32 %v1098_v41, 16  ;;  %v1321_v6 = vrot.slane %v1319_v48, 4  ;;  %v1338_v13 = vshll.u32 %v1138_v43, 16  ;;  %v6599_v50 = vld [vmem:[#allocation2 + $0x5c] sm:$0x1] }
  0x89   : > { %v1307_v57 = vsel %vm8536_vm2, %v1302_v38, %v1306_v29  ;;  %v1312_v5 = vrot.slane %v1311_v47, 4  ;;  %v1324_v15 = vrot.slane %v1322_v60, 5  ;;  %v1330_v10 = vrot.slane %v1328_v19, 5 }
  0x8a   : > { %v3195_v4 = vsel %vm8536_vm2, %v3190_v18, %v3194_v11  ;;  %v1334_v21 = vrot.slane %v1332_v62, 4  ;;  %v1340_v31 = vrot.slane %v1338_v13, 5  ;;  %v3197_v22 = vshrl.u32 %v6597_v59, 16  ;;  %v1020_v13 = vld [vmem:[#allocation2 + $0x68] sm:$0x1] }
  0x8b   : > { %v6648_v14 = vcombine.low %v3185_v46, %v3195_v4  ;;  %v1317_v17 = vsel %vm8536_vm2, %v1312_v5, %v1316_v40  ;;  %v3200_v26 = vshll.u32 %v6597_v59, 16  ;;  %v1325_v28 = vor.u32 %v1324_v15, %v1321_v6  ;;  %v6667_v46 = vld [vmem:[#allocation2 + $0xc] sm:$0xe]  ;;  %v1016_v59 = vld [vmem:[#allocation2 + $0x60] sm:$0xf] }
  0x8c   : > { %v6409_v24 = vcombine.low %v1307_v57, %v1317_v17  ;;  %v1335_v29 = vor.u32 %v1334_v21, %v1330_v10  ;;  %v3206_v32 = vshll.u32 %v6598_v52, 16  ;;  %v3199_v11 = vrot.slane %v3197_v22, 4 }
  0x8d   : > { %7678 = vmatmul.mubr.bf16.gmra.mrb[8].mxu0 %v6648_v14  ;;  %v3202_v0 = vrot.slane %v3200_v26, 5  ;;  %v3210_v33 = vshrl.u32 %v6598_v52, 16  ;;  %v3216_v36 = vshll.u32 %v6599_v50, 16  ;;  %v1326_v37 = vrot.slane %v1325_v28, 4  ;;  %v6668_v50 = vld [vmem:[#allocation2 + $0x18] sm:$0xe] }
  0x8e   : > { %7489 = vmatprep.mubr.bf16.mxu1 %v6409_v24  ;;  %v1336_v38 = vrot.slane %v1335_v29, 4  ;;  %v3208_v41 = vrot.slane %v3206_v32, 5  ;;  %v761_v43 = vshrl.u32 %v8860_v1, 16  ;;  %v764_v48 = vshll.u32 %v8860_v1, 16  ;;  %v8312_v32 = vld [vmem:[#allocation2 + $0x10] sm:$0xf] }
  0x8f   : > { %v3203_v40 = vor.u32 %v3202_v0, %v3199_v11  ;;  %v3212_v18 = vrot.slane %v3210_v33, 4  ;;  %v3218_v47 = vrot.slane %v3216_v36, 5  ;;  %v1331_v57 = vsel %vm8536_vm2, %v1326_v37, %v1330_v10 }
  0x90   : > { %v1341_v60 = vsel %vm8536_vm2, %v1336_v38, %v1340_v31  ;;  %v763_v19 = vrot.slane %v761_v43, 7  ;;  %v769_v62 = vshrl.u32 %v8862_v3, 16  ;;  %v772_v6 = vshll.u32 %v8862_v3, 16 }
  0x91   : > { %v6410_v52 = vcombine.low %v1331_v57, %v1341_v60  ;;  %v3204_v4 = vrot.slane %v3203_v40, 4  ;;  %v3213_v5 = vor.u32 %v3212_v18, %v3208_v41  ;;  %v526_v1 = vmax.f32 %v8846_v51, 0.0 }
  0x92   : > { %v766_v14 = vor.u32 %v764_v48, %v763_v19  ;;  %v767_v15 = vrot.slane %v763_v19, 4  ;;  %v771_v21 = vrot.slane %v769_v62, 7  ;;  %v527_v31 = vmax.f32 %v8849_v54, 0.0 }
  0x93   : > { %7490 = vmatmul.mubr.bf16.gmra.mrb[12].mxu1 %v6410_v52  ;;  %v3209_v10 = vsel %vm8536_vm2, %v3204_v4, %v3208_v41  ;;  %v3214_v17 = vrot.slane %v3213_v5, 4  ;;  %v6683_v22 = vrot.slane %v6667_v46, 9  ;;  %v7023_v28 = vpack.c.bf16 %v526_v1, %v526_v1  ;;  %v1023_v46 = vld [vmem:[#allocation2 + $0x6c] sm:$0xf] }
  0x94   : > { %v774_v26 = vor.u32 %v772_v6, %v771_v21  ;;  %v776_v24 = vrot.slane %v771_v21, 4  ;;  %v1017_v3 = vsel %vm8585_vm10, %v766_v14, %v1016_v59  ;;  %v7024_v51 = vpack.c.bf16 %v527_v31, %v527_v31 }
  0x95   : > { %v3219_v29 = vsel %vm8536_vm2, %v3214_v17, %v3218_v47  ;;  %1018 = vst [vmem:[#allocation2 + $0x60] sm:$0xf] %v1017_v3  ;;  %v3824_v11 = vrot.slane %v8312_v32, 5  ;;  %v6684_v0 = vrot.slane %v6668_v50, 9  ;;  %v778_v37 = vshrl.u32 %v7023_v28, 16 }
  0x96   : > { %v6649_v33 = vcombine.low %v3209_v10, %v3219_v29  ;;  %v775_v36 = vsel %vm8579_vm9, %v767_v15, %v774_v26  ;;  %v1021_v54 = vsel %vm8569_vm8, %v776_v24, %v1020_v13  ;;  %v781_v38 = vshll.u32 %v7023_v28, 16 }
  0x97   : > { %1019 = vst [vmem:[#allocation2 + $0x64] sm:$0xf] %v775_v36  ;;  %1022 = vst [vmem:[#allocation2 + $0x68] sm:$0x1] %v1021_v54  ;;  %v786_v41 = vshrl.u32 %v7024_v51, 16  ;;  %v789_v43 = vshll.u32 %v7024_v51, 16  ;;  %v8916_v40 = vsel %vm8852_vm13, %v6683_v22, %v3824_v11  ;;  %v8922_v48 = vsel %vm8852_vm13, %v6684_v0, %v3831_v16 }
  0x98   : > { %7681 = vmatprep.mubr.bf16.mxu0 %v6649_v33  ;;  %v780_v18 = vrot.slane %v778_v37, 7  ;;  %v3826_v47 = vrot.slane %v3824_v11, 4  ;;  %v458_v59 = vmul.f32 %v8820_v25, %v7110_v55  ;;  %v6716_v60 = vcombine.low %v8922_v48, %v8869_v39 }
  0x99   : > { %v788_v57 = vrot.slane %v786_v41, 7  ;;  %v496_v19 = vadd.f32 %v8830_v34, %v8883_v23  ;;  %v7114_v62 = vunpack.c.h.bf16 %v8879_v27  ;;  %v459_v20 = vmul.f32 %v8820_v25, %v7113_v53 }
  0x9a   : > { %v783_v52 = vor.u32 %v781_v38, %v780_v18  ;;  %v784_v4 = vrot.slane %v780_v18, 4  ;;  %v8936_v16 = vsel %vm8852_vm13, %v3826_v47, %v3827_v42  ;;  %v497_v45 = vadd.f32 %v8830_v34, %v458_v59 }
  0x9b   : > { %v791_v55 = vor.u32 %v789_v43, %v788_v57  ;;  %v793_v5 = vrot.slane %v788_v57, 4  ;;  %v6715_v6 = vcombine.low %v8916_v40, %v8936_v16  ;;  %v528_v13 = vmax.f32 %v496_v19, 0.0 }
  0x9c   : > { %v6600_v23 = vld [vmem:[#allocation2 + $0x60] sm:$0xf]  ;;  %v1024_v15 = vsel %vm8585_vm10, %v783_v52, %v1023_v46  ;;  %v529_v21 = vmax.f32 %v497_v45, 0.0  ;;  %v8947_v42 = vmul.f32 %v8820_v25, %v7114_v62 }
  0x9d   : > { %v1099_v14 = vld [vmem:[#allocation2 + $0x60] sm:$0xf]  ;;  %v3221_v1 = vshrl.u32 %v6600_v23, 16  ;;  %v3224_v50 = vshll.u32 %v6600_v23, 16  ;;  %1025 = vst [vmem:[#allocation2 + $0x6c] sm:$0xf] %v1024_v15  ;;  %v792_v24 = vsel %vm8579_vm9, %v784_v4, %v791_v55  ;;  %v1028_v27 = vsel %vm8569_vm8, %v793_v5, %v1027_v49 }
  0x9e   : > { %v1343_v10 = vshrl.u32 %v1099_v14, 16  ;;  %v1346_v17 = vshll.u32 %v1099_v14, 16  ;;  %v8949_v31 = vld [vmem:[#allocation2 + $0x64] sm:$0xf]  ;;  %v8951_v22 = vld [vmem:[#allocation2 + $0x68] sm:$0x1]  ;;  %v7025_v53 = vpack.c.bf16 %v528_v13, %v528_v13  ;;  %v8957_v3 = vpack.c.bf16 %v529_v21, %v529_v21 }
  0x9f   : > { %v1100_v26 = vld [vmem:[#allocation2 + $0x64] sm:$0xf]  ;;  %v3223_v28 = vrot.slane %v3221_v1, 4  ;;  %v3226_v29 = vrot.slane %v3224_v50, 5  ;;  %v3230_v51 = vshll.u32 %v8949_v31, 16  ;;  %v3234_v32 = vshrl.u32 %v8949_v31, 16 }
  0xa0   : > { %v1139_v11 = vld [vmem:[#allocation2 + $0x68] sm:$0x1]  ;;  %1026 = vst [vmem:[#allocation2 + $0x70] sm:$0xf] %v792_v24  ;;  %1029 = vst [vmem:[#allocation2 + $0x74] sm:$0x1] %v1028_v27 }
  0xa1   : > { %v3240_v0 = vshll.u32 %v8951_v22, 16  ;;  %v1345_v33 = vrot.slane %v1343_v10, 4  ;;  %v1348_v36 = vrot.slane %v1346_v17, 5  ;;  %v1352_v54 = vshll.u32 %v1100_v26, 16 }
  0xa2   : > { %v3227_v37 = vor.u32 %v3226_v29, %v3223_v28  ;;  %v3232_v38 = vrot.slane %v3230_v51, 5  ;;  %v3236_v41 = vrot.slane %v3234_v32, 4  ;;  %v1356_v43 = vshrl.u32 %v1100_v26, 16 }
  0xa3   : > { %v3242_v46 = vrot.slane %v3240_v0, 5  ;;  %v1349_v18 = vor.u32 %v1348_v36, %v1345_v33  ;;  %v1354_v47 = vrot.slane %v1352_v54, 5  ;;  %v1362_v59 = vshll.u32 %v1139_v11, 16  ;;  %v1030_v0 = vld [vmem:[#allocation2 + $0x78] sm:$0xf] }
  0xa4   : > { %v3228_v57 = vrot.slane %v3227_v37, 4  ;;  %v3237_v19 = vor.u32 %v3236_v41, %v3232_v38  ;;  %v1358_v62 = vrot.slane %v1356_v43, 4  ;;  %v795_v52 = vshrl.u32 %v7025_v53, 16  ;;  %v1101_v45 = vld [vmem:[#allocation2 + $0x6c] sm:$0xf] }
  0xa5   : > { %v1350_v4 = vrot.slane %v1349_v18, 4  ;;  %v1364_v49 = vrot.slane %v1362_v59, 5  ;;  %v798_v55 = vshll.u32 %v7025_v53, 16  ;;  %v803_v5 = vshrl.u32 %v8957_v3, 16  ;;  %v1034_v18 = vld [vmem:[#allocation2 + $0x80] sm:$0x1] }
  0xa6   : > { %v3233_v13 = vsel %vm8536_vm2, %v3228_v57, %v3232_v38  ;;  %v3238_v23 = vrot.slane %v3237_v19, 4  ;;  %v1359_v14 = vor.u32 %v1358_v62, %v1354_v47  ;;  %v1367_v15 = vshrl.u32 %v1101_v45, 16  ;;  %v6669_v38 = vld [vmem:[#allocation2 + $0x24] sm:$0xe] }
  0xa7   : > { %v1355_v21 = vsel %vm8536_vm2, %v1350_v4, %v1354_v47  ;;  %v1102_v1 = vld [vmem:[#allocation2 + $0x70] sm:$0xf]  ;;  %v1140_v50 = vld [vmem:[#allocation2 + $0x74] sm:$0x1]  ;;  %v1370_v10 = vshll.u32 %v1101_v45, 16  ;;  %v797_v17 = vrot.slane %v795_v52, 7  ;;  %v498_v26 = vadd.f32 %v8830_v34, %v459_v20 }
  0xa8   : > { %v3243_v24 = vsel %vm8536_vm2, %v3238_v23, %v3242_v46  ;;  %v1360_v27 = vrot.slane %v1359_v14, 4  ;;  %v1369_v53 = vrot.slane %v1367_v15, 4  ;;  %v1376_v28 = vshll.u32 %v1102_v1, 16  ;;  %v6670_v45 = vld [vmem:[#allocation2 + $0x30] sm:$0xe]  ;;  %v7225_v15 = vld [vmem:[%s8510_s26 + $0x58] sm:$0xff]  }
  0xa9   : > { %v6650_v29 = vcombine.low %v3233_v13, %v3243_v24  ;;  %v1372_v51 = vrot.slane %v1370_v10, 5  ;;  %v1380_v32 = vshrl.u32 %v1102_v1, 16  ;;  %v1386_v11 = vshll.u32 %v1140_v50, 16  ;;  %v8314_v14 = vld [vmem:[#allocation2 + $0x2c] sm:$0x1] }
  0xaa   : > { %v1365_v33 = vsel %vm8536_vm2, %v1360_v27, %v1364_v49  ;;  %v1378_v36 = vrot.slane %v1376_v28, 5  ;;  %v800_v54 = vor.u32 %v798_v55, %v797_v17  ;;  %v801_v37 = vrot.slane %v797_v17, 4 }
  0xab   : > { %7682 = vmatmul.mubr.bf16.gmra.mrb[12].mxu0 %v6650_v29  ;;  %v6411_v20 = vcombine.low %v1355_v21, %v1365_v33  ;;  %v1373_v41 = vor.u32 %v1372_v51, %v1369_v53  ;;  %v1382_v43 = vrot.slane %v1380_v32, 4  ;;  %v1388_v46 = vrot.slane %v1386_v11, 5  ;;  %v8221_v53 = vld [vmem:[%s10292_s3 + $0x188] sm:$0xff]  }
  0xac   : > { %7717 = vmatprep.mubr.bf16.mxu0 %v6715_v6  ;;  %v805_v47 = vrot.slane %v803_v5, 7  ;;  %v806_v59 = vshll.u32 %v8957_v3, 16  ;;  %v1031_v57 = vsel %vm8585_vm10, %v800_v54, %v1030_v0  ;;  %v499_v19 = vadd.f32 %v8830_v34, %v8947_v42  ;;  %v8313_v6 = vld [vmem:[#allocation2 + $0x28] sm:$0xf]  ;;  %v1037_v0 = vld [vmem:[#allocation2 + $0x84] sm:$0xf] }
  0xad   : > { %7493 = vmatprep.mubr.bf16.mxu1 %v6411_v20  ;;  %v1374_v62 = vrot.slane %v1373_v41, 4  ;;  %v1383_v52 = vor.u32 %v1382_v43, %v1378_v36  ;;  %1032 = vst [vmem:[#allocation2 + $0x78] sm:$0xf] %v1031_v57  ;;  %v530_v4 = vmax.f32 %v498_v26, 0.0  ;;  %v6685_v49 = vrot.slane %v6669_v38, 9 }
  0xae   : > { %v808_v55 = vor.u32 %v806_v59, %v805_v47  ;;  %v810_v40 = vrot.slane %v805_v47, 4  ;;  %v531_v16 = vmax.f32 %v499_v19, 0.0  ;;  %v3838_v5 = vrot.slane %v8313_v6, 5  ;;  %v1041_v20 = vld [vmem:[#allocation2 + $0x8c] sm:$0x1]  ;;  %v7226_v47 = vld [vmem:[%s8510_s26 + $0x60] sm:$0xff]  }
  0xaf   : > { %v1379_v3 = vsel %vm8536_vm2, %v1374_v62, %v1378_v36  ;;  %v1384_v13 = vrot.slane %v1383_v52, 4  ;;  %v7027_v23 = vpack.c.bf16 %v530_v4, %v530_v4  ;;  %v3841_v42 = vrot.slane %v8314_v14, 5  ;;  %v6671_v14 = vld [vmem:[#allocation2 + $0x3c] sm:$0xe] }
  0xb0   : > { %v809_v21 = vsel %vm8579_vm9, %v801_v37, %v808_v55  ;;  %v1035_v1 = vsel %vm8569_vm8, %v810_v40, %v1034_v18  ;;  %v7028_v50 = vpack.c.bf16 %v531_v16, %v531_v16  ;;  %v3839_v10 = vsel %vm8852_vm13, %v6685_v49, %v3838_v5 }
  0xb1   : > { %v1389_v17 = vsel %vm8536_vm2, %v1384_v13, %v1388_v46  ;;  %1033 = vst [vmem:[#allocation2 + $0x7c] sm:$0xf] %v809_v21  ;;  %1036 = vst [vmem:[#allocation2 + $0x80] sm:$0x1] %v1035_v1  ;;  %v812_v26 = vshrl.u32 %v7027_v23, 16  ;;  %v815_v24 = vshll.u32 %v7027_v23, 16  ;;  %v7117_v43 = vunpack.c.l.bf16 %v7225_v15 }
  0xb2   : > { %v3840_v27 = vrot.slane %v3838_v5, 4  ;;  %v6412_v28 = vcombine.low %v1379_v3, %v1389_v17  ;;  %v820_v29 = vshrl.u32 %v7028_v50, 16  ;;  %v823_v51 = vshll.u32 %v7028_v50, 16  ;;  %v8225_v50 = vld [vmem:[%s10292_s3 + $0x198] sm:$0xff]  }
  0xb3   : > { %v6686_v32 = vrot.slane %v6670_v45, 9  ;;  %7718 = vmatmul.mubr.bf16.vlgmr.msra.gmra.mrb[0].mxu0 %v6716_v60  ;;  %v814_v11 = vrot.slane %v812_v26, 7  ;;  %v3845_v36 = vrot.slane %v8749_v63, 5  ;;  %v3848_v54 = vrot.slane %v8753_v8, 5  ;;  %v8223_v63 = vld [vmem:[%s10292_s3 + $0x190] sm:$0xff]  }
  0xb4   : > { %v3842_v33 = vsel %vm8852_vm13, %v3840_v27, %v3841_v42  ;;  %7494 = vmatmul.mubr.bf16.gmra.mrb[16].mxu1 %v6412_v28  ;;  %7750 = vmatpush3.bf16.msra.mxu0 %v8776_v44  ;;  %v1103_v37 = vld [vmem:[#allocation2 + $0x78] sm:$0xf]  ;;  %v822_v38 = vrot.slane %v820_v29, 7  ;;  %v7118_v39 = vunpack.c.h.bf16 %v7225_v15  ;;  %v461_v4 = vmul.f32 %v8820_v25, %v7117_v43 }
  0xb5   : > { %v6717_v41 = vcombine.low %v3839_v10, %v3842_v33  ;;  %v1391_v48 = vshrl.u32 %v1103_v37, 16  ;;  %v1394_v60 = vshll.u32 %v1103_v37, 16  ;;  %v817_v46 = vor.u32 %v815_v24, %v814_v11  ;;  %7751 = vmatprep.subr.bf16.mxu0 %v8221_v53  ;;  %v9028_v33 = vld [vmem:[%s8510_s26 + $0x68] sm:$0xff]  }
  0xb6   : > { %v818_v18 = vrot.slane %v814_v11, 4  ;;  %v825_v8 = vor.u32 %v823_v51, %v822_v38  ;;  %v827_v59 = vrot.slane %v822_v38, 4  ;;  %v3846_v44 = vsel %vm8852_vm13, %v6686_v32, %v3845_v36 }
  0xb7   : > { %7721 = vmatprep.mubr.bf16.mxu0 %v6717_v41  ;;  %v3847_v57 = vrot.slane %v3845_v36, 4  ;;  %v1393_v19 = vrot.slane %v1391_v48, 4  ;;  %v1396_v62 = vrot.slane %v1394_v60, 5  ;;  %v1038_v52 = vsel %vm8585_vm10, %v817_v46, %v1037_v0  ;;  %v8229_v36 = vld [vmem:[%s10292_s3 + $0x1a0] sm:$0xff]  }
  0xb8   : > { %v1104_v49 = vld [vmem:[#allocation2 + $0x7c] sm:$0xf]  ;;  %v1141_v45 = vld [vmem:[#allocation2 + $0x80] sm:$0x1]  ;;  %v826_v55 = vsel %vm8579_vm9, %v818_v18, %v825_v8  ;;  %1039 = vst [vmem:[#allocation2 + $0x84] sm:$0xf] %v1038_v52  ;;  %v1042_v40 = vsel %vm8569_vm8, %v827_v59, %v1041_v20  ;;  %7752 = vmatpush3.bf16.msra.mxu0 %v8221_v53  ;;  %v462_v6 = vmul.f32 %v8820_v25, %v7118_v39  ;;  %v7121_v1 = vunpack.c.l.bf16 %v7226_v47 }
  0xb9   : > { %v3849_v16 = vsel %vm8852_vm13, %v3847_v57, %v3848_v54  ;;  %v1397_v5 = vor.u32 %v1396_v62, %v1393_v19  ;;  %v1400_v3 = vshll.u32 %v1104_v49, 16  ;;  %v1404_v13 = vshrl.u32 %v1104_v49, 16  ;;  %1040 = vst [vmem:[#allocation2 + $0x88] sm:$0xf] %v826_v55  ;;  %1043 = vst [vmem:[#allocation2 + $0x8c] sm:$0x1] %v1042_v40  ;;  %7753 = vmatprep.subr.bf16.mxu0 %v8223_v63 }
  0xba   : > { %v1410_v23 = vshll.u32 %v1141_v45, 16  ;;  %v6718_v42 = vcombine.low %v3846_v44, %v3849_v16  ;;  %v500_v15 = vadd.f32 %v8830_v34, %v461_v4  ;;  %v501_v21 = vadd.f32 %v8830_v34, %v462_v6  ;;  %v8233_v49 = vld [vmem:[%s10292_s3 + $0x1a8] sm:$0xff]  }
  0xbb   : > { %v1398_v10 = vrot.slane %v1397_v5, 4  ;;  %v1402_v17 = vrot.slane %v1400_v3, 5  ;;  %v1406_v26 = vrot.slane %v1404_v13, 4  ;;  %v7122_v28 = vunpack.c.h.bf16 %v7226_v47 }
  0xbc   : > { %v1412_v24 = vrot.slane %v1410_v23, 5  ;;  %7722 = vmatmul.mubr.bf16.gmra.mrb[4].mxu0 %v6718_v42  ;;  %v532_v27 = vmax.f32 %v500_v15, 0.0  ;;  %v533_v53 = vmax.f32 %v501_v21, 0.0  ;;  %v463_v29 = vmul.f32 %v8820_v25, %v7121_v1  ;;  %v1044_v23 = vld [vmem:[#allocation2 + $0x90] sm:$0xf] }
  0xbd   : > { %v1403_v51 = vsel %vm8536_vm2, %v1398_v10, %v1402_v17  ;;  %v1407_v32 = vor.u32 %v1406_v26, %v1402_v17  ;;  %v6687_v11 = vrot.slane %v6671_v14, 9  ;;  %v3852_v0 = vrot.slane %v8785_v9, 5  ;;  %7754 = vmatpush3.bf16.msra.mxu0 %v8223_v63  ;;  %v1048_v26 = vld [vmem:[#allocation2 + $0x98] sm:$0x1] }
  0xbe   : > { %v7029_v54 = vpack.c.bf16 %v532_v27, %v532_v27  ;;  %v7030_v37 = vpack.c.bf16 %v533_v53, %v533_v53  ;;  %v464_v38 = vmul.f32 %v8820_v25, %v7122_v28  ;;  %v502_v20 = vadd.f32 %v8830_v34, %v463_v29  ;;  %7755 = vmatprep.subr.bf16.mxu0 %v8225_v50 }
  0xbf   : > { %v1408_v41 = vrot.slane %v1407_v32, 4  ;;  %v9035_v43 = vld [vmem:[#allocation2 + $0x84] sm:$0xf]  ;;  %v3853_v9 = vsel %vm8852_vm13, %v6687_v11, %v3852_v0  ;;  %v3854_v39 = vrot.slane %v3852_v0, 4  ;;  %v3855_v48 = vrot.slane %v8787_v30, 5 }
  0xc0   : > { %v9040_v60 = vld [vmem:[#allocation2 + $0x88] sm:$0xf]  ;;  %v1142_v46 = vld [vmem:[#allocation2 + $0x8c] sm:$0x1]  ;;  %v1415_v18 = vshrl.u32 %v9035_v43, 16  ;;  %v1418_v47 = vshll.u32 %v9035_v43, 16  ;;  %v503_v63 = vadd.f32 %v8830_v34, %v464_v38  ;;  %v7125_v8 = vunpack.c.l.bf16 %v9028_v33 }
  0xc1   : > { %v1413_v59 = vsel %vm8536_vm2, %v1408_v41, %v1412_v24  ;;  %v1424_v44 = vshll.u32 %v9040_v60, 16  ;;  %v1428_v57 = vshrl.u32 %v9040_v60, 16  ;;  %v1434_v19 = vshll.u32 %v1142_v46, 16  ;;  %7756 = vmatpush3.bf16.msra.mxu0 %v8225_v50  ;;  %v8237_v24 = vld [vmem:[%s10292_s3 + $0x1b0] sm:$0xff]  }
  0xc2   : > { %v6413_v30 = vcombine.low %v1403_v51, %v1413_v59  ;;  %v1417_v62 = vrot.slane %v1415_v18, 4  ;;  %v1420_v52 = vrot.slane %v1418_v47, 5  ;;  %v829_v4 = vshrl.u32 %v7029_v54, 16  ;;  %7757 = vmatprep.subr.bf16.mxu0 %v8229_v36  ;;  %v6672_v51 = vld [vmem:[#allocation2 + $0x48] sm:$0xe]  ;;  %v7228_v41 = vld [vmem:[%s8510_s26 + $0x70] sm:$0xff]  }
  0xc3   : > { %v1426_v45 = vrot.slane %v1424_v44, 5  ;;  %v1430_v55 = vrot.slane %v1428_v57, 4  ;;  %v1436_v40 = vrot.slane %v1434_v19, 5  ;;  %v832_v16 = vshll.u32 %v7029_v54, 16  ;;  %v1051_v18 = vld [vmem:[#allocation2 + $0x9c] sm:$0xf] }
  0xc4   : > { %7497 = vmatprep.mubr.bf16.mxu1 %v6413_v30  ;;  %v1421_v6 = vor.u32 %v1420_v52, %v1417_v62  ;;  %v831_v5 = vrot.slane %v829_v4, 7  ;;  %v837_v3 = vshrl.u32 %v7030_v37, 16  ;;  %v840_v13 = vshll.u32 %v7030_v37, 16  ;;  %v8241_v47 = vld [vmem:[%s10292_s3 + $0x1b8] sm:$0xff]   ;;  %v1055_v44 = vld [vmem:[#allocation2 + $0xa4] sm:$0x1] }
  0xc5   : > { %v1431_v14 = vor.u32 %v1430_v55, %v1426_v45  ;;  %v534_v42 = vmax.f32 %v502_v20, 0.0  ;;  %v535_v15 = vmax.f32 %v503_v63, 0.0  ;;  %v3856_v21 = vsel %vm8852_vm13, %v3854_v39, %v3855_v48  ;;  %7758 = vmatpush3.bf16.msra.mxu0 %v8229_v36 }
  0xc6   : > { %v1422_v1 = vrot.slane %v1421_v6, 4  ;;  %v834_v50 = vor.u32 %v832_v16, %v831_v5  ;;  %v835_v10 = vrot.slane %v831_v5, 4  ;;  %v839_v17 = vrot.slane %v837_v3, 7  ;;  %7759 = vmatprep.subr.bf16.mxu0 %v8233_v49 }
  0xc7   : > { %v1432_v27 = vrot.slane %v1431_v14, 4  ;;  %v7031_v53 = vpack.c.bf16 %v534_v42, %v534_v42  ;;  %v7032_v28 = vpack.c.bf16 %v535_v15, %v535_v15  ;;  %v6719_v29 = vcombine.low %v3853_v9, %v3856_v21  ;;  %v9105_v14 = vld [vmem:[%s10291_s2] ss:$0 sm:$0xff] }
  0xc8   : > { %v1427_v32 = vsel %vm8536_vm2, %v1422_v1, %v1426_v45  ;;  %v842_v11 = vor.u32 %v840_v13, %v839_v17  ;;  %v844_v0 = vrot.slane %v839_v17, 4  ;;  %v1045_v36 = vsel %vm8585_vm10, %v834_v50, %v1044_v23 }
  0xc9   : > { %v1437_v54 = vsel %vm8536_vm2, %v1432_v27, %v1436_v40  ;;  %1046 = vst [vmem:[#allocation2 + $0x90] sm:$0xf] %v1045_v36  ;;  %v846_v37 = vshrl.u32 %v7031_v53, 16  ;;  %v849_v38 = vshll.u32 %v7031_v53, 16  ;;  %v854_v20 = vshrl.u32 %v7032_v28, 16  ;;  %7725 = vmatprep.mubr.bf16.mxu0 %v6719_v29  ;;  %7760 = vmatpush3.bf16.msra.mxu0 %v8233_v49 }
  0xca   : > { %v6414_v9 = vcombine.low %v1427_v32, %v1437_v54  ;;  %v843_v39 = vsel %vm8579_vm9, %v835_v10, %v842_v11  ;;  %v1049_v48 = vsel %vm8569_vm8, %v844_v0, %v1048_v26  ;;  %v857_v46 = vshll.u32 %v7032_v28, 16  ;;  %7761 = vmatprep.subr.bf16.mxu0 %v8237_v24 }
  0xcb   : > { %1047 = vst [vmem:[#allocation2 + $0x94] sm:$0xf] %v843_v39  ;;  %1050 = vst [vmem:[#allocation2 + $0x98] sm:$0x1] %v1049_v48  ;;  %v848_v63 = vrot.slane %v846_v37, 7  ;;  %v856_v59 = vrot.slane %v854_v20, 7  ;;  %v7126_v62 = vunpack.c.h.bf16 %v9028_v33  ;;  %v465_v52 = vmul.f32 %v8820_v25, %v7125_v8 }
  0xcc   : > { %v6688_v57 = vrot.slane %v6672_v51, 9  ;;  %v3859_v19 = vrot.slane %v8856_v58, 5  ;;  %7498 = vmatmul.mubr.bf16.gmra.mrb[20].mxu1 %v6414_v9  ;;  %v3862_v30 = vrot.slane %v8858_v61, 5  ;;  %v7129_v4 = vunpack.c.l.bf16 %v7228_v41  ;;  %v9083_v58 = vld [vmem:[%s10290_s1] ss:$0 sm:$0xff] }
  0xcd   : > { %v851_v49 = vor.u32 %v849_v38, %v848_v63  ;;  %v852_v45 = vrot.slane %v848_v63, 4  ;;  %v859_v55 = vor.u32 %v857_v46, %v856_v59  ;;  %v861_v40 = vrot.slane %v856_v59, 4  ;;  %7762 = vmatpush3.bf16.msra.mxu0 %v8237_v24  ;;  %v9090_v25 = vld [vmem:[%s10292_s3 + $0x1c0] sm:$0xff]  }
  0xce   : > { %v3860_v16 = vsel %vm8852_vm13, %v6688_v57, %v3859_v19  ;;  %v3861_v6 = vrot.slane %v3859_v19, 4  ;;  %v466_v61 = vmul.f32 %v9083_v58, %v7126_v62  ;;  %v504_v33 = vadd.f32 %v8830_v34, %v465_v52  ;;  %7763 = vmatprep.subr.bf16.mxu0 %v8241_v47 }
  0xcf   : > { %v860_v8 = vsel %vm8579_vm9, %v852_v45, %v859_v55  ;;  %v1052_v5 = vsel %vm8585_vm10, %v851_v49, %v1051_v18  ;;  %v1056_v3 = vsel %vm8569_vm8, %v861_v40, %v1055_v44  ;;  %v7130_v13 = vunpack.c.h.bf16 %v7228_v41 }
  0xd0   : > { %v9098_v23 = vld [vmem:[#allocation2 + $0x90] sm:$0xf]  ;;  %1053 = vst [vmem:[#allocation2 + $0x9c] sm:$0xf] %v1052_v5  ;;  %1054 = vst [vmem:[#allocation2 + $0xa0] sm:$0xf] %v860_v8  ;;  %v3863_v34 = vsel %vm8852_vm13, %v3861_v6, %v3862_v30  ;;  %v505_v42 = vadd.f32 %v9105_v14, %v466_v61  ;;  %v467_v21 = vmul.f32 %v9083_v58, %v7129_v4 }
  0xd1   : > { %1057 = vst [vmem:[#allocation2 + $0xa4] sm:$0x1] %v1056_v3  ;;  %v536_v15 = vmax.f32 %v504_v33, 0.0  ;;  %v1439_v1 = vshrl.u32 %v9098_v23, 16  ;;  %v1442_v50 = vshll.u32 %v9098_v23, 16  ;;  %v6720_v10 = vcombine.low %v3860_v16, %v3863_v34  ;;  %7764 = vmatpush3.bf16.msra.mxu0 %v8241_v47 }
  0xd2   : > { %v9111_v17 = vld [vmem:[#allocation2 + $0x94] sm:$0xf]  ;;  %v1143_v26 = vld [vmem:[#allocation2 + $0x98] sm:$0x1]  ;;  %v537_v24 = vmax.f32 %v505_v42, 0.0  ;;  %v468_v53 = vmul.f32 %v9083_v58, %v7130_v13  ;;  %v506_v28 = vadd.f32 %v9105_v14, %v467_v21  ;;  %7797 = vmatprep.subr.bf16.mxu0 %v9090_v25 }
  0xd3   : > { %v7033_v27 = vpack.c.bf16 %v536_v15, %v536_v15  ;;  %v1441_v29 = vrot.slane %v1439_v1, 4  ;;  %v1444_v51 = vrot.slane %v1442_v50, 5  ;;  %v1448_v32 = vshll.u32 %v9111_v17, 16  ;;  %7726 = vmatmul.mubr.bf16.gmra.mrb[8].mxu0 %v6720_v10  ;;  %v1058_v16 = vld [vmem:[#allocation2 + $0xa8] sm:$0xf] }
  0xd4   : > { %v1452_v11 = vshrl.u32 %v9111_v17, 16  ;;  %v1458_v0 = vshll.u32 %v1143_v26, 16  ;;  %v7034_v36 = vpack.c.bf16 %v537_v24, %v537_v24  ;;  %v507_v44 = vadd.f32 %v9105_v14, %v468_v53  ;;  %v6673_v5 = vld [vmem:[#allocation2 + $0x54] sm:$0xe]  ;;  %v1062_v10 = vld [vmem:[#allocation2 + $0xb0] sm:$0x1] }
  0xd5   : > { %v863_v54 = vshrl.u32 %v7033_v27, 16  ;;  %v1445_v37 = vor.u32 %v1444_v51, %v1441_v29  ;;  %v1450_v38 = vrot.slane %v1448_v32, 5  ;;  %v866_v41 = vshll.u32 %v7033_v27, 16  ;;  %v8317_v32 = vld [vmem:[#allocation2 + $0x58] sm:$0xf] }
  0xd6   : > { %v1454_v20 = vrot.slane %v1452_v11, 4  ;;  %v1460_v9 = vrot.slane %v1458_v0, 5  ;;  %v871_v48 = vshrl.u32 %v7034_v36, 16  ;;  %v874_v46 = vshll.u32 %v7034_v36, 16 }
  0xd7   : > { %v865_v39 = vrot.slane %v863_v54, 7  ;;  %v1446_v18 = vrot.slane %v1445_v37, 4  ;;  %v9118_v63 = vld [vmem:[#allocation2 + $0x9c] sm:$0xf]  ;;  %v9120_v59 = vld [vmem:[#allocation2 + $0xa0] sm:$0xf] }
  0xd8   : > { %v1455_v47 = vor.u32 %v1454_v20, %v1450_v38  ;;  %v538_v57 = vmax.f32 %v506_v28, 0.0  ;;  %v1144_v19 = vld [vmem:[#allocation2 + $0xa4] sm:$0x1]  ;;  %v1463_v30 = vshrl.u32 %v9118_v63, 16  ;;  %v1466_v62 = vshll.u32 %v9118_v63, 16 }
  0xd9   : > { %v1472_v52 = vshll.u32 %v9120_v59, 16  ;;  %v1476_v4 = vshrl.u32 %v9120_v59, 16  ;;  %v1451_v49 = vsel %vm8536_vm2, %v1446_v18, %v1450_v38  ;;  %v1482_v55 = vshll.u32 %v1144_v19, 16  ;;  %v6674_v38 = vld [vmem:[#allocation2 + $0x60] sm:$0xe] }
  0xda   : > { %v1456_v45 = vrot.slane %v1455_v47, 4  ;;  %v868_v40 = vor.u32 %v866_v41, %v865_v39  ;;  %v1465_v6 = vrot.slane %v1463_v30, 4  ;;  %v1468_v61 = vrot.slane %v1466_v62, 5 }
  0xdb   : > { %v1474_v33 = vrot.slane %v1472_v52, 5  ;;  %v1478_v8 = vrot.slane %v1476_v4, 4  ;;  %v1484_v13 = vrot.slane %v1482_v55, 5  ;;  %v869_v34 = vrot.slane %v865_v39, 4  ;;  %v8318_v39 = vld [vmem:[#allocation2 + $0x5c] sm:$0x1] }
  0xdc   : > { %v1461_v3 = vsel %vm8536_vm2, %v1456_v45, %v1460_v9  ;;  %v873_v42 = vrot.slane %v871_v48, 7  ;;  %v1469_v21 = vor.u32 %v1468_v61, %v1465_v6  ;;  %v1059_v50 = vsel %vm8585_vm10, %v868_v40, %v1058_v16  ;;  %v1065_v55 = vld [vmem:[#allocation2 + $0xb4] sm:$0xf]  ;;  %v6604_v16 = vld [vmem:[#allocation2 + $0x70] sm:$0xf] }
  0xdd   : > { %v6415_v15 = vcombine.low %v1451_v49, %v1461_v3  ;;  %v1479_v1 = vor.u32 %v1478_v8, %v1474_v33  ;;  %1060 = vst [vmem:[#allocation2 + $0xa8] sm:$0xf] %v1059_v50  ;;  %v539_v27 = vmax.f32 %v507_v44, 0.0  ;;  %v7035_v53 = vpack.c.bf16 %v538_v57, %v538_v57  ;;  %v6675_v57 = vld [vmem:[#allocation2 + $0x6c] sm:$0xe] }
  0xde   : > { %v876_v26 = vor.u32 %v874_v46, %v873_v42  ;;  %v878_v24 = vrot.slane %v873_v42, 4  ;;  %v1470_v28 = vrot.slane %v1469_v21, 4  ;;  %v6689_v51 = vrot.slane %v6673_v5, 9  ;;  %v1069_v61 = vld [vmem:[#allocation2 + $0xbc] sm:$0x1] }
  0xdf   : > { %7501 = vmatprep.mubr.bf16.mxu1 %v6415_v15  ;;  %v1480_v29 = vrot.slane %v1479_v1, 4  ;;  %v3866_v11 = vrot.slane %v8317_v32, 5  ;;  %v7036_v54 = vpack.c.bf16 %v539_v27, %v539_v27  ;;  %v880_v37 = vshrl.u32 %v7035_v53, 16  ;;  %v6605_v1 = vld [vmem:[#allocation2 + $0x74] sm:$0x1] }
  0xe0   : > { %v877_v0 = vsel %vm8579_vm9, %v869_v34, %v876_v26  ;;  %v1063_v36 = vsel %vm8569_vm8, %v878_v24, %v1062_v10  ;;  %v1475_v20 = vsel %vm8536_vm2, %v1470_v28, %v1474_v33  ;;  %v883_v9 = vshll.u32 %v7035_v53, 16 }
  0xe1   : > { %v1485_v41 = vsel %vm8536_vm2, %v1480_v29, %v1484_v13  ;;  %1061 = vst [vmem:[#allocation2 + $0xac] sm:$0xf] %v877_v0  ;;  %1064 = vst [vmem:[#allocation2 + $0xb0] sm:$0x1] %v1063_v36  ;;  %v3869_v48 = vrot.slane %v8318_v39, 5  ;;  %v882_v18 = vrot.slane %v880_v37, 7  ;;  %v3867_v40 = vsel %vm8852_vm13, %v6689_v51, %v3866_v11 }
  0xe2   : > { %v6416_v46 = vcombine.low %v1475_v20, %v1485_v41  ;;  %v888_v47 = vshrl.u32 %v7036_v54, 16  ;;  %v891_v44 = vshll.u32 %v7036_v54, 16  ;;  %v3868_v19 = vrot.slane %v3866_v11, 4  ;;  %v6676_v41 = vld [vmem:[#allocation2 + $0x78] sm:$0xe] }
  0xe3   : > { %v6690_v30 = vrot.slane %v6674_v38, 9  ;;  %v3873_v62 = vrot.slane %v8949_v31, 5  ;;  %v3876_v52 = vrot.slane %v8951_v22, 5  ;;  %v885_v4 = vor.u32 %v883_v9, %v882_v18 }
  0xe4   : > { %7502 = vmatmul.mubr.bf16.gmra.mrb[24].mxu1 %v6416_v46  ;;  %v886_v49 = vrot.slane %v882_v18, 4  ;;  %v890_v45 = vrot.slane %v888_v47, 7  ;;  %v9145_v6 = vld [vmem:[#allocation2 + $0xa8] sm:$0xf]  ;;  %v3870_v33 = vsel %vm8852_vm13, %v3868_v19, %v3869_v48  ;;  %v6691_v22 = vrot.slane %v6675_v57, 9 }
  0xe5   : > { %v3874_v31 = vsel %vm8852_vm13, %v6690_v30, %v3873_v62  ;;  %v3875_v8 = vrot.slane %v3873_v62, 4  ;;  %v1487_v5 = vshrl.u32 %v9145_v6, 16  ;;  %v1490_v3 = vshll.u32 %v9145_v6, 16  ;;  %v9169_v48 = vld [vmem:[#allocation2 + $0x7c] sm:$0xf] }
  0xe6   : > { %v893_v13 = vor.u32 %v891_v44, %v890_v45  ;;  %v895_v34 = vrot.slane %v890_v45, 4  ;;  %v1066_v42 = vsel %vm8585_vm10, %v885_v4, %v1065_v55  ;;  %v6721_v15 = vcombine.low %v3867_v40, %v3870_v33  ;;  %v9171_v46 = vld [vmem:[#allocation2 + $0x80] sm:$0x1]  ;;  %v6611_v45 = vld [vmem:[#allocation2 + $0x8c] sm:$0x1] }
  0xe7   : > { %v3877_v21 = vsel %vm8852_vm13, %v3875_v8, %v3876_v52  ;;  %v3880_v50 = vrot.slane %v6604_v16, 5  ;;  %v1489_v24 = vrot.slane %v1487_v5, 4  ;;  %v1492_v27 = vrot.slane %v1490_v3, 5  ;;  %1067 = vst [vmem:[#allocation2 + $0xb4] sm:$0xf] %v1066_v42 }
  0xe8   : > { %v9157_v10 = vld [vmem:[#allocation2 + $0xac] sm:$0xf]  ;;  %v1145_v26 = vld [vmem:[#allocation2 + $0xb0] sm:$0x1]  ;;  %v894_v53 = vsel %vm8579_vm9, %v886_v49, %v893_v13  ;;  %v1070_v28 = vsel %vm8569_vm8, %v895_v34, %v1069_v61  ;;  %7729 = vmatprep.mubr.bf16.mxu0 %v6721_v15  ;;  %v6722_v11 = vcombine.low %v3874_v31, %v3877_v21  ;;  %v3883_v37 = vrot.slane %v6605_v1, 5 }
  0xe9   : > { %v1496_v29 = vshll.u32 %v9157_v10, 16  ;;  %v1500_v51 = vshrl.u32 %v9157_v10, 16  ;;  %v1506_v32 = vshll.u32 %v1145_v26, 16  ;;  %1068 = vst [vmem:[#allocation2 + $0xb8] sm:$0xf] %v894_v53  ;;  %v1493_v0 = vor.u32 %v1492_v27, %v1489_v24 }
  0xea   : > { %1071 = vst [vmem:[#allocation2 + $0xbc] sm:$0x1] %v1070_v28  ;;  %v3881_v36 = vsel %vm8852_vm13, %v6691_v22, %v3880_v50  ;;  %v3882_v54 = vrot.slane %v3880_v50, 4  ;;  %7730 = vmatmul.mubr.bf16.gmra.mrb[12].mxu0 %v6722_v11  ;;  %v6692_v57 = vrot.slane %v6676_v41, 9  ;;  %v3887_v52 = vrot.slane %v9169_v48, 5 }
  0xeb   : > { %v1498_v38 = vrot.slane %v1496_v29, 5  ;;  %v1502_v20 = vrot.slane %v1500_v51, 4  ;;  %v1494_v9 = vrot.slane %v1493_v0, 4  ;;  %v1508_v47 = vrot.slane %v1506_v32, 5  ;;  %v6610_v49 = vld [vmem:[#allocation2 + $0x88] sm:$0xf] }
  0xec   : > { %v3884_v39 = vsel %vm8852_vm13, %v3882_v54, %v3883_v37  ;;  %v3890_v4 = vrot.slane %v9171_v46, 5  ;;  %v6677_v55 = vld [vmem:[#allocation2 + $0x84] sm:$0xe]  ;;  %v6678_v3 = vld [vmem:[#allocation2 + $0x90] sm:$0xe]  ;;  %v3888_v15 = vsel %vm8852_vm13, %v6692_v57, %v3887_v52  ;;  %v3889_v27 = vrot.slane %v3887_v52, 4 }
  0xed   : > { %v1503_v18 = vor.u32 %v1502_v20, %v1498_v38  ;;  %v6723_v44 = vcombine.low %v3881_v36, %v3884_v39  ;;  %v1499_v19 = vsel %vm8536_vm2, %v1494_v9, %v1498_v38  ;;  %v6613_v21 = vld [vmem:[#allocation2 + $0x94] sm:$0xf]  ;;  %v6614_v1 = vld [vmem:[#allocation2 + $0x98] sm:$0x1]  ;;  %v6693_v28 = vrot.slane %v6677_v55, 9 }
  0xee   : > { %v9175_v62 = vld [vmem:[#allocation2 + $0xb4] sm:$0xf]  ;;  %v3894_v29 = vrot.slane %v6610_v49, 5  ;;  %v3897_v51 = vrot.slane %v6611_v45, 5  ;;  %v3891_v11 = vsel %vm8852_vm13, %v3889_v27, %v3890_v4  ;;  %v6694_v0 = vrot.slane %v6678_v3, 9 }
  0xef   : > { %v1504_v30 = vrot.slane %v1503_v18, 4  ;;  %7733 = vmatprep.mubr.bf16.mxu0 %v6723_v44  ;;  %v1511_v61 = vshrl.u32 %v9175_v62, 16  ;;  %v1514_v33 = vshll.u32 %v9175_v62, 16  ;;  %v3901_v36 = vrot.slane %v6613_v21, 5  ;;  %v6616_v41 = vld [vmem:[#allocation2 + $0xa0] sm:$0xf] }
  0xf0   : > { %v9179_v40 = vld [vmem:[#allocation2 + $0xb8] sm:$0xf]  ;;  %v6724_v37 = vcombine.low %v3888_v15, %v3891_v11  ;;  %v3895_v38 = vsel %vm8852_vm13, %v6693_v28, %v3894_v29  ;;  %v3896_v20 = vrot.slane %v3894_v29, 4  ;;  %v6679_v9 = vld [vmem:[#allocation2 + $0x9c] sm:$0xe] }
  0xf1   : > { %v1146_v16 = vld [vmem:[#allocation2 + $0xbc] sm:$0x1]  ;;  %v1509_v31 = vsel %vm8536_vm2, %v1504_v30, %v1508_v47  ;;  %v1520_v8 = vshll.u32 %v9179_v40, 16  ;;  %v1524_v22 = vshrl.u32 %v9179_v40, 16  ;;  %v1513_v34 = vrot.slane %v1511_v61, 4 }
  0xf2   : > { %v1530_v5 = vshll.u32 %v1146_v16, 16  ;;  %v6417_v13 = vcombine.low %v1499_v19, %v1509_v31  ;;  %v1516_v42 = vrot.slane %v1514_v33, 5  ;;  %v3903_v18 = vrot.slane %v3901_v36, 4  ;;  %v6617_v44 = vld [vmem:[#allocation2 + $0xa4] sm:$0x1]  ;;  %7734 = vmatmul.mubr.bf16.gmra.mrb[16].mxu0 %v6724_v37  ;;  %v7229_v21 = vld [vmem:[%s8510_s26 + $0x78] sm:$0xff]   ;;  %s10254_s26 = scalar_lea.vmem %s10293_s4, %s7005_s15 }
  0xf3   : > { %v1522_v50 = vrot.slane %v1520_v8, 5  ;;  %v1526_v26 = vrot.slane %v1524_v22, 4  ;;  %v3904_v47 = vrot.slane %v6614_v1, 5  ;;  %v8319_v19 = vld [vmem:[#allocation2] sm:$0xf]  ;;  %v3898_v4 = vsel %vm8852_vm13, %v3896_v20, %v3897_v51  ;;  %s6352_s15 = sshll.u32 %s10372_s18, 1 }
  0xf4   : > { %v1532_v24 = vrot.slane %v1530_v5, 5  ;;  %7505 = vmatprep.mubr.bf16.mxu1 %v6417_v13  ;;  %v1517_v53 = vor.u32 %v1516_v42, %v1513_v34  ;;  %v9195_v30 = vld [vmem:[#allocation2 + $0x4] sm:$0xf]  ;;  %v3902_v49 = vsel %vm8852_vm13, %v6694_v0, %v3901_v36  ;;  %v6619_v45 = vld [vmem:[#allocation2 + $0xac] sm:$0xf]  ;;  %v6725_v16 = vcombine.low %v3895_v38, %v3898_v4  ;;  %s308_s27 = scalar_lea.vmem %s10294_s5, %s6352_s15 }
  0xf5   : > { %v1527_v32 = vor.u32 %v1526_v26, %v1522_v50  ;;  %v6427_v52 = vcombine.low %v8319_v19, %v9195_v30  ;;  %v3905_v61 = vsel %vm8852_vm13, %v3903_v18, %v3904_v47  ;;  %v6695_v33 = vrot.slane %v6679_v9, 9  ;;  %v6620_v31 = vld [vmem:[#allocation2 + $0xb0] sm:$0x1]  ;;  %v6680_v8 = vld [vmem:[#allocation2 + $0xa8] sm:$0xe] }
  0xf6   : > { %v1518_v54 = vrot.slane %v1517_v53, 4  ;;  %v3908_v5 = vrot.slane %v6616_v41, 5  ;;  %v3911_v3 = vrot.slane %v6617_v44, 5  ;;  %v6622_v13 = vld [vmem:[#allocation2 + $0xb8] sm:$0xf]  ;;  %7737 = vmatprep.mubr.bf16.mxu0 %v6725_v16  ;;  %v3915_v42 = vrot.slane %v6619_v45, 5 }
  0xf7   : > { %v1528_v39 = vrot.slane %v1527_v32, 4  ;;  %v6681_v34 = vld [vmem:[#allocation2 + $0xb4] sm:$0xe]  ;;  %v6623_v15 = vld [vmem:[#allocation2 + $0xbc] sm:$0x1]  ;;  %v6726_v1 = vcombine.low %v3902_v49, %v3905_v61  ;;  %v3918_v53 = vrot.slane %v6620_v31, 5  ;;  %v7133_v11 = vunpack.c.l.bf16 %v7229_v21 }
  0xf8   : > { %v1523_v57 = vsel %vm8536_vm2, %v1518_v54, %v1522_v50  ;;  %v3909_v50 = vsel %vm8852_vm13, %v6695_v33, %v3908_v5  ;;  %v3910_v26 = vrot.slane %v3908_v5, 4  ;;  %v3917_v27 = vrot.slane %v3915_v42, 4  ;;  %v8321_v37 = vld [vmem:[#allocation2 + $0xc] sm:$0xf]  ;;  %v9211_v38 = vld [vmem:[#allocation2 + $0x10] sm:$0xf] }
  0xf9   : > { %v1533_v55 = vsel %vm8536_vm2, %v1528_v39, %v1532_v24  ;;  %v6696_v24 = vrot.slane %v6680_v8, 9  ;;  %v6697_v28 = vrot.slane %v6681_v34, 9  ;;  %v3922_v29 = vrot.slane %v6622_v13, 5  ;;  %v8323_v39 = vld [vmem:[#allocation2 + $0x18] sm:$0xf]  ;;  %v8232_v19 = vld [vmem:[%s10292_s3 + $0x88] sm:$0xff]  }
  0xfa   : > { %v6418_v22 = vcombine.low %v1523_v57, %v1533_v55  ;;  %v3912_v51 = vsel %vm8852_vm13, %v3910_v26, %v3911_v3  ;;  %v3925_v32 = vrot.slane %v6623_v15, 5  ;;  %v7134_v0 = vunpack.c.h.bf16 %v7229_v21  ;;  %7738 = vmatmul.mubr.bf16.gmra.mrb[20].mxu0 %v6726_v1  ;;  %v9216_v18 = vld [vmem:[#allocation2 + $0x1c] sm:$0xf]  ;;  %v8325_v61 = vld [vmem:[%s10292_s3 + $0x80] sm:$0xff]   ;;  %v8236_v31 = vld [vmem:[%s10292_s3 + $0x90] sm:$0xff]  }
  0xfb   : > { %v6727_v36 = vcombine.low %v3909_v50, %v3912_v51  ;;  %v3924_v54 = vrot.slane %v3922_v29, 4  ;;  %v6428_v20 = vcombine.low %v8321_v37, %v9211_v38  ;;  %v469_v41 = vmul.f32 %v9083_v58, %v7133_v11  ;;  %v8326_v5 = vld [vmem:[#allocation2 + $0x24] sm:$0xf]  ;;  %v8328_v21 = vld [vmem:[#allocation2 + $0x30] sm:$0xf]  ;;  %v8240_v26 = vld [vmem:[%s10292_s3 + $0x98] sm:$0xff]  }
  0xfc   : > { %7506 = vmatmul.mubr.bf16.gmra.mrb[28].mxu1 %v6418_v22  ;;  %v470_v9 = vmul.f32 %v9083_v58, %v7134_v0  ;;  %v6429_v47 = vcombine.low %v8323_v39, %v9216_v18  ;;  %v3916_v44 = vsel %vm8852_vm13, %v6696_v24, %v3915_v42  ;;  %v3919_v57 = vsel %vm8852_vm13, %v3917_v27, %v3918_v53  ;;  %v9241_v1 = vld [vmem:[#allocation2 + $0x34] sm:$0xf]  ;;  %v1072_v53 = vld [vmem:[#allocation2 + $0xc0] sm:$0xf]  ;;  %v9259_v39 = vld [vmem:[#allocation2 + $0x4c] sm:$0xf] }
  0xfd   : > { %7525 = vmatprep.mubr.bf16.mxu1 %v6427_v52  ;;  %7741 = vmatprep.mubr.bf16.mxu0 %v6727_v36  ;;  %v3923_v52 = vsel %vm8852_vm13, %v6697_v28, %v3922_v29  ;;  %v3926_v58 = vsel %vm8852_vm13, %v3924_v54, %v3925_v32  ;;  %v508_v4 = vadd.f32 %v9105_v14, %v469_v41  ;;  %v1076_v28 = vld [vmem:[#allocation2 + $0xc8] sm:$0x1]  ;;  %v8244_v37 = vld [vmem:[%s10292_s3 + $0xa0] sm:$0xff]  }
  0xfe   : > { %v509_v49 = vadd.f32 %v9105_v14, %v470_v9  ;;  %v6728_v45 = vcombine.low %v3916_v44, %v3919_v57  ;;  %v6729_v33 = vcombine.low %v3923_v52, %v3926_v58  ;;  %v9238_v14 = vld [vmem:[#allocation2 + $0x28] sm:$0xf]  ;;  %v6431_v50 = vcombine.low %v8328_v21, %v9241_v1  ;;  %v9256_v41 = vld [vmem:[#allocation2 + $0x40] sm:$0xf] }
  0xff   : > { %v540_v55 = vmax.f32 %v508_v4, 0.0  ;;  %v6430_v3 = vcombine.low %v8326_v5, %v9238_v14  ;;  %v6433_v12 = vcombine.low %v8332_v7, %v9259_v39  ;;  %v2182_v5 = vrot.slane %v9195_v30, 5  ;;  %v8338_v21 = vld [vmem:[#allocation2 + $0x8] sm:$0x1] }
 0x100   : > { %v541_v16 = vmax.f32 %v509_v49, 0.0  ;;  %v8334_v49 = vld [vmem:[#allocation2 + $0x54] sm:$0xf]  ;;  %v2189_v30 = vrot.slane %v9211_v38, 5  ;;  %v2210_v7 = vrot.slane %v9241_v1, 5 }
 0x101   : > { %v7037_v8 = vpack.c.bf16 %v540_v55, %v540_v55 }
 0x102   : > { %v7038_v22 = vpack.c.bf16 %v541_v16, %v541_v16  ;;  %7742 = vmatmul.mubr.bf16.gmra.mrb[24].mxu0 %v6728_v45  ;;  %v9268_v45 = vld [vmem:[#allocation2 + $0x58] sm:$0xf] }
 0x103   : > { %v897_v13 = vshrl.u32 %v7037_v8, 16  ;;  %v900_v34 = vshll.u32 %v7037_v8, 16  ;;  %7745 = vmatprep.mubr.bf16.mxu0 %v6729_v33  ;;  %v6434_v55 = vcombine.low %v8334_v49, %v9268_v45  ;;  %v8336_v33 = vld [vmem:[#allocation2 + $0x60] sm:$0xf] }
 0x104   : > { %7526 = vmatmul.mubr.bf16.vlgmr.msra.gmra.mrb[0].mxu1 %v6428_v20  ;;  %v905_v42 = vshrl.u32 %v7038_v22, 16  ;;  %v908_v15 = vshll.u32 %v7038_v22, 16  ;;  %v8330_v20 = vld [vmem:[#allocation2 + $0x3c] sm:$0xf] }
 0x105   : > { %7558 = vmatpush3.bf16.msra.mxu1 %v8325_v61  ;;  %7529 = vmatprep.mubr.bf16.mxu1 %v6429_v47  ;;  %v899_v24 = vrot.slane %v897_v13, 7  ;;  %v6432_v9 = vcombine.low %v8330_v20, %v9256_v41  ;;  %v8256_v47 = vld [vmem:[%s10292_s3 + $0xb0] sm:$0xff]   ;;  %v8262_v22 = vld [vmem:[%s10292_s3 + $0xb8] sm:$0xff]   ;;  %v3282_v13 = vshrl.u32 %v9169_v48, 16 }
 0x106   : > { %7559 = vmatprep.subr.bf16.mxu1 %v8232_v19  ;;  %v907_v27 = vrot.slane %v905_v42, 7  ;;  %v8245_v42 = vld [vmem:[#allocation2 + $0x18] sm:$0xff]   ;;  %v9300_v20 = vld [vmem:[#allocation2 + $0x70] sm:$0xf] }
 0x107   : > { %v902_v29 = vor.u32 %v900_v34, %v899_v24  ;;  %v903_v51 = vrot.slane %v899_v24, 4 }
 0x108   : > { %v910_v32 = vor.u32 %v908_v15, %v907_v27  ;;  %v912_v11 = vrot.slane %v907_v27, 4  ;;  %v2129_v15 = vld [vmem:[#allocation2] sm:$0xe] }
 0x109   : > { %7560 = vmatpush3.bf16.msra.mxu1 %v8232_v19  ;;  %v1073_v36 = vsel %vm8585_vm10, %v902_v29, %v1072_v53  ;;  %v2130_v53 = vld [vmem:[#allocation2 + $0xc] sm:$0xe]  ;;  %v2196_v29 = vrot.slane %v9216_v18, 5  ;;  %v2133_v18 = vld [vmem:[#allocation2 + $0x30] sm:$0xe] }
 0x10a   : > { %7561 = vmatprep.subr.bf16.mxu1 %v8236_v31  ;;  %v911_v0 = vsel %vm8579_vm9, %v903_v51, %v910_v32  ;;  %v1077_v54 = vsel %vm8569_vm8, %v912_v11, %v1076_v28  ;;  %1074 = vst [vmem:[#allocation2 + $0xc0] sm:$0xf] %v1073_v36  ;;  %v2131_v28 = vld [vmem:[#allocation2 + $0x18] sm:$0xe]  ;;  %v6451_v32 = vrot.slane %v2129_v15, 9  ;;  %v2184_v11 = vrot.slane %v2182_v5, 4 }
 0x10b   : > { %1075 = vst [vmem:[#allocation2 + $0xc4] sm:$0xf] %v911_v0  ;;  %1078 = vst [vmem:[#allocation2 + $0xc8] sm:$0x1] %v1077_v54  ;;  %v2132_v0 = vld [vmem:[#allocation2 + $0x24] sm:$0xe] }
 0x10c   : > { %7530 = vmatmul.mubr.bf16.gmra.mrb[4].mxu1 %v6430_v3  ;;  %v3278_v3 = vshll.u32 %v9169_v48, 16  ;;  %v9291_v48 = vld [vmem:[%s10292_s3 + $0xc0] sm:$0xff]   ;;  %v2203_v36 = vrot.slane %v9238_v14, 5  ;;  %v9298_v54 = vrot.slane %v3282_v13, 4  ;;  %v6452_v14 = vrot.slane %v2130_v53, 9 }
 0x10d   : > { %7533 = vmatprep.mubr.bf16.mxu1 %v6431_v50  ;;  %7562 = vmatpush3.bf16.msra.mxu1 %v8236_v31  ;;  %v9273_v31 = vld [vmem:[#allocation2 + $0x64] sm:$0xf]  ;;  %v2185_v50 = vrot.slane %v8338_v21, 5  ;;  %v9309_v1 = vsel %vm8852_vm13, %v6451_v32, %v2182_v5  ;;  %v6455_v13 = vrot.slane %v2133_v18, 9  ;;  %v8346_v15 = vld [vmem:[#allocation2 + $0x38] sm:$0x1] }
 0x10e   : > { %7563 = vmatprep.subr.bf16.mxu1 %v8240_v26  ;;  %v6435_v8 = vcombine.low %v8336_v33, %v9273_v31  ;;  %v9296_v38 = vrot.slane %v3278_v3, 5  ;;  %v2134_v33 = vld [vmem:[#allocation2 + $0x3c] sm:$0xe]  ;;  %v2205_v3 = vrot.slane %v2203_v36, 4  ;;  %v2213_v21 = vrot.slane %v8346_v15, 5  ;;  %v8252_v5 = vld [vmem:[%s10292_s3 + $0x1c8] sm:$0xff]  }
 0x10f   : > { %v6811_v32 = vld [vmem:[#allocation2 + $0x18] sm:$0xf]  ;;  %v2217_v18 = vrot.slane %v9256_v41, 5  ;;  %v2224_v41 = vrot.slane %v9259_v39, 5  ;;  %v8348_v15 = vld [vmem:[#allocation2 + $0x50] sm:$0x1] }
 0x110   : > { %v8264_v39 = vld [vmem:[%s10292_s3 + $0x1d8] sm:$0xff]   ;;  %v6813_v51 = vld [vmem:[#allocation2 + $0x20] sm:$0x1]  ;;  %v2138_v53 = vld [vmem:[#allocation2 + $0x6c] sm:$0xe] }
 0x111   : > { %7564 = vmatpush3.bf16.msra.mxu1 %v8240_v26  ;;  %v6682_v19 = vld [vmem:[#allocation2 + $0xc0] sm:$0xe]  ;;  %v9284_v26 = vld [vmem:[#allocation2 + $0x14] sm:$0x1] }
 0x112   : > { %7565 = vmatprep.subr.bf16.mxu1 %v8244_v37  ;;  %v6625_v44 = vld [vmem:[#allocation2 + $0xc4] sm:$0xf]  ;;  %v6626_v57 = vld [vmem:[#allocation2 + $0xc8] sm:$0x1]  ;;  %v6698_v52 = vrot.slane %v6682_v19, 9  ;;  %v2192_v24 = vrot.slane %v9284_v26, 5  ;;  %v6440_v26 = vcombine.low %v9118_v63, %v9120_v59 }
 0x113   : > { %v3929_v58 = vrot.slane %v6625_v44, 5  ;;  %v3932_v4 = vrot.slane %v6626_v57, 5  ;;  %v2191_v57 = vrot.slane %v2189_v30, 4  ;;  %v6453_v19 = vrot.slane %v2131_v28, 9  ;;  %v6821_v63 = vld [vmem:[#allocation2 + $0x40] sm:$0xf] }
 0x114   : > { %7534 = vmatmul.mubr.bf16.gmra.mrb[8].mxu1 %v6432_v9  ;;  %v9335_v28 = vsel %vm8852_vm13, %v6452_v14, %v2189_v30  ;;  %v9355_v30 = vsel %vm8852_vm13, %v6455_v13, %v2210_v7  ;;  %v8253_v14 = vld [vmem:[#allocation2 + $0x3c] sm:$0xff]   ;;  %v2219_v13 = vrot.slane %v2217_v18, 4 }
 0x115   : > { %7537 = vmatprep.mubr.bf16.mxu1 %v6433_v12  ;;  %7566 = vmatpush3.bf16.msra.mxu1 %v8244_v37  ;;  %v3930_v16 = vsel %vm8852_vm13, %v6698_v52, %v3929_v58  ;;  %v3931_v61 = vrot.slane %v3929_v58, 4  ;;  %v8340_v37 = vld [vmem:[#allocation2 + $0x6c] sm:$0xf]  ;;  %v8247_v12 = vld [vmem:[#allocation2 + $0x24] sm:$0xff]   ;;  %v8251_v52 = vld [vmem:[#allocation2 + $0x30] sm:$0xff]   ;;  %v2198_v58 = vrot.slane %v2196_v29, 4 }
 0x116   : > { %7567 = vmatprep.subr.bf16.mxu1 %v8250_v2  ;;  %v6436_v9 = vcombine.low %v8340_v37, %v9300_v20 }
 0x117   : > { %v3933_v34 = vsel %vm8852_vm13, %v3931_v61, %v3932_v4  ;;  %v8344_v4 = vld [vmem:[#allocation2 + $0x20] sm:$0x1] }
 0x118   : > { %v6730_v27 = vcombine.low %v3930_v16, %v3933_v34  ;;  %v2199_v49 = vrot.slane %v8344_v4, 5  ;;  %v8345_v16 = vld [vmem:[#allocation2 + $0x2c] sm:$0x1]  ;;  %v6438_v34 = vcombine.low %v9035_v43, %v9040_v60  ;;  %v6442_v43 = vcombine.low %v9175_v62, %v9179_v40  ;;  %v2135_v60 = vld [vmem:[#allocation2 + $0x48] sm:$0xe] }
 0x119   : > { %7568 = vmatpush3.bf16.msra.mxu1 %v8250_v2  ;;  %v8342_v2 = vld [vmem:[#allocation2 + $0x78] sm:$0xf]  ;;  %v2206_v61 = vrot.slane %v8345_v16, 5  ;;  %v8257_v4 = vld [vmem:[#allocation2 + $0x48] sm:$0xff]  }
 0x11a   : > { %7569 = vmatprep.subr.bf16.mxu1 %v8256_v47  ;;  %7746 = vmatmul.mubr.bf16.gmra.mrb[28].mxu0 %v6730_v27  ;;  %v6441_v27 = vcombine.low %v9145_v6, %v9157_v10 }
 0x11b   : > { %7765 = vmatprep.mubr.bf16.mxu0 %v8245_v42  ;;  %v2212_v42 = vrot.slane %v2210_v7, 4  ;;  %v8258_v7 = vld [vmem:[%s10292_s3 + $0x1d0] sm:$0xff]  }
 0x11c   : > { %7538 = vmatmul.mubr.bf16.gmra.mrb[12].mxu1 %v6434_v55  ;;  %v6454_v55 = vrot.slane %v2132_v0, 9  ;;  %v9347_v0 = vsel %vm8852_vm13, %v2198_v58, %v2199_v49 }
 0x11d   : > { %7541 = vmatprep.mubr.bf16.mxu1 %v6435_v8  ;;  %7570 = vmatpush3.bf16.msra.mxu1 %v8256_v47  ;;  %v9304_v47 = vld [vmem:[#allocation2 + $0x7c] sm:$0xf]  ;;  %v9313_v8 = vsel %vm8852_vm13, %v2184_v11, %v2185_v50  ;;  %v6439_v50 = vcombine.low %v9098_v23, %v9111_v17  ;;  %v9339_v23 = vsel %vm8852_vm13, %v2191_v57, %v2192_v24  ;;  %v6456_v24 = vrot.slane %v2134_v33, 9 }
 0x11e   : > { %7571 = vmatprep.subr.bf16.mxu1 %v8262_v22  ;;  %v6437_v44 = vcombine.low %v8342_v2, %v9304_v47  ;;  %v9343_v17 = vsel %vm8852_vm13, %v6453_v19, %v2196_v29  ;;  %v6812_v11 = vld [vmem:[#allocation2 + $0x1c] sm:$0xf]  ;;  %v9351_v37 = vsel %vm8852_vm13, %v6454_v55, %v2203_v36  ;;  %v9360_v29 = vsel %vm8852_vm13, %v2205_v3, %v2206_v61  ;;  %v2136_v61 = vld [vmem:[#allocation2 + $0x54] sm:$0xe]  ;;  %v6814_v3 = vld [vmem:[#allocation2 + $0x24] sm:$0xf] }
 0x11f   : > { %v6457_v36 = vrot.slane %v2135_v60, 9  ;;  %v4698_v2 = vshll.u32 %v6811_v32, 16  ;;  %v9381_v16 = vsel %vm8852_vm13, %v6456_v24, %v2217_v18  ;;  %v2231_v33 = vrot.slane %v9268_v45, 5 }
 0x120   : > { %v2238_v60 = vrot.slane %v9273_v31, 5  ;;  %v6458_v18 = vrot.slane %v2136_v61, 9  ;;  %v4719_v55 = vshrl.u32 %v6814_v3, 16  ;;  %v10317_v62 = vcombine.low %v9309_v1, %v9313_v8  ;;  %v9493_v1 = vld [vmem:[%s10292_s3 + $0x200] sm:$0xff]  }
 0x121   : > { %7572 = vmatpush3.bf16.msra.mxu1 %v8262_v22  ;;  %v4700_v24 = vrot.slane %v4698_v2, 5  ;;  %v2226_v22 = vrot.slane %v2224_v41, 4  ;;  %v2233_v49 = vrot.slane %v2231_v33, 4  ;;  %v8350_v2 = vld [vmem:[#allocation2 + $0x68] sm:$0x1]  ;;  %10319 = vst [vmem:[#allocation4_spill] sm:$0xff] %v9493_v1 }
 0x122   : > { %7605 = vmatprep.subr.bf16.mxu1 %v9291_v48  ;;  %7766 = vmatmul.mubr.bf16.vlgmr.msra.gmra.mrb[0].mxu0 %v8247_v12  ;;  %v4695_v12 = vshrl.u32 %v6811_v32, 16  ;;  %v6815_v32 = vld [vmem:[#allocation2 + $0x28] sm:$0xf] }
 0x123   : > { %7798 = vmatpush3.bf16.msra.mxu0 %v9090_v25  ;;  %7769 = vmatprep.mubr.bf16.mxu0 %v8251_v52  ;;  %v4704_v25 = vshll.u32 %v6812_v11, 16  ;;  %v8347_v52 = vld [vmem:[#allocation2 + $0x44] sm:$0x1]  ;;  %v4728_v31 = vshll.u32 %v6815_v32, 16  ;;  %v4732_v57 = vshrl.u32 %v6815_v32, 16 }
 0x124   : > { %7542 = vmatmul.mubr.bf16.gmra.mrb[16].mxu1 %v6436_v9  ;;  %v9364_v9 = vsel %vm8852_vm13, %v2212_v42, %v2213_v21  ;;  %7799 = vmatprep.subr.bf16.mxu0 %v8252_v5  ;;  %v2220_v58 = vrot.slane %v8347_v52, 5  ;;  %v9389_v42 = vsel %vm8852_vm13, %v6457_v36, %v2224_v41  ;;  %v2227_v21 = vrot.slane %v8348_v15, 5  ;;  %v8349_v15 = vld [vmem:[#allocation2 + $0x5c] sm:$0x1] }
 0x125   : > { %7545 = vmatprep.mubr.bf16.mxu1 %v6437_v44  ;;  %v4708_v44 = vshrl.u32 %v6812_v11, 16  ;;  %v2137_v11 = vld [vmem:[#allocation2 + $0x60] sm:$0xe]  ;;  %v4697_v45 = vrot.slane %v4695_v12, 4  ;;  %v4722_v36 = vshll.u32 %v6814_v3, 16  ;;  %v2234_v19 = vrot.slane %v8349_v15, 5 }
 0x126   : > { %v2240_v12 = vrot.slane %v2238_v60, 4  ;;  %v9405_v61 = vsel %vm8852_vm13, %v2226_v22, %v2227_v21  ;;  %v4721_v3 = vrot.slane %v4719_v55, 4  ;;  %v8263_v15 = vld [vmem:[#allocation2 + $0x60] sm:$0xff]   ;;  %v4734_v22 = vrot.slane %v4732_v57, 4 }
 0x127   : > { %7800 = vmatpush3.bf16.msra.mxu0 %v8252_v5  ;;  %v9392_v5 = vrot.slane %v4704_v25, 5  ;;  %v4710_v52 = vrot.slane %v4708_v44, 4  ;;  %v2241_v25 = vrot.slane %v8350_v2, 5  ;;  %v8268_v44 = vld [vmem:[%s10292_s3 + $0x1e0] sm:$0xff]   ;;  %v4701_v41 = vor.u32 %v4700_v24, %v4697_v45  ;;  %v8351_v24 = vld [vmem:[#allocation2 + $0x74] sm:$0x1] }
 0x128   : > { %7801 = vmatprep.subr.bf16.mxu0 %v8258_v7  ;;  %v4724_v32 = vrot.slane %v4722_v36, 5  ;;  %v9418_v45 = vrot.slane %v4728_v31, 5  ;;  %v6817_v36 = vld [vmem:[#allocation2 + $0x30] sm:$0xf]  ;;  %v2140_v2 = vld [vmem:[#allocation2 + $0x84] sm:$0xe] }
 0x129   : > { %v9426_v55 = vsel %vm8852_vm13, %v2240_v12, %v2241_v25  ;;  %v4743_v25 = vshrl.u32 %v6817_v36, 16 }
 0x12a   : > { %7770 = vmatmul.mubr.bf16.gmra.mrb[4].mxu0 %v8253_v14  ;;  %v9400_v14 = vsel %vm8852_vm13, %v2219_v13, %v2220_v58  ;;  %v8272_v58 = vld [vmem:[%s10292_s3 + $0x1e8] sm:$0xff]   ;;  %v9416_v13 = vsel %vm8852_vm13, %v2233_v49, %v2234_v19  ;;  %v2139_v49 = vld [vmem:[#allocation2 + $0x78] sm:$0xe]  ;;  %v4725_v59 = vor.u32 %v4724_v32, %v4721_v3  ;;  %v4735_v6 = vor.u32 %v4734_v22, %v9418_v45  ;;  %v8352_v3 = vld [vmem:[#allocation2 + $0x80] sm:$0x1] }
 0x12b   : > { %7773 = vmatprep.mubr.bf16.mxu0 %v8257_v4  ;;  %7802 = vmatpush3.bf16.msra.mxu0 %v8258_v7  ;;  %v4711_v4 = vor.u32 %v4710_v52, %v9392_v5  ;;  %v4714_v7 = vshll.u32 %v6813_v51, 16  ;;  %v6460_v51 = vrot.slane %v2138_v53, 9  ;;  %v2248_v52 = vrot.slane %v8351_v24, 5  ;;  %v8353_v22 = vld [vmem:[#allocation2 + $0x88] sm:$0xf] }
 0x12c   : > { %7546 = vmatmul.mubr.bf16.gmra.mrb[20].mxu1 %v6438_v34  ;;  %v6459_v34 = vrot.slane %v2137_v11, 9  ;;  %7803 = vmatprep.subr.bf16.mxu0 %v8264_v39  ;;  %v8259_v11 = vld [vmem:[#allocation2 + $0x54] sm:$0xff]   ;;  %v4702_v53 = vrot.slane %v4701_v41, 4  ;;  %v6461_v12 = vrot.slane %v2139_v49, 9  ;;  %v4746_v41 = vshll.u32 %v6817_v36, 16 }
 0x12d   : > { %7549 = vmatprep.mubr.bf16.mxu1 %v6439_v50  ;;  %v2245_v50 = vrot.slane %v9300_v20, 5  ;;  %v9409_v20 = vsel %vm8852_vm13, %v6458_v18, %v2231_v33  ;;  %v6816_v18 = vld [vmem:[#allocation2 + $0x2c] sm:$0x1]  ;;  %v4712_v57 = vrot.slane %v4711_v4, 4  ;;  %v4716_v19 = vrot.slane %v4714_v7, 5 }
 0x12e   : > { %v9422_v33 = vsel %vm8852_vm13, %v6459_v34, %v2238_v60  ;;  %v4738_v10 = vshll.u32 %v6816_v18, 16  ;;  %v4707_v4 = vsel %vm8536_vm2, %v4702_v53, %v9392_v5  ;;  %v2255_v32 = vrot.slane %v8352_v3, 5  ;;  %v8267_v18 = vld [vmem:[#allocation2 + $0x78] sm:$0xff]   ;;  %v2141_v36 = vld [vmem:[#allocation2 + $0x90] sm:$0xe] }
 0x12f   : > { %7804 = vmatpush3.bf16.msra.mxu0 %v8264_v39  ;;  %v2247_v21 = vrot.slane %v2245_v50, 4  ;;  %v2252_v39 = vrot.slane %v9304_v47, 5  ;;  %v9445_v47 = vsel %vm8852_vm13, %v6460_v51, %v2245_v50  ;;  %v8276_v50 = vld [vmem:[%s10292_s3 + $0x1f0] sm:$0xff]   ;;  %v4726_v51 = vrot.slane %v4725_v59, 4  ;;  %v6819_v53 = vld [vmem:[#allocation2 + $0x38] sm:$0x1] }
 0x130   : > { %7805 = vmatprep.subr.bf16.mxu0 %v8268_v44  ;;  %v4736_v49 = vrot.slane %v4735_v6, 4  ;;  %v6462_v5 = vrot.slane %v2140_v2, 9  ;;  %v8280_v59 = vld [vmem:[%s10292_s3 + $0x1f8] sm:$0xff]  }
 0x131   : > { %v9450_v34 = vsel %vm8852_vm13, %v2247_v21, %v2248_v52  ;;  %v2254_v7 = vrot.slane %v2252_v39, 4  ;;  %v2259_v21 = vrot.slane %v8353_v22, 5  ;;  %v9472_v6 = vsel %vm8852_vm13, %v6461_v12, %v2252_v39  ;;  %v9486_v12 = vld [vmem:[#allocation2 + $0x4c] sm:$0xf] }
 0x132   : > { %7774 = vmatmul.mubr.bf16.gmra.mrb[8].mxu0 %v8259_v11  ;;  %v6820_v11 = vld [vmem:[#allocation2 + $0x3c] sm:$0xf]  ;;  %10318 = vst [vmem:[#allocation3_spill] sm:$0xff] %v9486_v12 }
 0x133   : > { %7777 = vmatprep.mubr.bf16.mxu0 %v8263_v15  ;;  %7806 = vmatpush3.bf16.msra.mxu0 %v8268_v44  ;;  %v4717_v44 = vsel %vm8536_vm2, %v4712_v57, %v4716_v19  ;;  %v8265_v15 = vld [vmem:[#allocation2 + $0x6c] sm:$0xff]   ;;  %v4745_v57 = vrot.slane %v4743_v25, 4  ;;  %v4748_v19 = vrot.slane %v4746_v41, 5  ;;  %v4767_v3 = vshrl.u32 %v6820_v11, 16  ;;  %v6823_v25 = vld [vmem:[#allocation2 + $0x48] sm:$0xf] }
 0x134   : > { %7550 = vmatmul.mubr.bf16.gmra.mrb[24].mxu1 %v6440_v26  ;;  %7807 = vmatprep.subr.bf16.mxu0 %v8272_v58  ;;  %v4740_v26 = vrot.slane %v4738_v10, 5  ;;  %v4770_v31 = vshll.u32 %v6820_v11, 16  ;;  %v8354_v10 = vld [vmem:[#allocation2 + $0x8c] sm:$0x1]  ;;  %v2261_v41 = vrot.slane %v2259_v21, 4  ;;  %v4780_v11 = vshrl.u32 %v6821_v63, 16 }
 0x135   : > { %7553 = vmatprep.mubr.bf16.mxu1 %v6441_v27  ;;  %v6818_v27 = vld [vmem:[#allocation2 + $0x34] sm:$0xf]  ;;  %v2262_v2 = vrot.slane %v8354_v10, 5  ;;  %v9497_v8 = vsel %vm8852_vm13, %v6462_v5, %v2259_v21 }
 0x136   : > { %v4752_v24 = vshll.u32 %v6818_v27, 16  ;;  %v4756_v52 = vshrl.u32 %v6818_v27, 16  ;;  %v9468_v27 = vcombine.low %v4707_v4, %v4717_v44  ;;  %v4741_v44 = vsel %vm8536_vm2, %v4736_v49, %v4740_v26  ;;  %v8270_v49 = vld [vmem:[%s10292_s3 + $0xc8] sm:$0xff]  }
 0x137   : > { %7808 = vmatpush3.bf16.msra.mxu0 %v8272_v58  ;;  %v9476_v58 = vsel %vm8852_vm13, %v2254_v7, %v2255_v32  ;;  %v4762_v7 = vshll.u32 %v6819_v53, 16  ;;  %v4776_v32 = vshll.u32 %v6821_v63, 16  ;;  %v4772_v22 = vrot.slane %v4770_v31, 5 }
 0x138   : > { %7809 = vmatprep.subr.bf16.mxu0 %v8276_v50  ;;  %v9484_v4 = vrot.slane %v4752_v24, 5  ;;  %v4758_v39 = vrot.slane %v4756_v52, 4  ;;  %v4791_v26 = vshrl.u32 %v6823_v25, 16  ;;  %v4794_v24 = vshll.u32 %v6823_v25, 16  ;;  %v6826_v52 = vld [vmem:[#allocation2 + $0x54] sm:$0xf] }
 0x139   : > { %v4800_v63 = vshll.u32 %v9486_v12, 16  ;;  %v9510_v31 = vsel %vm8852_vm13, %v2261_v41, %v2262_v2  ;;  %v9517_v25 = vld [vmem:[#allocation2 + $0x58] sm:$0xf]  ;;  %v4815_v21 = vshrl.u32 %v6826_v52, 16  ;;  %v4818_v60 = vshll.u32 %v6826_v52, 16 }
 0x13a   : > { %7778 = vmatmul.mubr.bf16.gmra.mrb[12].mxu0 %v8265_v15  ;;  %v4769_v15 = vrot.slane %v4767_v3, 4  ;;  %v4759_v5 = vor.u32 %v4758_v39, %v9484_v4  ;;  %v4782_v3 = vrot.slane %v4780_v11, 4  ;;  %10320 = vst [vmem:[#allocation5_spill] sm:$0xff] %v9517_v25  ;;  %v10321_v2 = vcombine.low %v9335_v28, %v9339_v23 }
 0x13b   : > { %7781 = vmatprep.mubr.bf16.mxu0 %v8267_v18  ;;  %7810 = vmatpush3.bf16.msra.mxu0 %v8276_v50  ;;  %v4804_v50 = vshrl.u32 %v9486_v12, 16  ;;  %v8269_v18 = vld [vmem:[#allocation2 + $0x84] sm:$0xff]   ;;  %v4793_v41 = vrot.slane %v4791_v26, 4  ;;  %v4796_v39 = vrot.slane %v4794_v24, 5  ;;  %v4824_v28 = vshll.u32 %v9517_v25, 16 }
 0x13c   : > { %7554 = vmatmul.mubr.bf16.gmra.mrb[28].mxu1 %v6442_v43  ;;  %v4731_v43 = vsel %vm8536_vm2, %v4726_v51, %v9418_v45  ;;  %v4749_v45 = vor.u32 %v4748_v19, %v4745_v57  ;;  %v6822_v51 = vld [vmem:[#allocation2 + $0x44] sm:$0x1]  ;;  %7811 = vmatprep.subr.bf16.mxu0 %v8280_v59  ;;  %v9513_v57 = vrot.slane %v4762_v7, 5  ;;  %v9515_v19 = vrot.slane %v4776_v32, 5 }
 0x13d   : > { %7573 = vmatprep.mubr.bf16.mxu1 %v10317_v62  ;;  %v9504_v53 = vcombine.low %v4731_v43, %v4741_v44  ;;  %v4786_v10 = vshll.u32 %v6822_v51, 16  ;;  %v8271_v62 = vld [vmem:[#allocation2 + $0x90] sm:$0xff]   ;;  %v4773_v44 = vor.u32 %v4772_v22, %v4769_v15  ;;  %v9523_v7 = vrot.slane %v4800_v63, 5 }
 0x13e   : > { %v4750_v43 = vrot.slane %v4749_v45, 4  ;;  %v4806_v32 = vrot.slane %v4804_v50, 4  ;;  %v4760_v11 = vrot.slane %v4759_v5, 4  ;;  %v8355_v45 = vld [vmem:[#allocation2 + $0x94] sm:$0xf]  ;;  %v4828_v23 = vshrl.u32 %v9517_v25, 16 }
 0x13f   : > { %7812 = vmatpush3.bf16.msra.mxu0 %v8280_v59  ;;  %v10322_v59 = vcombine.low %v9343_v17, %v9347_v0  ;;  %v2266_v51 = vrot.slane %v8355_v45, 5  ;;  %v9529_v15 = vld [vmem:[#allocation2 + $0x50] sm:$0x1]  ;;  %v9537_v26 = vrot.slane %v4786_v10, 5  ;;  %v6463_v17 = vrot.slane %v2141_v36, 9  ;;  %v8273_v36 = vld [vmem:[#allocation2 + $0x9c] sm:$0xff]  }
 0x140   : > { %7845 = vmatprep.subr.bf16.mxu0 %v9493_v1  ;;  %10323 = vst [vmem:[#allocation6_spill] sm:$0xff] %v9529_v15  ;;  %v8274_v22 = vld [vmem:[%s10292_s3 + $0xd0] sm:$0xff]   ;;  %v8356_v0 = vld [vmem:[#allocation2 + $0xa0] sm:$0xf]  ;;  %v4755_v63 = vsel %vm8536_vm2, %v4750_v43, %v9484_v4  ;;  %v8357_v50 = vld [vmem:[#allocation2 + $0x98] sm:$0x1]  ;;  %v4797_v45 = vor.u32 %v4796_v39, %v4793_v41  ;;  %v4765_v4 = vsel %vm8536_vm2, %v4760_v11, %v9513_v57 }
 0x141   : > { %v2273_v24 = vrot.slane %v8356_v0, 5  ;;  %v2269_v52 = vrot.slane %v8357_v50, 5  ;;  %v4817_v5 = vrot.slane %v4815_v21, 4  ;;  %v4810_v10 = vshll.u32 %v9529_v15, 16  ;;  %v8275_v50 = vld [vmem:[#allocation2 + $0xa8] sm:$0xff]  }
 0x142   : > { %7782 = vmatmul.mubr.bf16.gmra.mrb[16].mxu0 %v8269_v18  ;;  %v2142_v18 = vld [vmem:[#allocation2 + $0x9c] sm:$0xe]  ;;  %v2268_v43 = vrot.slane %v2266_v51, 4  ;;  %v9552_v21 = vrot.slane %v4824_v28, 5  ;;  %v9560_v15 = vsel %vm8852_vm13, %v6463_v17, %v2266_v51  ;;  %v8359_v11 = vld [vmem:[#allocation2 + $0xac] sm:$0xf]  ;;  %v10325_v25 = vcombine.low %v9355_v30, %v9364_v9 }
 0x143   : > { %7785 = vmatprep.mubr.bf16.mxu0 %v8271_v62  ;;  %v8278_v62 = vld [vmem:[%s10292_s3 + $0xd8] sm:$0xff]   ;;  %v6464_v41 = vrot.slane %v2142_v18, 9  ;;  %v2275_v39 = vrot.slane %v2273_v24, 4  ;;  %v2280_v28 = vrot.slane %v8359_v11, 5  ;;  %v4798_v18 = vrot.slane %v4797_v45, 4  ;;  %v8282_v30 = vld [vmem:[%s10292_s3 + $0xe0] sm:$0xff]  }
 0x144   : > { %7574 = vmatmul.mubr.bf16.vlgmr.msra.gmra.mrb[0].mxu1 %v10321_v2  ;;  %v4820_v2 = vrot.slane %v4818_v60, 5  ;;  %v4830_v60 = vrot.slane %v4828_v23, 4  ;;  %v10324_v23 = vcombine.low %v9351_v37, %v9360_v29  ;;  %v4812_v12 = vrot.slane %v4810_v10, 5  ;;  %v2143_v1 = vld [vmem:[#allocation2 + $0xa8] sm:$0xe] }
 0x145   : > { %7606 = vmatpush3.bf16.msra.mxu1 %v9291_v48  ;;  %7577 = vmatprep.mubr.bf16.mxu1 %v10322_v59  ;;  %v4783_v48 = vor.u32 %v4782_v3, %v9515_v19  ;;  %v9542_v59 = vrot.slane %v4773_v44, 4  ;;  %v4807_v3 = vor.u32 %v4806_v32, %v9523_v7  ;;  %v8358_v32 = vld [vmem:[#allocation2 + $0xa4] sm:$0x1]  ;;  %v9576_v37 = vsel %vm8852_vm13, %v2268_v43, %v2269_v52  ;;  %v8360_v45 = vld [vmem:[#allocation2 + $0xb0] sm:$0x1] }
 0x146   : > { %7607 = vmatprep.subr.bf16.mxu1 %v8270_v49  ;;  %v2276_v0 = vrot.slane %v8358_v32, 5  ;;  %v4821_v57 = vor.u32 %v4820_v2, %v4817_v5  ;;  %v4831_v29 = vor.u32 %v4830_v60, %v9552_v21  ;;  %v10326_v5 = vshll.u32 %v9171_v46, 16  ;;  %v6829_v46 = vld [vmem:[#allocation2 + $0x60] sm:$0xf]  ;;  %v9600_v10 = vld [vmem:[#allocation2 + $0x64] sm:$0xf] }
 0x147   : > { %v4784_v44 = vrot.slane %v4783_v48, 4  ;;  %v9565_v48 = vcombine.low %v4755_v63, %v4765_v4  ;;  %v4808_v32 = vrot.slane %v4807_v3, 4  ;;  %v4779_v51 = vsel %vm8536_vm2, %v9542_v59, %v9515_v19  ;;  %v2144_v63 = vld [vmem:[#allocation2 + $0xb4] sm:$0xe] }
 0x148   : > { %v9582_v2 = vrot.slane %v10326_v5, 5  ;;  %v9592_v19 = vsel %vm8852_vm13, %v6464_v41, %v2273_v24  ;;  %v6465_v52 = vrot.slane %v2143_v1, 9  ;;  %v2282_v59 = vrot.slane %v2280_v28, 4  ;;  %v8277_v41 = vld [vmem:[#allocation2 + $0xb4] sm:$0xff]  }
 0x149   : > { %7608 = vmatpush3.bf16.msra.mxu1 %v8270_v49  ;;  %v9554_v49 = vld [vmem:[#allocation2 + $0x5c] sm:$0x1]  ;;  %v4789_v9 = vsel %vm8536_vm2, %v4784_v44, %v9537_v26  ;;  %10328 = vst [vmem:[#allocation8_spill] sm:$0xff] %v9592_v19  ;;  %v2283_v3 = vrot.slane %v8360_v45, 5  ;;  %v4803_v26 = vsel %vm8536_vm2, %v4798_v18, %v9523_v7  ;;  %v4813_v24 = vsel %vm8536_vm2, %v4808_v32, %v4812_v12  ;;  %v6832_v32 = vld [vmem:[#allocation2 + $0x6c] sm:$0xf] }
 0x14a   : > { %7609 = vmatprep.subr.bf16.mxu1 %v8274_v22  ;;  %v4834_v17 = vshll.u32 %v9554_v49, 16  ;;  %10327 = vst [vmem:[#allocation7_spill] sm:$0xff] %v9582_v2  ;;  %7786 = vmatmul.mubr.bf16.gmra.mrb[20].mxu0 %v8273_v36  ;;  %v6466_v36 = vrot.slane %v2144_v63, 9  ;;  %v2287_v4 = vrot.slane %v9179_v40, 5  ;;  %v9608_v43 = vrot.slane %v4831_v29, 4 }
 0x14b   : > { %7789 = vmatprep.mubr.bf16.mxu0 %v8275_v50  ;;  %v4839_v1 = vshrl.u32 %v6829_v46, 16  ;;  %v4842_v44 = vshll.u32 %v6829_v46, 16  ;;  %v9615_v7 = vcombine.low %v4779_v51, %v4789_v9  ;;  %v4848_v40 = vshll.u32 %v9600_v10, 16  ;;  %v8279_v50 = vld [vmem:[#allocation2 + $0xc0] sm:$0xff]   ;;  %v9635_v51 = vld [vmem:[#allocation2 + $0x70] sm:$0xf] }
 0x14c   : > { %7578 = vmatmul.mubr.bf16.gmra.mrb[4].mxu1 %v10324_v23  ;;  %v9610_v60 = vrot.slane %v4834_v17, 5  ;;  %v9625_v11 = vcombine.low %v4803_v26, %v4813_v24  ;;  %v9633_v18 = vsel %vm8852_vm13, %v6465_v52, %v2280_v28  ;;  %10331 = vst [vmem:[#allocation11_spill] sm:$0xff] %v9635_v51  ;;  %v10332_v29 = vcombine.low %v9381_v16, %v9400_v14  ;;  %v8361_v9 = vld [vmem:[#allocation2 + $0xbc] sm:$0x1]  ;;  %v6835_v28 = vld [vmem:[#allocation2 + $0x78] sm:$0xf] }
 0x14d   : > { %7581 = vmatprep.mubr.bf16.mxu1 %v10325_v25  ;;  %7610 = vmatpush3.bf16.msra.mxu1 %v8274_v22  ;;  %v9596_v25 = vsel %vm8852_vm13, %v2275_v39, %v2276_v0  ;;  %v9598_v22 = vrot.slane %v4821_v57, 4  ;;  %v8284_v39 = vld [vmem:[%s10292_s3 + $0xe8] sm:$0xff]   ;;  %v9642_v17 = vsel %vm8852_vm13, %v2282_v59, %v2283_v3  ;;  %v9646_v63 = vsel %vm8852_vm13, %v6466_v36, %v2287_v4  ;;  %v9648_v52 = vld [vmem:[#allocation2 + $0x7c] sm:$0xf]  ;;  %v8286_v16 = vld [vmem:[%s10292_s3 + $0xf0] sm:$0xff]  }
 0x14e   : > { %7611 = vmatprep.subr.bf16.mxu1 %v8278_v62  ;;  %10329 = vst [vmem:[#allocation9_spill] sm:$0xff] %v9596_v25  ;;  %v9619_v0 = vld [vmem:[#allocation2 + $0x68] sm:$0x1]  ;;  %v2289_v5 = vrot.slane %v2287_v4, 4  ;;  %v2290_v46 = vrot.slane %v8361_v9, 5  ;;  %10333 = vst [vmem:[#allocation12_spill] sm:$0xff] %v9648_v52  ;;  %v10334_v45 = vcombine.low %v9389_v42, %v9405_v61 }
 0x14f   : > { %10330 = vst [vmem:[#allocation10_spill] sm:$0xff] %v9619_v0  ;;  %v4841_v59 = vrot.slane %v4839_v1, 4  ;;  %v4844_v3 = vrot.slane %v4842_v44, 5  ;;  %v4858_v26 = vshll.u32 %v9619_v0, 16  ;;  %v6838_v24 = vld [vmem:[#allocation2 + $0x84] sm:$0xf] }
 0x150   : > { %v9661_v36 = vrot.slane %v4848_v40, 5  ;;  %v4863_v61 = vshrl.u32 %v6832_v32, 16  ;;  %v9663_v4 = vld [vmem:[#allocation2 + $0x88] sm:$0xf]  ;;  %v4872_v9 = vshll.u32 %v9635_v51, 16  ;;  %v4876_v1 = vshrl.u32 %v9635_v51, 16 }
 0x151   : > { %7612 = vmatpush3.bf16.msra.mxu1 %v8278_v62  ;;  %v4852_v62 = vshrl.u32 %v9600_v10, 16  ;;  %10335 = vst [vmem:[#allocation13_spill] sm:$0xff] %v9663_v4  ;;  %v4887_v44 = vshrl.u32 %v6835_v28, 16  ;;  %v4896_v57 = vshll.u32 %v9648_v52, 16  ;;  %v4911_v40 = vshrl.u32 %v6838_v24, 16 }
 0x152   : > { %7613 = vmatprep.subr.bf16.mxu1 %v8282_v30  ;;  %7790 = vmatmul.mubr.bf16.gmra.mrb[24].mxu0 %v8277_v41  ;;  %v4900_v41 = vshrl.u32 %v9648_v52, 16  ;;  %v4914_v12 = vshll.u32 %v6838_v24, 16  ;;  %v4920_v23 = vshll.u32 %v9663_v4, 16  ;;  %v4924_v14 = vshrl.u32 %v9663_v4, 16  ;;  %v6841_v51 = vld [vmem:[#allocation2 + $0x90] sm:$0xf] }
 0x153   : > { %v4854_v42 = vrot.slane %v4852_v62, 4  ;;  %7793 = vmatprep.mubr.bf16.mxu0 %v8279_v50  ;;  %v8281_v62 = vld [vmem:[#allocation2 + $0xcc] sm:$0xff]   ;;  %v4845_v50 = vor.u32 %v4844_v3, %v4841_v59  ;;  %v4865_v2 = vrot.slane %v4863_v61, 4  ;;  %v9682_v0 = vrot.slane %v4872_v9, 5  ;;  %v9684_v3 = vld [vmem:[#allocation2 + $0x94] sm:$0xf] }
 0x154   : > { %7582 = vmatmul.mubr.bf16.gmra.mrb[8].mxu1 %v10332_v29  ;;  %v9665_v29 = vld [vmem:[#allocation2 + $0x74] sm:$0x1]  ;;  %10337 = vst [vmem:[#allocation15_spill] sm:$0xff] %v9684_v3  ;;  %v10338_v4 = vcombine.low %v9409_v20, %v9416_v13  ;;  %v9689_v25 = vld [vmem:[#allocation2 + $0x80] sm:$0x1]  ;;  %v9691_v19 = vrot.slane %v4896_v57, 5  ;;  %v10339_v9 = vcombine.low %v9422_v33, %v9426_v55 }
 0x155   : > { %7585 = vmatprep.mubr.bf16.mxu1 %v10334_v45  ;;  %7614 = vmatpush3.bf16.msra.mxu1 %v8282_v30  ;;  %v4866_v30 = vshll.u32 %v6832_v32, 16  ;;  %10336 = vst [vmem:[#allocation14_spill] sm:$0xff] %v9665_v29  ;;  %v4890_v45 = vshll.u32 %v6835_v28, 16  ;;  %v9673_v32 = vsel %vm8852_vm13, %v2289_v5, %v2290_v46  ;;  %v8288_v28 = vld [vmem:[%s10292_s3 + $0xf8] sm:$0xff]   ;;  %v4855_v52 = vor.u32 %v4854_v42, %v9661_v36 }
 0x156   : > { %7615 = vmatprep.subr.bf16.mxu1 %v8284_v39  ;;  %v4878_v5 = vrot.slane %v4876_v1, 4  ;;  %v4889_v46 = vrot.slane %v4887_v44, 4  ;;  %v4902_v42 = vrot.slane %v4900_v41, 4  ;;  %v4913_v61 = vrot.slane %v4911_v40, 4  ;;  %v9696_v1 = vld [vmem:[#allocation2 + $0x8c] sm:$0x1] }
 0x157   : > { %v4868_v24 = vrot.slane %v4866_v30, 5  ;;  %v4892_v59 = vrot.slane %v4890_v45, 5  ;;  %v4916_v30 = vrot.slane %v4914_v12, 5  ;;  %v9698_v44 = vrot.slane %v4920_v23, 5 }
 0x158   : > { %v4926_v45 = vrot.slane %v4924_v14, 4  ;;  %v4938_v20 = vshll.u32 %v6841_v51, 16  ;;  %v9700_v13 = vrot.slane %v4845_v50, 4  ;;  %v9702_v57 = vrot.slane %v4858_v26, 5  ;;  %v6844_v14 = vld [vmem:[#allocation2 + $0x9c] sm:$0xf] }
 0x159   : > { %7616 = vmatpush3.bf16.msra.mxu1 %v8284_v39  ;;  %v4882_v39 = vshll.u32 %v9665_v29, 16  ;;  %v4935_v29 = vshrl.u32 %v6841_v51, 16  ;;  %v4944_v12 = vshll.u32 %v9684_v3, 16  ;;  %v4869_v33 = vor.u32 %v4868_v24, %v4865_v2  ;;  %v9716_v24 = vld [vmem:[#allocation2 + $0xa0] sm:$0xf] }
 0x15a   : > { %7617 = vmatprep.subr.bf16.mxu1 %v8286_v16  ;;  %7794 = vmatmul.mubr.bf16.gmra.mrb[28].mxu0 %v8281_v62  ;;  %v4879_v55 = vor.u32 %v4878_v5, %v9682_v0  ;;  %v4893_v23 = vor.u32 %v4892_v59, %v4889_v46  ;;  %v9709_v51 = vrot.slane %v4855_v52, 4  ;;  %v4903_v26 = vor.u32 %v4902_v42, %v9691_v19  ;;  %v9721_v5 = vld [vmem:[%s10292_s3 + $0x100] sm:$0xff]   ;;  %v9724_v52 = vld [vmem:[#allocation2 + $0x98] sm:$0x1] }
 0x15b   : > { %7813 = vmatprep.mubr.bf16.mxu0 %v9468_v27  ;;  %v9711_v41 = vrot.slane %v4882_v39, 5  ;;  %v4930_v40 = vshll.u32 %v9696_v1, 16  ;;  %v4917_v62 = vor.u32 %v4916_v30, %v4913_v61  ;;  %v4927_v50 = vor.u32 %v4926_v45, %v9698_v44  ;;  %v8285_v45 = vld [vmem:[%s10292_s3 + $0x208] sm:$0xff]  }
 0x15c   : > { %7586 = vmatmul.mubr.bf16.gmra.mrb[12].mxu1 %v10338_v4  ;;  %v4948_v4 = vshrl.u32 %v9684_v3, 16  ;;  %v4937_v27 = vrot.slane %v4935_v29, 4  ;;  %v4940_v2 = vrot.slane %v4938_v20, 5  ;;  %v9726_v39 = vrot.slane %v4944_v12, 5 }
 0x15d   : > { %7589 = vmatprep.mubr.bf16.mxu1 %v10339_v9  ;;  %7618 = vmatpush3.bf16.msra.mxu1 %v8286_v16  ;;  %v4906_v16 = vshll.u32 %v9689_v25, 16  ;;  %v4962_v59 = vshll.u32 %v6844_v14, 16  ;;  %v4870_v42 = vrot.slane %v4869_v33, 4  ;;  %v4880_v61 = vrot.slane %v4879_v55, 4 }
 0x15e   : > { %7619 = vmatprep.subr.bf16.mxu1 %v8288_v28  ;;  %v4950_v46 = vrot.slane %v4948_v4, 4  ;;  %v4894_v29 = vrot.slane %v4893_v23, 4  ;;  %v10340_v9 = vcombine.low %v9445_v47, %v9450_v34  ;;  %v4904_v20 = vrot.slane %v4903_v26, 4 }
 0x15f   : > { %v4908_v30 = vrot.slane %v4906_v16, 5  ;;  %v4932_v3 = vrot.slane %v4930_v40, 5  ;;  %v4968_v12 = vshll.u32 %v9716_v24, 16  ;;  %v4972_v4 = vshrl.u32 %v9716_v24, 16 }
 0x160   : > { %v10341_v33 = vcombine.low %v9472_v6, %v9476_v58  ;;  %v4918_v55 = vrot.slane %v4917_v62, 4  ;;  %v4928_v23 = vrot.slane %v4927_v50, 4  ;;  %v4941_v16 = vor.u32 %v4940_v2, %v4937_v27  ;;  %v10343_v62 = vld [vmem:[#allocation4_spill] sm:$0xff]  ;;  %v6847_v50 = vld [vmem:[#allocation2 + $0xa8] sm:$0xf] }
 0x161   : > { %7620 = vmatpush3.bf16.msra.mxu1 %v8288_v28  ;;  %v4959_v28 = vshrl.u32 %v6844_v14, 16  ;;  %v4954_v47 = vshll.u32 %v9724_v52, 16  ;;  %v4851_v34 = vsel %vm8536_vm2, %v9700_v13, %v9661_v36  ;;  %v4951_v14 = vor.u32 %v4950_v46, %v9726_v39  ;;  %v9775_v2 = vld [vmem:[#allocation2 + $0xac] sm:$0xf] }
 0x162   : > { %7893 = vmatprep.subr.bf16.mxu1 %v9721_v5  ;;  %7814 = vmatmul.mubr.bf16.vlgmr.msra.gmra.mrb[0].mxu0 %v9504_v53  ;;  %v4964_v40 = vrot.slane %v4962_v59, 5  ;;  %v10342_v6 = vor.u32 %v9298_v54, %v9296_v38  ;;  %v4861_v53 = vsel %vm8536_vm2, %v9709_v51, %v9702_v57  ;;  %v4875_v36 = vsel %vm8536_vm2, %v4870_v42, %v9682_v0  ;;  %v9763_v54 = vld [vmem:[#allocation2 + $0xa4] sm:$0x1] }
 0x163   : > { %v4961_v26 = vrot.slane %v4959_v28, 4  ;;  %7846 = vmatpush3.bf16.msra.mxu0 %v10343_v62  ;;  %7817 = vmatprep.mubr.bf16.mxu0 %v9565_v48  ;;  %v4885_v13 = vsel %vm8536_vm2, %v4880_v61, %v9711_v41  ;;  %v8287_v48 = vld [vmem:[%s10292_s3 + $0x210] sm:$0xff]   ;;  %v4899_v57 = vsel %vm8536_vm2, %v4894_v29, %v9691_v19  ;;  %v4909_v51 = vsel %vm8536_vm2, %v4904_v20, %v4908_v30 }
 0x164   : > { %7590 = vmatmul.mubr.bf16.gmra.mrb[16].mxu1 %v10340_v9  ;;  %v9749_v58 = vrot.slane %v10342_v6, 4  ;;  %7847 = vmatprep.subr.bf16.mxu0 %v8285_v45  ;;  %v9773_v0 = vrot.slane %v4968_v12, 5  ;;  %v4974_v27 = vrot.slane %v4972_v4, 4  ;;  %v4923_v41 = vsel %vm8536_vm2, %v4918_v55, %v9698_v44  ;;  %v10348_v6 = vld [vmem:[#allocation3_spill] sm:$0xff] }
 0x165   : > { %7593 = vmatprep.mubr.bf16.mxu1 %v10341_v33  ;;  %v4933_v46 = vsel %vm8536_vm2, %v4928_v23, %v4932_v3  ;;  %v9782_v28 = vrot.slane %v4941_v16, 4  ;;  %v9784_v59 = vrot.slane %v4954_v47, 5  ;;  %v9786_v19 = vrot.slane %v4951_v14, 4  ;;  %v9829_v23 = vld [vmem:[#allocation2 + $0xb0] sm:$0x1] }
 0x166   : > { %v4965_v42 = vor.u32 %v4964_v40, %v4961_v26  ;;  %v4978_v61 = vshll.u32 %v9763_v54, 16  ;;  %v4983_v29 = vshrl.u32 %v6847_v50, 16  ;;  %v10344_v30 = vsel %vm8536_vm2, %v9608_v43, %v9610_v60  ;;  %v9831_v16 = vld [vmem:[#allocation2 + $0xb4] sm:$0xf] }
 0x167   : > { %7848 = vmatpush3.bf16.msra.mxu0 %v8285_v45  ;;  %v10345_v3 = vsel %vm8536_vm2, %v9598_v22, %v9552_v21  ;;  %v6497_v9 = vcombine.low %v9633_v18, %v9642_v17  ;;  %v4986_v20 = vshll.u32 %v6847_v50, 16  ;;  %v4992_v12 = vshll.u32 %v9775_v2, 16  ;;  %v8289_v21 = vld [vmem:[%s10292_s3 + $0x218] sm:$0xff]   ;;  %v6903_v17 = vld [vmem:[#allocation2 + $0x48] sm:$0xe] }
 0x168   : > { %v9799_v44 = vcombine.low %v10345_v3, %v10344_v30  ;;  %v10346_v45 = vcombine.low %v9497_v8, %v9510_v31  ;;  %7849 = vmatprep.subr.bf16.mxu0 %v8287_v48  ;;  %v6498_v43 = vcombine.low %v9646_v63, %v9673_v32  ;;  %v9809_v60 = vcombine.low %v4851_v34, %v4861_v53  ;;  %v6904_v14 = vld [vmem:[#allocation2 + $0x54] sm:$0xe]  ;;  %v6905_v53 = vld [vmem:[#allocation2 + $0x60] sm:$0xe] }
 0x169   : > { %v4975_v22 = vor.u32 %v4974_v27, %v9773_v0  ;;  %v4996_v18 = vshrl.u32 %v9775_v2, 16  ;;  %v10347_v4 = vcombine.low %v9560_v15, %v9576_v37  ;;  %v9819_v8 = vcombine.low %v4875_v36, %v4885_v13  ;;  %v8292_v36 = vld [vmem:[%s10292_s3 + $0x220] sm:$0xff]  }
 0x16a   : > { %v9821_v31 = vcombine.low %v4899_v57, %v4909_v51  ;;  %v9823_v33 = vcombine.low %v4923_v41, %v4933_v46  ;;  %v4947_v55 = vsel %vm8536_vm2, %v9782_v28, %v9726_v39  ;;  %7818 = vmatmul.mubr.bf16.gmra.mrb[4].mxu0 %v9615_v7  ;;  %v4957_v15 = vsel %vm8536_vm2, %v9786_v19, %v9784_v59  ;;  %v10350_v46 = vld [vmem:[#allocation5_spill] sm:$0xff]  ;;  %v6909_v59 = vld [vmem:[#allocation2 + $0x90] sm:$0xe] }
 0x16b   : > { %v9838_v37 = vrot.slane %v4965_v42, 4  ;;  %v9840_v47 = vrot.slane %v4978_v61, 5  ;;  %v9842_v34 = vrot.slane %v4983_v29, 4  ;;  %7821 = vmatprep.mubr.bf16.mxu0 %v9625_v11  ;;  %7850 = vmatpush3.bf16.msra.mxu0 %v8287_v48  ;;  %v9845_v26 = vrot.slane %v4986_v20, 5  ;;  %v10349_v11 = vld [vmem:[#allocation6_spill] sm:$0xff] }
 0x16c   : > { %7594 = vmatmul.mubr.bf16.gmra.mrb[20].mxu1 %v10346_v45  ;;  %v9847_v40 = vrot.slane %v4992_v12, 5  ;;  %v6919_v7 = vrot.slane %v6903_v17, 9  ;;  %v5494_v62 = vrot.slane %v10348_v6, 5  ;;  %7851 = vmatprep.subr.bf16.mxu0 %v8289_v21  ;;  %v9853_v13 = vrot.slane %v4975_v22, 4  ;;  %v6906_v20 = vld [vmem:[#allocation2 + $0x6c] sm:$0xe] }
 0x16d   : > { %7597 = vmatprep.mubr.bf16.mxu1 %v10347_v4  ;;  %v4998_v50 = vrot.slane %v4996_v18, 4  ;;  %v5002_v57 = vshll.u32 %v9829_v23, 16  ;;  %v5497_v48 = vrot.slane %v10349_v11, 5  ;;  %v6920_v41 = vrot.slane %v6904_v14, 9  ;;  %v10351_v17 = vld [vmem:[#allocation8_spill] sm:$0xff]  ;;  %v10352_v4 = vld [vmem:[#allocation9_spill] sm:$0xff] }
 0x16e   : > { %v9859_v51 = vsel %vm8852_vm13, %v6919_v7, %v5494_v62  ;;  %v5496_v27 = vrot.slane %v5494_v62, 4  ;;  %v5501_v42 = vrot.slane %v10350_v46, 5  ;;  %v5007_v61 = vshrl.u32 %v9831_v16, 16  ;;  %v10354_v7 = vld [vmem:[#allocation10_spill] sm:$0xff]  ;;  %v9887_v62 = vld [vmem:[#allocation2 + $0xb8] sm:$0xf] }
 0x16f   : > { %v5504_v29 = vrot.slane %v9554_v49, 5  ;;  %v6921_v30 = vrot.slane %v6905_v53, 9  ;;  %v5508_v3 = vrot.slane %v9600_v10, 5  ;;  %7852 = vmatpush3.bf16.msra.mxu0 %v8289_v21  ;;  %v5010_v12 = vshll.u32 %v9831_v16, 16  ;;  %v8295_v49 = vld [vmem:[%s10292_s3 + $0x228] sm:$0xff]  }
 0x170   : > { %v9868_v45 = vsel %vm8852_vm13, %v5496_v27, %v5497_v48  ;;  %v9872_v22 = vsel %vm8852_vm13, %v6920_v41, %v5501_v42  ;;  %v5503_v18 = vrot.slane %v5501_v42, 4  ;;  %v10353_v14 = vcombine.low %v10351_v17, %v10352_v4  ;;  %7853 = vmatprep.subr.bf16.mxu0 %v8292_v36  ;;  %v10355_v48 = vld [vmem:[#allocation11_spill] sm:$0xff]  ;;  %v10356_v41 = vld [vmem:[#allocation14_spill] sm:$0xff] }
 0x171   : > { %v9884_v21 = vsel %vm8852_vm13, %v6921_v30, %v5508_v3  ;;  %v5510_v16 = vrot.slane %v5508_v3, 4  ;;  %v5511_v6 = vrot.slane %v10354_v7, 5  ;;  %v6922_v11 = vrot.slane %v6906_v20, 9  ;;  %v8298_v20 = vld [vmem:[%s10292_s3 + $0x230] sm:$0xff]   ;;  %v6907_v4 = vld [vmem:[#allocation2 + $0x78] sm:$0xe] }
 0x172   : > { %v9891_v53 = vsel %vm8852_vm13, %v5503_v18, %v5504_v29  ;;  %v5515_v27 = vrot.slane %v10355_v48, 5  ;;  %v5518_v46 = vrot.slane %v10356_v41, 5  ;;  %7822 = vmatmul.mubr.bf16.gmra.mrb[8].mxu0 %v9799_v44  ;;  %v4989_v42 = vor.u32 %v9845_v26, %v9842_v34  ;;  %v6606_v29 = vld [vmem:[#allocation2 + $0x78] sm:$0xf]  ;;  %v6853_v7 = vld [vmem:[#allocation2 + $0xc0] sm:$0xf] }
 0x173   : > { %v4999_v30 = vor.u32 %v4998_v50, %v9847_v40  ;;  %v9903_v3 = vsel %vm8852_vm13, %v5510_v16, %v5511_v6  ;;  %7825 = vmatprep.mubr.bf16.mxu0 %v9809_v60  ;;  %7854 = vmatpush3.bf16.msra.mxu0 %v8292_v36  ;;  %v9920_v36 = vrot.slane %v5002_v57, 5  ;;  %v9925_v18 = vrot.slane %v5007_v61, 4  ;;  %v6908_v34 = vld [vmem:[#allocation2 + $0x84] sm:$0xe]  ;;  %v10357_v44 = vld [vmem:[#allocation7_spill] sm:$0xff] }
 0x174   : > { %7598 = vmatmul.mubr.bf16.gmra.mrb[24].mxu1 %v10353_v14  ;;  %v9914_v26 = vsel %vm8852_vm13, %v6922_v11, %v5515_v27  ;;  %v5517_v50 = vrot.slane %v5515_v27, 4  ;;  %7855 = vmatprep.subr.bf16.mxu0 %v8295_v49  ;;  %v5016_v17 = vshll.u32 %v9887_v62, 16  ;;  %v8290_v14 = vld [vmem:[#allocation2 + $0xc] sm:$0xff]   ;;  %v9928_v16 = vrot.slane %v5010_v12, 5  ;;  %v9941_v12 = vld [vmem:[#allocation2 + $0xc4] sm:$0xf] }
 0x175   : > { %7601 = vmatprep.mubr.bf16.mxu1 %v6497_v9  ;;  %v3269_v11 = vshrl.u32 %v6606_v29, 16  ;;  %v3272_v57 = vshll.u32 %v6606_v29, 16  ;;  %v9934_v48 = vrot.slane %v4989_v42, 4  ;;  %v9936_v27 = vrot.slane %v4999_v30, 4 }
 0x176   : > { %v9932_v6 = vsel %vm8852_vm13, %v5517_v50, %v5518_v46  ;;  %v5020_v61 = vshrl.u32 %v9887_v62, 16  ;;  %v3291_v46 = vsel %vm8536_vm2, %v9749_v58, %v10357_v44  ;;  %v6923_v42 = vrot.slane %v6907_v4, 9  ;;  %v10358_v50 = vld [vmem:[#allocation12_spill] sm:$0xff]  ;;  %v10359_v44 = vld [vmem:[#allocation13_spill] sm:$0xff] }
 0x177   : > { %7856 = vmatpush3.bf16.msra.mxu0 %v8295_v49  ;;  %v3271_v9 = vrot.slane %v3269_v11, 4  ;;  %v3274_v10 = vrot.slane %v3272_v57, 5  ;;  %v9950_v30 = vrot.slane %v5016_v17, 5  ;;  %v5031_v29 = vshrl.u32 %v6853_v7, 16  ;;  %v8301_v49 = vld [vmem:[%s10292_s3 + $0x238] sm:$0xff]  }
 0x178   : > { %7857 = vmatprep.subr.bf16.mxu0 %v8298_v20  ;;  %v5522_v11 = vrot.slane %v10358_v50, 5  ;;  %v5525_v57 = vrot.slane %v9689_v25, 5  ;;  %v6924_v58 = vrot.slane %v6908_v34, 9  ;;  %v5529_v4 = vrot.slane %v10359_v44, 5  ;;  %v9987_v50 = vld [vmem:[#allocation2 + $0xc8] sm:$0x1] }
 0x179   : > { %v3275_v41 = vor.u32 %v3274_v10, %v3271_v9  ;;  %v5532_v63 = vrot.slane %v9696_v1, 5  ;;  %v5034_v32 = vshll.u32 %v6853_v7, 16  ;;  %v5044_v25 = vshrl.u32 %v9941_v12, 16 }
 0x17a   : > { %7826 = vmatmul.mubr.bf16.gmra.mrb[12].mxu0 %v9819_v8  ;;  %v9963_v17 = vsel %vm8852_vm13, %v6923_v42, %v5522_v11  ;;  %v5524_v60 = vrot.slane %v5522_v11, 4  ;;  %v9969_v9 = vsel %vm8852_vm13, %v6924_v58, %v5529_v4  ;;  %v5531_v1 = vrot.slane %v5529_v4, 4  ;;  %v8291_v8 = vld [vmem:[#allocation2 + $0x18] sm:$0xff]  }
 0x17b   : > { %7829 = vmatprep.mubr.bf16.mxu0 %v9821_v31  ;;  %7858 = vmatpush3.bf16.msra.mxu0 %v8298_v20  ;;  %v3276_v10 = vrot.slane %v3275_v41, 4  ;;  %v4995_v34 = vsel %vm8536_vm2, %v9934_v48, %v9847_v40  ;;  %v5022_v7 = vrot.slane %v5020_v61, 4  ;;  %v8293_v20 = vld [vmem:[#allocation2 + $0x24] sm:$0xff]   ;;  %v5005_v41 = vsel %vm8536_vm2, %v9936_v27, %v9920_v36  ;;  %v9985_v42 = vld [vmem:[#allocation2 + $0xbc] sm:$0x1] }
 0x17c   : > { %7602 = vmatmul.mubr.bf16.gmra.mrb[28].mxu1 %v6498_v43  ;;  %v5040_v43 = vshll.u32 %v9941_v12, 16  ;;  %7859 = vmatprep.subr.bf16.mxu0 %v8301_v49  ;;  %v9979_v31 = vsel %vm8852_vm13, %v5524_v60, %v5525_v57  ;;  %v9996_v60 = vsel %vm8852_vm13, %v5531_v1, %v5532_v63  ;;  %v5036_v48 = vrot.slane %v5034_v32, 5  ;;  %v6856_v61 = vld [vmem:[#allocation2 + $0xcc] sm:$0xf]  ;;  %v10014_v57 = vld [vmem:[#allocation2 + $0xd0] sm:$0xf] }
 0x17d   : > { %7621 = vmatprep.mubr.bf16.mxu1 %v8290_v14  ;;  %v5013_v14 = vor.u32 %v9928_v16, %v9925_v18  ;;  %v3281_v40 = vsel %vm8536_vm2, %v3276_v10, %v9296_v38  ;;  %v6955_v18 = vcombine.low %v9963_v17, %v9979_v31  ;;  %v5033_v16 = vrot.slane %v5031_v29, 4  ;;  %v8388_v31 = vld [vmem:[#allocation2 + $0xb0] sm:$0x1] }
 0x17e   : > { %v9998_v11 = vcombine.low %v3281_v40, %v3291_v46  ;;  %v6956_v36 = vcombine.low %v9969_v9, %v9996_v60  ;;  %v6885_v38 = vcombine.low %v4947_v55, %v4957_v15  ;;  %v10012_v27 = vrot.slane %v5040_v43, 5  ;;  %v10362_v43 = vld [vmem:[#allocation15_spill] sm:$0xff] }
 0x17f   : > { %v5046_v29 = vrot.slane %v5044_v25, 4  ;;  %7860 = vmatpush3.bf16.msra.mxu0 %v8301_v49  ;;  %v5023_v46 = vor.u32 %v5022_v7, %v9950_v30  ;;  %v5026_v58 = vshll.u32 %v9985_v42, 16  ;;  %v5050_v44 = vshll.u32 %v9987_v50, 16 }
 0x180   : > { %v10360_v39 = vsel %vm8536_vm2, %v9853_v13, %v9840_v47  ;;  %v10361_v28 = vsel %vm8536_vm2, %v9838_v37, %v9773_v0  ;;  %v6887_v55 = vcombine.low %v4995_v34, %v5005_v41  ;;  %v5055_v15 = vshrl.u32 %v6856_v61, 16  ;;  %v6910_v13 = vld [vmem:[#allocation2 + $0x9c] sm:$0xe] }
 0x181   : > { %v6886_v19 = vcombine.low %v10361_v28, %v10360_v39  ;;  %v5014_v49 = vrot.slane %v5013_v14, 4  ;;  %v5037_v4 = vor.u32 %v5036_v48, %v5033_v16  ;;  %v5058_v63 = vshll.u32 %v6856_v61, 16  ;;  %v8296_v14 = vld [vmem:[#allocation2 + $0x3c] sm:$0xff]   ;;  %v8364_v16 = vld [vmem:[%s10292_s3 + $0x110] sm:$0xff]  }
 0x182   : > { %7830 = vmatmul.mubr.bf16.gmra.mrb[16].mxu0 %v9823_v33  ;;  %v5064_v47 = vshll.u32 %v10014_v57, 16  ;;  %v5047_v32 = vor.u32 %v5046_v29, %v10012_v27  ;;  %v5068_v0 = vshrl.u32 %v10014_v57, 16  ;;  %v6925_v37 = vrot.slane %v6909_v59, 9  ;;  %v8294_v33 = vld [vmem:[#allocation2 + $0x30] sm:$0xff]  }
 0x183   : > { %7833 = vmatprep.mubr.bf16.mxu0 %v6885_v38  ;;  %v5536_v25 = vrot.slane %v10362_v43, 5  ;;  %v5024_v10 = vrot.slane %v5023_v46, 4  ;;  %v5028_v1 = vrot.slane %v5026_v58, 5  ;;  %v5539_v34 = vrot.slane %v9724_v52, 5  ;;  %v10049_v46 = vld [vmem:[#allocation2 + $0xd4] sm:$0x1] }
 0x184   : > { %7622 = vmatmul.mubr.bf16.vlgmr.msra.gmra.mrb[0].mxu1 %v8291_v8  ;;  %v5052_v8 = vrot.slane %v5050_v44, 5  ;;  %v5057_v7 = vrot.slane %v5055_v15, 4  ;;  %v6926_v40 = vrot.slane %v6910_v13, 9  ;;  %v5038_v48 = vrot.slane %v5037_v4, 4  ;;  %v6911_v43 = vld [vmem:[#allocation2 + $0xa8] sm:$0xe] }
 0x185   : > { %7901 = vmatpush3.bf16.msra.mxu1 %v9721_v5  ;;  %7625 = vmatprep.mubr.bf16.mxu1 %v8293_v20  ;;  %v8363_v5 = vld [vmem:[%s10292_s3 + $0x108] sm:$0xff]   ;;  %v10041_v20 = vsel %vm8852_vm13, %v6925_v37, %v5536_v25  ;;  %v5538_v41 = vrot.slane %v5536_v25, 4  ;;  %v5060_v61 = vrot.slane %v5058_v63, 5  ;;  %v10046_v38 = vrot.slane %v5064_v47, 5 }
 0x186   : > { %7894 = vmatprep.subr.bf16.mxu1 %v8363_v5  ;;  %v5543_v52 = vrot.slane %v9716_v24, 5  ;;  %v5048_v29 = vrot.slane %v5047_v32, 4  ;;  %v5070_v58 = vrot.slane %v5068_v0, 4  ;;  %v5546_v59 = vrot.slane %v9763_v54, 5  ;;  %v8365_v54 = vld [vmem:[%s10292_s3 + $0x118] sm:$0xff]   ;;  %v8297_v32 = vld [vmem:[#allocation2 + $0x48] sm:$0xff]  }
 0x187   : > { %v10053_v44 = vsel %vm8852_vm13, %v5538_v41, %v5539_v34  ;;  %v5019_v15 = vsel %vm8536_vm2, %v5014_v49, %v9950_v30  ;;  %v5061_v4 = vor.u32 %v5060_v61, %v5057_v7  ;;  %v5074_v63 = vshll.u32 %v10049_v46, 16  ;;  %v6899_v49 = vld [vmem:[#allocation2 + $0x18] sm:$0xe]  ;;  %v8366_v0 = vld [vmem:[#allocation2 + $0x1c] sm:$0xf] }
 0x188   : > { %v6957_v39 = vcombine.low %v10041_v20, %v10053_v44  ;;  %v10060_v28 = vsel %vm8852_vm13, %v6926_v40, %v5543_v52  ;;  %v5545_v24 = vrot.slane %v5543_v52, 4  ;;  %v5053_v47 = vsel %vm8536_vm2, %v5048_v29, %v5052_v8  ;;  %v8367_v8 = vld [vmem:[%s10292_s3 + $0x120] sm:$0xff]  }
 0x189   : > { %7902 = vmatpush3.bf16.msra.mxu1 %v8363_v5  ;;  %v5029_v5 = vsel %vm8536_vm2, %v5024_v10, %v5028_v1  ;;  %v5071_v30 = vor.u32 %v5070_v58, %v10046_v38  ;;  %v5466_v37 = vrot.slane %v8366_v0, 5  ;;  %v5062_v10 = vrot.slane %v5061_v4, 4  ;;  %v8368_v61 = vld [vmem:[#allocation2 + $0x20] sm:$0x1]  ;;  %v6900_v29 = vld [vmem:[#allocation2 + $0x24] sm:$0xe] }
 0x18a   : > { %7895 = vmatprep.subr.bf16.mxu1 %v8364_v16  ;;  %7834 = vmatmul.mubr.bf16.gmra.mrb[20].mxu0 %v6886_v19  ;;  %v5043_v19 = vsel %vm8536_vm2, %v5038_v48, %v10012_v27  ;;  %v10079_v13 = vsel %vm8852_vm13, %v5545_v24, %v5546_v59  ;;  %v6888_v25 = vcombine.low %v5019_v15, %v5029_v5  ;;  %v5076_v1 = vrot.slane %v5074_v63, 5  ;;  %v8369_v58 = vld [vmem:[#allocation2 + $0x28] sm:$0xf]  ;;  %v8300_v0 = vld [vmem:[#allocation2 + $0x60] sm:$0xff]  }
 0x18b   : > { %7837 = vmatprep.mubr.bf16.mxu0 %v6887_v55  ;;  %v6958_v55 = vcombine.low %v10060_v28, %v10079_v13  ;;  %v6889_v27 = vcombine.low %v5043_v19, %v5053_v47  ;;  %v6915_v34 = vrot.slane %v6899_v49, 9  ;;  %v5072_v7 = vrot.slane %v5071_v30, 4 }
 0x18c   : > { %7626 = vmatmul.mubr.bf16.gmra.mrb[4].mxu1 %v8294_v33  ;;  %v8299_v33 = vld [vmem:[#allocation2 + $0x54] sm:$0xff]   ;;  %v6927_v41 = vrot.slane %v6911_v43, 9  ;;  %v5550_v40 = vrot.slane %v9775_v2, 5  ;;  %v5468_v48 = vrot.slane %v5466_v37, 4  ;;  %v5469_v52 = vrot.slane %v8368_v61, 5  ;;  %v8370_v2 = vld [vmem:[%s10292_s3 + $0x128] sm:$0xff]  }
 0x18d   : > { %7629 = vmatprep.mubr.bf16.mxu1 %v8296_v14  ;;  %7903 = vmatpush3.bf16.msra.mxu1 %v8364_v16  ;;  %v6912_v14 = vld [vmem:[#allocation2 + $0xb4] sm:$0xe]  ;;  %v5553_v16 = vrot.slane %v9829_v23, 5  ;;  %v5473_v59 = vrot.slane %v8369_v58, 5  ;;  %v6901_v23 = vld [vmem:[#allocation2 + $0x30] sm:$0xe]  ;;  %v5067_v47 = vsel %vm8536_vm2, %v5062_v10, %v10046_v38  ;;  %v5077_v30 = vsel %vm8536_vm2, %v5072_v7, %v5076_v1 }
 0x18e   : > { %7896 = vmatprep.subr.bf16.mxu1 %v8365_v54  ;;  %v10090_v24 = vsel %vm8852_vm13, %v6927_v41, %v5550_v40  ;;  %v5552_v15 = vrot.slane %v5550_v40, 4  ;;  %v6928_v5 = vrot.slane %v6912_v14, 9  ;;  %v5557_v63 = vrot.slane %v9887_v62, 5  ;;  %v8373_v14 = vld [vmem:[#allocation2 + $0x38] sm:$0x1]  ;;  %v8374_v41 = vld [vmem:[%s10292_s3 + $0x130] sm:$0xff]  }
 0x18f   : > { %v5560_v19 = vrot.slane %v9985_v42, 5  ;;  %v5467_v49 = vsel %vm8852_vm13, %v6915_v34, %v5466_v37  ;;  %v5470_v62 = vsel %vm8852_vm13, %v5468_v48, %v5469_v52  ;;  %v8372_v37 = vld [vmem:[#allocation2 + $0x2c] sm:$0x1]  ;;  %v6917_v1 = vrot.slane %v6901_v23, 9  ;;  %v6913_v61 = vld [vmem:[#allocation2 + $0xc0] sm:$0xe] }
 0x190   : > { %v10114_v38 = vsel %vm8852_vm13, %v6928_v5, %v5557_v63  ;;  %v5559_v43 = vrot.slane %v5557_v63, 4  ;;  %v5476_v10 = vrot.slane %v8372_v37, 5  ;;  %v5483_v7 = vrot.slane %v8373_v14, 5  ;;  %v6902_v58 = vld [vmem:[#allocation2 + $0x3c] sm:$0xe] }
 0x191   : > { %7904 = vmatpush3.bf16.msra.mxu1 %v8365_v54  ;;  %v8371_v54 = vld [vmem:[#allocation2 + $0x34] sm:$0xf]  ;;  %v6929_v23 = vrot.slane %v6913_v61, 9  ;;  %v8376_v63 = vld [vmem:[#allocation2 + $0x40] sm:$0xf] }
 0x192   : > { %7897 = vmatprep.subr.bf16.mxu1 %v8367_v8  ;;  %7838 = vmatmul.mubr.bf16.gmra.mrb[24].mxu0 %v6888_v25  ;;  %v5480_v4 = vrot.slane %v8371_v54, 5  ;;  %v8302_v25 = vld [vmem:[#allocation2 + $0x6c] sm:$0xff]   ;;  %v10121_v40 = vsel %vm8852_vm13, %v5559_v43, %v5560_v19  ;;  %v5487_v19 = vrot.slane %v8376_v63, 5  ;;  %v8306_v63 = vld [vmem:[#allocation2 + $0x9c] sm:$0xff]  }
 0x193   : > { %7841 = vmatprep.mubr.bf16.mxu0 %v6889_v27  ;;  %v5475_v27 = vrot.slane %v5473_v59, 4  ;;  %v6960_v48 = vcombine.low %v10114_v38, %v10121_v40  ;;  %v6914_v54 = vld [vmem:[#allocation2 + $0xcc] sm:$0xe] }
 0x194   : > { %7630 = vmatmul.mubr.bf16.gmra.mrb[8].mxu1 %v8297_v32  ;;  %v10106_v32 = vsel %vm8852_vm13, %v5552_v15, %v5553_v16  ;;  %v5482_v34 = vrot.slane %v5480_v4, 4  ;;  %v6947_v16 = vcombine.low %v5467_v49, %v5470_v62  ;;  %v5481_v15 = vsel %vm8852_vm13, %v6917_v1, %v5480_v4  ;;  %v8377_v4 = vld [vmem:[#allocation2 + $0x44] sm:$0x1] }
 0x195   : > { %7633 = vmatprep.mubr.bf16.mxu1 %v8299_v33  ;;  %7905 = vmatpush3.bf16.msra.mxu1 %v8367_v8  ;;  %v6959_v42 = vcombine.low %v10090_v24, %v10106_v32  ;;  %v6916_v33 = vrot.slane %v6900_v29, 9  ;;  %v6890_v8 = vcombine.low %v5067_v47, %v5077_v30  ;;  %v5477_v29 = vsel %vm8852_vm13, %v5475_v27, %v5476_v10  ;;  %v6603_v47 = vld [vmem:[#allocation2 + $0x6c] sm:$0xf]  ;;  %v8303_v30 = vld [vmem:[#allocation2 + $0x78] sm:$0xff]  }
 0x196   : > { %7898 = vmatprep.subr.bf16.mxu1 %v8370_v2  ;;  %v5484_v5 = vsel %vm8852_vm13, %v5482_v34, %v5483_v7  ;;  %v5490_v62 = vrot.slane %v8377_v4, 5  ;;  %v6930_v37 = vrot.slane %v6914_v54, 9  ;;  %v3245_v10 = vshrl.u32 %v6603_v47, 16  ;;  %v8378_v7 = vld [vmem:[#allocation2 + $0x70] sm:$0xf] }
 0x197   : > { %v5474_v52 = vsel %vm8852_vm13, %v6916_v33, %v5473_v59  ;;  %v5564_v59 = vrot.slane %v9941_v12, 5  ;;  %v6949_v33 = vcombine.low %v5481_v15, %v5484_v5  ;;  %v5567_v12 = vrot.slane %v9987_v50, 5  ;;  %v8305_v54 = vld [vmem:[#allocation2 + $0x90] sm:$0xff]  }
 0x198   : > { %v6948_v49 = vcombine.low %v5474_v52, %v5477_v29  ;;  %v3248_v1 = vshll.u32 %v6603_v47, 16  ;;  %v5574_v34 = vrot.slane %v10049_v46, 5  ;;  %v5489_v14 = vrot.slane %v5487_v19, 4  ;;  %v6609_v47 = vld [vmem:[#allocation2 + $0x84] sm:$0xf] }
 0x199   : > { %7906 = vmatpush3.bf16.msra.mxu1 %v8370_v2  ;;  %v8375_v2 = vld [vmem:[%s10292_s3 + $0x138] sm:$0xff]   ;;  %v5566_v43 = vrot.slane %v5564_v59, 4  ;;  %v10139_v27 = vsel %vm8852_vm13, %v6929_v23, %v5564_v59  ;;  %v3247_v46 = vrot.slane %v3245_v10, 4  ;;  %v10363_v10 = vcombine.low %v9859_v51, %v9868_v45  ;;  %v8381_v51 = vld [vmem:[#allocation2 + $0x8c] sm:$0x1] }
 0x19a   : > { %7899 = vmatprep.subr.bf16.mxu1 %v8374_v41  ;;  %7842 = vmatmul.mubr.bf16.gmra.mrb[28].mxu0 %v6890_v8  ;;  %v5571_v8 = vrot.slane %v10014_v57, 5  ;;  %v5491_v5 = vsel %vm8852_vm13, %v5489_v14, %v5490_v62  ;;  %v8308_v14 = vld [vmem:[#allocation2 + $0xb4] sm:$0xff]   ;;  %v3312_v45 = vshll.u32 %v8381_v51, 16 }
 0x19b   : > { %7861 = vmatprep.mubr.bf16.mxu0 %v6947_v16  ;;  %v3258_v16 = vshrl.u32 %v8378_v7, 16  ;;  %v10146_v61 = vsel %vm8852_vm13, %v5566_v43, %v5567_v12  ;;  %v3293_v43 = vshrl.u32 %v6609_v47, 16 }
 0x19c   : > { %7634 = vmatmul.mubr.bf16.gmra.mrb[12].mxu1 %v8300_v0  ;;  %v6918_v0 = vrot.slane %v6902_v58, 9  ;;  %v6961_v52 = vcombine.low %v10139_v27, %v10146_v61  ;;  %v10152_v50 = vsel %vm8852_vm13, %v6930_v37, %v5571_v8  ;;  %v5573_v29 = vrot.slane %v5571_v8, 4  ;;  %v6612_v37 = vld [vmem:[#allocation2 + $0x90] sm:$0xf] }
 0x19d   : > { %7637 = vmatprep.mubr.bf16.mxu1 %v8302_v25  ;;  %7907 = vmatpush3.bf16.msra.mxu1 %v8374_v41  ;;  %v8304_v25 = vld [vmem:[#allocation2 + $0x84] sm:$0xff]   ;;  %v3254_v41 = vshll.u32 %v8378_v7, 16  ;;  %v3250_v58 = vrot.slane %v3248_v1, 5  ;;  %v3260_v23 = vrot.slane %v3258_v16, 4  ;;  %v3295_v7 = vrot.slane %v3293_v43, 4 }
 0x19e   : > { %7900 = vmatprep.subr.bf16.mxu1 %v8375_v2  ;;  %v5488_v57 = vsel %vm8852_vm13, %v6918_v0, %v5487_v19  ;;  %v10158_v15 = vsel %vm8852_vm13, %v5573_v29, %v5574_v34  ;;  %v8379_v0 = vld [vmem:[#allocation2 + $0x74] sm:$0x1]  ;;  %v8307_v34 = vld [vmem:[#allocation2 + $0xa8] sm:$0xff]  }
 0x19f   : > { %v6962_v59 = vcombine.low %v10152_v50, %v10158_v15  ;;  %v3251_v19 = vor.u32 %v3250_v58, %v3247_v46  ;;  %v3264_v4 = vshll.u32 %v8379_v0, 16  ;;  %v3320_v46 = vshll.u32 %v6612_v37, 16  ;;  %v6615_v58 = vld [vmem:[#allocation2 + $0x9c] sm:$0xf] }
 0x1a1   : > { %7908 = vmatpush3.bf16.msra.mxu1 %v8375_v2  ;;  %v3256_v2 = vrot.slane %v3254_v41, 5  ;;  %v3252_v12 = vrot.slane %v3251_v19, 4  ;;  %v3266_v8 = vrot.slane %v3264_v4, 5  ;;  %v3344_v19 = vshll.u32 %v6615_v58, 16 }
 0x1a2   : > { %7862 = vmatmul.mubr.bf16.vlgmr.msra.gmra.mrb[0].mxu0 %v6948_v49 }
 0x1a3   : > { %7865 = vmatprep.mubr.bf16.mxu0 %v6949_v33  ;;  %v3261_v49 = vor.u32 %v3260_v23, %v3256_v2  ;;  %v8380_v33 = vld [vmem:[#allocation2 + $0x88] sm:$0xf] }
 0x1a4   : > { %7638 = vmatmul.mubr.bf16.gmra.mrb[16].mxu1 %v8303_v30  ;;  %v6950_v30 = vcombine.low %v5488_v57, %v5491_v5  ;;  %v3302_v56 = vshll.u32 %v8380_v33, 16  ;;  %v3306_v62 = vshrl.u32 %v8380_v33, 16  ;;  %v3317_v57 = vshrl.u32 %v6612_v37, 16 }
 0x1a5   : > { %7641 = vmatprep.mubr.bf16.mxu1 %v8304_v25  ;;  %v3296_v25 = vshll.u32 %v6609_v47, 16  ;;  %v3262_v1 = vrot.slane %v3261_v49, 4  ;;  %v3257_v5 = vsel %vm8536_vm2, %v3252_v12, %v3256_v2  ;;  %v8383_v49 = vld [vmem:[#allocation2 + $0xa0] sm:$0xf]  ;;  %v3322_v2 = vrot.slane %v3320_v46, 5 }
 0x1a6   : > { %v10167_v16 = vrot.slane %v3302_v56, 5  ;;  %v3308_v29 = vrot.slane %v3306_v62, 4  ;;  %v3350_v0 = vshll.u32 %v8383_v49, 16  ;;  %v3354_v4 = vshrl.u32 %v8383_v49, 16  ;;  %v8309_v62 = vld [vmem:[#allocation2 + $0xc0] sm:$0xff]  }
 0x1a7   : > { %v3298_v41 = vrot.slane %v3296_v25, 5  ;;  %v3267_v23 = vsel %vm8536_vm2, %v3262_v1, %v3266_v8  ;;  %v3319_v33 = vrot.slane %v3317_v57, 4  ;;  %v10364_v56 = vcombine.low %v9872_v22, %v9891_v53  ;;  %v8384_v53 = vld [vmem:[#allocation2 + $0x98] sm:$0x1] }
 0x1a8   : > { %v3309_v25 = vor.u32 %v3308_v29, %v10167_v16  ;;  %v10365_v12 = vcombine.low %v9884_v21, %v9903_v3  ;;  %v6651_v37 = vcombine.low %v3257_v5, %v3267_v23  ;;  %v6618_v29 = vld [vmem:[#allocation2 + $0xa8] sm:$0xf]  ;;  %v8385_v21 = vld [vmem:[#allocation2 + $0xa4] sm:$0x1] }
 0x1a9   : > { %v3299_v43 = vor.u32 %v3298_v41, %v3295_v7  ;;  %v10182_v7 = vrot.slane %v3350_v0, 5  ;;  %v3356_v41 = vrot.slane %v3354_v4, 4  ;;  %v3323_v22 = vor.u32 %v3322_v2, %v3319_v33 }
 0x1aa   : > { %7866 = vmatmul.mubr.bf16.gmra.mrb[4].mxu0 %v6950_v30  ;;  %v3341_v30 = vshrl.u32 %v6615_v58, 16  ;;  %v3310_v46 = vrot.slane %v3309_v25, 4  ;;  %v3336_v58 = vshll.u32 %v8384_v53, 16  ;;  %v3360_v3 = vshll.u32 %v8385_v21, 16  ;;  %v6624_v53 = vld [vmem:[#allocation2 + $0xc0] sm:$0xf] }
 0x1ab   : > { %7869 = vmatprep.mubr.bf16.mxu0 %v10363_v10  ;;  %v3314_v10 = vrot.slane %v3312_v45, 5  ;;  %v3300_v57 = vrot.slane %v3299_v43, 4  ;;  %v3365_v5 = vshrl.u32 %v6618_v29, 16  ;;  %v3368_v23 = vshll.u32 %v6618_v29, 16  ;;  %v6621_v45 = vld [vmem:[#allocation2 + $0xb4] sm:$0xf] }
 0x1ac   : > { %7642 = vmatmul.mubr.bf16.gmra.mrb[20].mxu1 %v8305_v54  ;;  %v8382_v54 = vld [vmem:[#allocation2 + $0x94] sm:$0xf]  ;;  %v3324_v4 = vrot.slane %v3323_v22, 4  ;;  %v3338_v43 = vrot.slane %v3336_v58, 5  ;;  %v10366_v25 = vcombine.low %v9914_v26, %v9932_v6  ;;  %v3389_v33 = vshrl.u32 %v6621_v45, 16 }
 0x1ad   : > { %7645 = vmatprep.mubr.bf16.mxu1 %v8306_v63  ;;  %v3326_v63 = vshll.u32 %v8382_v54, 16  ;;  %v3330_v47 = vshrl.u32 %v8382_v54, 16  ;;  %v3305_v49 = vsel %vm8536_vm2, %v3300_v57, %v10167_v16  ;;  %v3315_v0 = vsel %vm8536_vm2, %v3310_v46, %v3314_v10 }
 0x1ae   : > { %v3392_v2 = vshll.u32 %v6621_v45, 16  ;;  %v3362_v16 = vrot.slane %v3360_v3, 5  ;;  %v6653_v57 = vcombine.low %v3305_v49, %v3315_v0  ;;  %v3391_v26 = vrot.slane %v3389_v33, 4 }
 0x1af   : > { %v10180_v1 = vrot.slane %v3326_v63, 5  ;;  %v3332_v8 = vrot.slane %v3330_v47, 4  ;;  %v3357_v63 = vor.u32 %v3356_v41, %v10182_v7  ;;  %v8386_v47 = vld [vmem:[#allocation2 + $0xac] sm:$0xf]  ;;  %v3416_v45 = vshll.u32 %v6624_v53, 16 }
 0x1b0   : > { %v3394_v6 = vrot.slane %v3392_v2, 5 }
 0x1b1   : > { %v3333_v51 = vor.u32 %v3332_v8, %v10180_v1  ;;  %v3367_v8 = vrot.slane %v3365_v5, 4  ;;  %v3329_v58 = vsel %vm8536_vm2, %v3324_v4, %v10180_v1  ;;  %v8389_v1 = vld [vmem:[#allocation2 + $0xc4] sm:$0xf]  ;;  %v3418_v33 = vrot.slane %v3416_v45, 5 }
 0x1b2   : > { %7870 = vmatmul.mubr.bf16.gmra.mrb[8].mxu0 %v10364_v56  ;;  %v8387_v56 = vld [vmem:[#allocation2 + $0xb8] sm:$0xf] }
 0x1b3   : > { %7873 = vmatprep.mubr.bf16.mxu0 %v10365_v12  ;;  %v3402_v12 = vshrl.u32 %v8387_v56, 16 }
 0x1b4   : > { %7646 = vmatmul.mubr.bf16.gmra.mrb[24].mxu1 %v8307_v34  ;;  %v3343_v34 = vrot.slane %v3341_v30, 4  ;;  %v3374_v30 = vshll.u32 %v8386_v47, 16 }
 0x1b5   : > { %7649 = vmatprep.mubr.bf16.mxu1 %v8308_v14  ;;  %v3346_v14 = vrot.slane %v3344_v19, 5  ;;  %v3378_v19 = vshrl.u32 %v8386_v47, 16  ;;  %v3404_v22 = vrot.slane %v3402_v12, 4  ;;  %v8391_v12 = vld [vmem:[#allocation2 + $0xc8] sm:$0x1] }
 0x1b6   : > { %v3376_v41 = vrot.slane %v3374_v30, 5  ;;  %v8390_v30 = vld [vmem:[#allocation2 + $0xbc] sm:$0x1] }
 0x1b7   : > { %v3347_v54 = vor.u32 %v3346_v14, %v3343_v34  ;;  %v3370_v34 = vrot.slane %v3368_v23, 5  ;;  %v3358_v14 = vrot.slane %v3357_v63, 4  ;;  %v3380_v29 = vrot.slane %v3378_v19, 4 }
 0x1b8   : > { %v3413_v23 = vshrl.u32 %v6624_v53, 16  ;;  %v3426_v63 = vshrl.u32 %v8389_v1, 16  ;;  %v3408_v19 = vshll.u32 %v8390_v30, 16 }
 0x1b9   : > { %v3348_v10 = vrot.slane %v3347_v54, 4  ;;  %v3363_v21 = vsel %vm8536_vm2, %v3358_v14, %v3362_v16  ;;  %v3371_v3 = vor.u32 %v3370_v34, %v3367_v8  ;;  %v3381_v5 = vor.u32 %v3380_v29, %v3376_v41 }
 0x1ba   : > { %7874 = vmatmul.mubr.bf16.gmra.mrb[12].mxu0 %v10366_v25  ;;  %v3422_v54 = vshll.u32 %v8389_v1, 16  ;;  %v3415_v25 = vrot.slane %v3413_v23, 4  ;;  %v3410_v60 = vrot.slane %v3408_v19, 5 }
 0x1bb   : > { %7877 = vmatprep.mubr.bf16.mxu0 %v6955_v18  ;;  %v3384_v18 = vshll.u32 %v8388_v31, 16  ;;  %v3372_v0 = vrot.slane %v3371_v3, 4  ;;  %v3382_v4 = vrot.slane %v3381_v5, 4 }
 0x1bc   : > { %7650 = vmatmul.mubr.bf16.gmra.mrb[28].mxu1 %v8309_v62  ;;  %v3398_v62 = vshll.u32 %v8387_v56, 16  ;;  %v3424_v2 = vrot.slane %v3422_v54, 5  ;;  %v3428_v56 = vrot.slane %v3426_v63, 4  ;;  %v3419_v44 = vor.u32 %v3418_v33, %v3415_v25 }
 0x1bd   : > { %7685 = vmatprep.mubr.bf16.mxu1 %v6651_v37  ;;  %v3334_v37 = vrot.slane %v3333_v51, 4  ;;  %v3353_v51 = vsel %vm8536_vm2, %v3348_v10, %v10182_v7 }
 0x1be   : > { %v3400_v46 = vrot.slane %v3398_v62, 5  ;;  %v6655_v49 = vcombine.low %v3353_v51, %v3363_v21  ;;  %v3420_v14 = vrot.slane %v3419_v44, 4 }
 0x1bf   : > { %v3339_v17 = vsel %vm8536_vm2, %v3334_v37, %v3338_v43  ;;  %v3386_v43 = vrot.slane %v3384_v18, 5  ;;  %v3432_v37 = vshll.u32 %v8391_v12, 16 }
 0x1c0   : > { %v3405_v47 = vor.u32 %v3404_v22, %v3400_v46  ;;  %v6654_v7 = vcombine.low %v3329_v58, %v3339_v17  ;;  %v3425_v28 = vsel %vm8536_vm2, %v3420_v14, %v3424_v2 }
 0x1c1   : > { %v3387_v20 = vsel %vm8536_vm2, %v3382_v4, %v3386_v43  ;;  %v3434_v29 = vrot.slane %v3432_v37, 5 }
 0x1c2   : > { %7878 = vmatmul.mubr.bf16.gmra.mrb[16].mxu0 %v6956_v36  ;;  %v3406_v9 = vrot.slane %v3405_v47, 4  ;;  %v3377_v36 = vsel %vm8536_vm2, %v3372_v0, %v3376_v41 }
 0x1c3   : > { %7881 = vmatprep.mubr.bf16.mxu0 %v6957_v39  ;;  %v3429_v39 = vor.u32 %v3428_v56, %v3424_v2  ;;  %v6656_v34 = vcombine.low %v3377_v36, %v3387_v20 }
 0x1c4   : > { %7686 = vmatmul.mubr.bf16.vlgmr.msra.gmra.mrb[16].mxu1 %v9998_v11  ;;  %v3395_v11 = vor.u32 %v3394_v6, %v3391_v26  ;;  %v3411_v8 = vsel %vm8536_vm2, %v3406_v9, %v3410_v60 }
 0x1c5   : > { %7689 = vmatprep.mubr.bf16.mxu1 %v6653_v57  ;;  %v3430_v41 = vrot.slane %v3429_v39, 4 }
 0x1c6   : > { %v3396_v62 = vrot.slane %v3395_v11, 4 }
 0x1c7   : > { %v3435_v13 = vsel %vm8536_vm2, %v3430_v41, %v3434_v29 }
 0x1c8   : > { %v3401_v16 = vsel %vm8536_vm2, %v3396_v62, %v3400_v46 }
 0x1c9   : > { %v6657_v10 = vcombine.low %v3401_v16, %v3411_v8 }
 0x1ca   : > { %7882 = vmatmul.mubr.bf16.gmra.mrb[20].mxu0 %v6958_v55  ;;  %v6658_v55 = vcombine.low %v3425_v28, %v3435_v13 }
 0x1cb   : > { %7885 = vmatprep.mubr.bf16.mxu0 %v6959_v42 }
 0x1cc   : > { %7690 = vmatmul.mubr.bf16.gmra.mrb[20].mxu1 %v6654_v7 }
 0x1cd   : > { %7693 = vmatprep.mubr.bf16.mxu1 %v6655_v49 }
 0x1d2   : > { %7886 = vmatmul.mubr.bf16.gmra.mrb[24].mxu0 %v6960_v48 }
 0x1d3   : > { %7889 = vmatprep.mubr.bf16.mxu0 %v6961_v52 }
 0x1d4   : > { %7694 = vmatmul.mubr.bf16.gmra.mrb[24].mxu1 %v6656_v34 }
 0x1d5   : > { %7697 = vmatprep.mubr.bf16.mxu1 %v6657_v10 }
 0x1da   : > { %7890 = vmatmul.mubr.bf16.gmra.mrb[28].mxu0 %v6962_v59 }
 0x1dc   : > { %7698 = vmatmul.mubr.bf16.gmra.mrb[28].mxu1 %v6658_v55 }
 0x257   : > { %v7623_v24 = vpop.f32.mrb[0].mxu1 }
 0x258   : > { %v2845_v32 = vpop.f32.mrb[1].mxu1 }
 0x259   : > { %v7624_v42 = vpop.f32.mrb[2].mxu1 }
 0x25a   : > { %v2848_v57 = vpop.f32.mrb[3].mxu1 }
 0x25f   : > { %v7627_v35 = vpop.f32.mrb[4].mxu1 }
 0x260   : > { %v2861_v26 = vpop.f32.mrb[5].mxu1 }
 0x261   : > { %v7628_v6 = vpop.f32.mrb[6].mxu1 }
 0x262   : > { %v2864_v46 = vpop.f32.mrb[7].mxu1 }
 0x267   : > { %v7631_v38 = vpop.f32.mrb[8].mxu1 }
 0x268   : > { %v2877_v40 = vpop.f32.mrb[9].mxu1 }
 0x269   : > { %v7632_v48 = vpop.f32.mrb[10].mxu1 }
 0x26a   : > { %v2880_v27 = vpop.f32.mrb[11].mxu1 }
 0x26f   : > { %v10241_v61 = vpop.f32.mrb[12].mxu1 }
 0x270   : > { %v10243_v52 = vpop.f32.mrb[13].mxu1 }
 0x271   : > { %v10245_v22 = vpop.f32.mrb[14].mxu1 }
 0x272   : > { %v10247_v50 = vpop.f32.mrb[15].mxu1 }
 0x275   : > { %v7863_v15 = vpop.f32.mrb[0].mxu0 }
 0x276   : > { %v7909_v59 = vadd.f32 %v7863_v15, %v7623_v24  ;;  %v5739_v53 = vpop.f32.mrb[1].mxu0 }
 0x277   : > { %v7910_v58 = vadd.f32 %v5739_v53, %v2845_v32  ;;  %v7864_v17 = vpop.f32.mrb[2].mxu0 }
 0x278   : > { %v7911_v31 = vadd.f32 %v7864_v17, %v7624_v42  ;;  %v5742_v18 = vpop.f32.mrb[3].mxu0  ;;  %v6098_v1 = vmul.f32 %v7909_v59, %v7909_v59 }
 0x279   : > { %v7912_v51 = vadd.f32 %v5742_v18, %v2848_v57  ;;  %v6096_v3 = vmul.f32 %v7910_v58, %v7910_v58 }
 0x27a   : > { %v7143_v21 = vpack.c.bf16 %v7911_v31, %v7909_v59  ;;  %v6099_v19 = vmul.f32 %v7911_v31, %v7911_v31 }
 0x27b   : > { %v7138_v5 = vpack.c.bf16 %v7912_v51, %v7910_v58  ;;  %v6058_v23 = vadd.f32 %v7912_v51, %v7910_v58  ;;  %v6097_v45 = vmul.f32 %v7912_v51, %v7912_v51 }
 0x27c   : > { %7230 = vst [vmem:[%s10254_s26 + $0x8] sm:$0xff] %v7143_v21  }
 0x27d   : > { %7139 = vst [vmem:[%s10254_s26] sm:$0xff] %v7138_v5   ;;  %v6059_v54 = vadd.f32 %v7909_v59, %v6058_v23  ;;  %v6128_v63 = vadd.f32 %v6097_v45, %v6096_v3  ;;  %v7867_v11 = vpop.f32.mrb[4].mxu0 }
 0x27e   : > { %v7913_v47 = vadd.f32 %v7867_v11, %v7627_v35  ;;  %v5755_v30 = vpop.f32.mrb[5].mxu0 }
 0x27f   : > { %v6129_v7 = vadd.f32 %v6128_v63, %v6098_v1  ;;  %v7914_v49 = vadd.f32 %v5755_v30, %v2861_v26  ;;  %v6060_v0 = vadd.f32 %v7911_v31, %v6059_v54  ;;  %v7868_v4 = vpop.f32.mrb[6].mxu0 }
 0x280   : > { %v7915_v43 = vadd.f32 %v7868_v4, %v7628_v6  ;;  %v5758_v25 = vpop.f32.mrb[7].mxu0  ;;  %v6102_v39 = vmul.f32 %v7913_v47, %v7913_v47 }
 0x281   : > { %v6061_v33 = vadd.f32 %v7914_v49, %v6060_v0  ;;  %v6100_v2 = vmul.f32 %v7914_v49, %v7914_v49  ;;  %v6130_v56 = vadd.f32 %v6129_v7, %v6099_v19  ;;  %v7916_v62 = vadd.f32 %v5758_v25, %v2864_v46 }
 0x282   : > { %v7153_v9 = vpack.c.bf16 %v7915_v43, %v7913_v47  ;;  %v6103_v10 = vmul.f32 %v7915_v43, %v7915_v43 }
 0x283   : > { %v6131_v60 = vadd.f32 %v6130_v56, %v6100_v2  ;;  %v7148_v36 = vpack.c.bf16 %v7916_v62, %v7914_v49  ;;  %v6062_v20 = vadd.f32 %v7916_v62, %v6061_v33  ;;  %v6101_v44 = vmul.f32 %v7916_v62, %v7916_v62 }
 0x284   : > { %7232 = vst [vmem:[%s10254_s26 + $0x18] sm:$0xff] %v7153_v9  }
 0x285   : > { %7231 = vst [vmem:[%s10254_s26 + $0x10] sm:$0xff] %v7148_v36   ;;  %v6063_v12 = vadd.f32 %v7913_v47, %v6062_v20  ;;  %v6132_v37 = vadd.f32 %v6131_v60, %v6101_v44  ;;  %v7871_v16 = vpop.f32.mrb[8].mxu0 }
 0x286   : > { %v7917_v8 = vadd.f32 %v7871_v16, %v7631_v38  ;;  %v5771_v34 = vpop.f32.mrb[9].mxu0 }
 0x287   : > { %v6133_v14 = vadd.f32 %v6132_v37, %v6102_v39  ;;  %v7918_v41 = vadd.f32 %v5771_v34, %v2877_v40  ;;  %v6064_v29 = vadd.f32 %v7915_v43, %v6063_v12  ;;  %v7872_v28 = vpop.f32.mrb[10].mxu0 }
 0x288   : > { %v7919_v13 = vadd.f32 %v7872_v28, %v7632_v48  ;;  %v5774_v55 = vpop.f32.mrb[11].mxu0  ;;  %v6106_v38 = vmul.f32 %v7917_v8, %v7917_v8 }
 0x289   : > { %v6065_v24 = vadd.f32 %v7918_v41, %v6064_v29  ;;  %v6104_v32 = vmul.f32 %v7918_v41, %v7918_v41  ;;  %v6134_v42 = vadd.f32 %v6133_v14, %v6103_v10  ;;  %v7920_v57 = vadd.f32 %v5774_v55, %v2880_v27 }
 0x28a   : > { %v7163_v35 = vpack.c.bf16 %v7919_v13, %v7917_v8  ;;  %v6107_v48 = vmul.f32 %v7919_v13, %v7919_v13 }
 0x28b   : > { %v6135_v26 = vadd.f32 %v6134_v42, %v6104_v32  ;;  %v7158_v6 = vpack.c.bf16 %v7920_v57, %v7918_v41  ;;  %v6066_v46 = vadd.f32 %v7920_v57, %v6065_v24  ;;  %v6105_v15 = vmul.f32 %v7920_v57, %v7920_v57 }
 0x28c   : > { %7234 = vst [vmem:[%s10254_s26 + $0x28] sm:$0xff] %v7163_v35  }
 0x28d   : > { %7233 = vst [vmem:[%s10254_s26 + $0x20] sm:$0xff] %v7158_v6   ;;  %v6067_v59 = vadd.f32 %v7917_v8, %v6066_v46  ;;  %v6136_v53 = vadd.f32 %v6135_v26, %v6105_v15  ;;  %v7875_v40 = vpop.f32.mrb[12].mxu0 }
 0x28e   : > { %v7921_v58 = vadd.f32 %v7875_v40, %v10241_v61  ;;  %v5787_v17 = vpop.f32.mrb[13].mxu0 }
 0x28f   : > { %v6137_v31 = vadd.f32 %v6136_v53, %v6106_v38  ;;  %v7922_v18 = vadd.f32 %v5787_v17, %v10243_v52  ;;  %v6068_v27 = vadd.f32 %v7919_v13, %v6067_v59  ;;  %v7876_v51 = vpop.f32.mrb[14].mxu0 }
 0x290   : > { %v7923_v21 = vadd.f32 %v7876_v51, %v10245_v22  ;;  %v5790_v3 = vpop.f32.mrb[15].mxu0  ;;  %v6110_v52 = vmul.f32 %v7921_v58, %v7921_v58 }
 0x291   : > { %v6069_v5 = vadd.f32 %v7922_v18, %v6068_v27  ;;  %v6108_v23 = vmul.f32 %v7922_v18, %v7922_v18  ;;  %v6138_v45 = vadd.f32 %v6137_v31, %v6107_v48  ;;  %v7924_v1 = vadd.f32 %v5790_v3, %v10247_v50 }
 0x292   : > { %v7173_v54 = vpack.c.bf16 %v7923_v21, %v7921_v58  ;;  %v6111_v33 = vmul.f32 %v7923_v21, %v7923_v21 }
 0x293   : > { %v6139_v63 = vadd.f32 %v6138_v45, %v6108_v23  ;;  %v7168_v61 = vpack.c.bf16 %v7924_v1, %v7922_v18  ;;  %v6070_v11 = vadd.f32 %v7924_v1, %v6069_v5  ;;  %v6109_v47 = vmul.f32 %v7924_v1, %v7924_v1 }
 0x294   : > { %7236 = vst [vmem:[%s10254_s26 + $0x38] sm:$0xff] %v7173_v54  }
 0x295   : > { %7235 = vst [vmem:[%s10254_s26 + $0x30] sm:$0xff] %v7168_v61   ;;  %v6071_v7 = vadd.f32 %v7921_v58, %v6070_v11  ;;  %v6140_v49 = vadd.f32 %v6139_v63, %v6109_v47  ;;  %v7879_v0 = vpop.f32.mrb[16].mxu0 }
 0x296   : > { %v5803_v43 = vpop.f32.mrb[17].mxu0 }
 0x297   : > { %v7687_v30 = vpop.f32.mrb[16].mxu1  ;;  %v6141_v2 = vadd.f32 %v6140_v49, %v6110_v52  ;;  %v6072_v56 = vadd.f32 %v7923_v21, %v6071_v7  ;;  %v7880_v62 = vpop.f32.mrb[18].mxu0 }
 0x298   : > { %v3663_v19 = vpop.f32.mrb[17].mxu1  ;;  %v7925_v4 = vadd.f32 %v7879_v0, %v7687_v30  ;;  %v5806_v60 = vpop.f32.mrb[19].mxu0 }
 0x299   : > { %v7688_v22 = vpop.f32.mrb[18].mxu1  ;;  %v7926_v50 = vadd.f32 %v5803_v43, %v3663_v19  ;;  %v6142_v44 = vadd.f32 %v6141_v2, %v6111_v33 }
 0x29a   : > { %v3666_v25 = vpop.f32.mrb[19].mxu1  ;;  %v7927_v9 = vadd.f32 %v7880_v62, %v7688_v22  ;;  %v6114_v41 = vmul.f32 %v7925_v4, %v7925_v4 }
 0x29b   : > { %v6073_v36 = vadd.f32 %v7926_v50, %v6072_v56  ;;  %v6112_v20 = vmul.f32 %v7926_v50, %v7926_v50  ;;  %v7928_v39 = vadd.f32 %v5806_v60, %v3666_v25 }
 0x29c   : > { %v7183_v12 = vpack.c.bf16 %v7927_v9, %v7925_v4  ;;  %v6115_v57 = vmul.f32 %v7927_v9, %v7927_v9 }
 0x29d   : > { %v6143_v37 = vadd.f32 %v6142_v44, %v6112_v20  ;;  %v7178_v16 = vpack.c.bf16 %v7928_v39, %v7926_v50  ;;  %v6074_v8 = vadd.f32 %v7928_v39, %v6073_v36  ;;  %v6113_v34 = vmul.f32 %v7928_v39, %v7928_v39  ;;  %v7883_v13 = vpop.f32.mrb[20].mxu0 }
 0x29e   : > { %7238 = vst [vmem:[%s10254_s26 + $0x48] sm:$0xff] %v7183_v12   ;;  %v5819_v32 = vpop.f32.mrb[21].mxu0 }
 0x29f   : > { %v7691_v10 = vpop.f32.mrb[20].mxu1  ;;  %7237 = vst [vmem:[%s10254_s26 + $0x40] sm:$0xff] %v7178_v16   ;;  %v6075_v29 = vadd.f32 %v7925_v4, %v6074_v8  ;;  %v6144_v28 = vadd.f32 %v6143_v37, %v6113_v34  ;;  %v7884_v46 = vpop.f32.mrb[22].mxu0 }
 0x2a0   : > { %v3679_v14 = vpop.f32.mrb[21].mxu1  ;;  %v7929_v24 = vadd.f32 %v7883_v13, %v7691_v10  ;;  %v5822_v38 = vpop.f32.mrb[23].mxu0 }
 0x2a1   : > { %v7692_v55 = vpop.f32.mrb[22].mxu1  ;;  %v6145_v35 = vadd.f32 %v6144_v28, %v6114_v41  ;;  %v7930_v26 = vadd.f32 %v5819_v32, %v3679_v14  ;;  %v6076_v6 = vadd.f32 %v7927_v9, %v6075_v29 }
 0x2a2   : > { %v3682_v42 = vpop.f32.mrb[23].mxu1  ;;  %v7931_v15 = vadd.f32 %v7884_v46, %v7692_v55  ;;  %v6118_v3 = vmul.f32 %v7929_v24, %v7929_v24 }
 0x2a3   : > { %v6077_v59 = vadd.f32 %v7930_v26, %v6076_v6  ;;  %v6116_v53 = vmul.f32 %v7930_v26, %v7930_v26  ;;  %v6146_v40 = vadd.f32 %v6145_v35, %v6115_v57  ;;  %v7932_v58 = vadd.f32 %v5822_v38, %v3682_v42 }
 0x2a4   : > { %v7193_v17 = vpack.c.bf16 %v7931_v15, %v7929_v24  ;;  %v6119_v11 = vmul.f32 %v7931_v15, %v7931_v15 }
 0x2a5   : > { %v6147_v48 = vadd.f32 %v6146_v40, %v6116_v53  ;;  %v7188_v31 = vpack.c.bf16 %v7932_v58, %v7930_v26  ;;  %v6078_v18 = vadd.f32 %v7932_v58, %v6077_v59  ;;  %v6117_v27 = vmul.f32 %v7932_v58, %v7932_v58  ;;  %v7887_v45 = vpop.f32.mrb[24].mxu0 }
 0x2a6   : > { %7240 = vst [vmem:[%s10254_s26 + $0x58] sm:$0xff] %v7193_v17   ;;  %v5835_v63 = vpop.f32.mrb[25].mxu0 }
 0x2a7   : > { %v7695_v51 = vpop.f32.mrb[24].mxu1  ;;  %7239 = vst [vmem:[%s10254_s26 + $0x50] sm:$0xff] %v7188_v31   ;;  %v6079_v5 = vadd.f32 %v7929_v24, %v6078_v18  ;;  %v6148_v23 = vadd.f32 %v6147_v48, %v6117_v27  ;;  %v7888_v52 = vpop.f32.mrb[26].mxu0 }
 0x2a8   : > { %v3695_v21 = vpop.f32.mrb[25].mxu1  ;;  %v7933_v54 = vadd.f32 %v7887_v45, %v7695_v51  ;;  %v5838_v49 = vpop.f32.mrb[27].mxu0 }
 0x2a9   : > { %v7696_v1 = vpop.f32.mrb[26].mxu1  ;;  %v6149_v47 = vadd.f32 %v6148_v23, %v6118_v3  ;;  %v7934_v30 = vadd.f32 %v5835_v63, %v3695_v21  ;;  %v6080_v19 = vadd.f32 %v7931_v15, %v6079_v5 }
 0x2aa   : > { %v3698_v61 = vpop.f32.mrb[27].mxu1  ;;  %v7935_v7 = vadd.f32 %v7888_v52, %v7696_v1  ;;  %v6122_v60 = vmul.f32 %v7933_v54, %v7933_v54 }
 0x2ab   : > { %v6081_v0 = vadd.f32 %v7934_v30, %v6080_v19  ;;  %v6120_v22 = vmul.f32 %v7934_v30, %v7934_v30  ;;  %v6150_v4 = vadd.f32 %v6149_v47, %v6119_v11  ;;  %v7936_v43 = vadd.f32 %v5838_v49, %v3698_v61 }
 0x2ac   : > { %v7203_v25 = vpack.c.bf16 %v7935_v7, %v7933_v54  ;;  %v6123_v8 = vmul.f32 %v7935_v7, %v7935_v7 }
 0x2ad   : > { %v6151_v33 = vadd.f32 %v6150_v4, %v6120_v22  ;;  %v7198_v2 = vpack.c.bf16 %v7936_v43, %v7934_v30  ;;  %v6082_v50 = vadd.f32 %v7936_v43, %v6081_v0  ;;  %v6121_v56 = vmul.f32 %v7936_v43, %v7936_v43  ;;  %v7891_v44 = vpop.f32.mrb[28].mxu0 }
 0x2ae   : > { %7242 = vst [vmem:[%s10254_s26 + $0x68] sm:$0xff] %v7203_v25   ;;  %v5851_v37 = vpop.f32.mrb[29].mxu0 }
 0x2af   : > { %v7699_v62 = vpop.f32.mrb[28].mxu1  ;;  %7241 = vst [vmem:[%s10254_s26 + $0x60] sm:$0xff] %v7198_v2   ;;  %v6083_v36 = vadd.f32 %v7933_v54, %v6082_v50  ;;  %v6152_v20 = vadd.f32 %v6151_v33, %v6121_v56  ;;  %v7892_v41 = vpop.f32.mrb[30].mxu0 }
 0x2b0   : > { %v3711_v9 = vpop.f32.mrb[29].mxu1  ;;  %v7937_v12 = vadd.f32 %v7891_v44, %v7699_v62  ;;  %v5854_v28 = vpop.f32.mrb[31].mxu0 }
 0x2b1   : > { %v7700_v39 = vpop.f32.mrb[30].mxu1  ;;  %v6153_v34 = vadd.f32 %v6152_v20, %v6122_v60  ;;  %v7938_v10 = vadd.f32 %v5851_v37, %v3711_v9  ;;  %v6084_v14 = vadd.f32 %v7935_v7, %v6083_v36 }
 0x2b2   : > { %v3714_v16 = vpop.f32.mrb[31].mxu1  ;;  %v7939_v29 = vadd.f32 %v7892_v41, %v7700_v39  ;;  %v6126_v46 = vmul.f32 %v7937_v12, %v7937_v12 }
 0x2b3   : > { %v6085_v13 = vadd.f32 %v7938_v10, %v6084_v14  ;;  %v6124_v55 = vmul.f32 %v7938_v10, %v7938_v10  ;;  %v6154_v24 = vadd.f32 %v6153_v34, %v6123_v8  ;;  %v7940_v32 = vadd.f32 %v5854_v28, %v3714_v16 }
 0x2b4   : > { %v7213_v42 = vpack.c.bf16 %v7939_v29, %v7937_v12  ;;  %v6127_v59 = vmul.f32 %v7939_v29, %v7939_v29 }
 0x2b5   : > { %v6155_v57 = vadd.f32 %v6154_v24, %v6124_v55  ;;  %v7208_v35 = vpack.c.bf16 %v7940_v32, %v7938_v10  ;;  %v6086_v26 = vadd.f32 %v7940_v32, %v6085_v13  ;;  %v6125_v6 = vmul.f32 %v7940_v32, %v7940_v32 }
 0x2b6   : > { %7244 = vst [vmem:[%s10254_s26 + $0x78] sm:$0xff] %v7213_v42  }
 0x2b7   : > { %7243 = vst [vmem:[%s10254_s26 + $0x70] sm:$0xff] %v7208_v35   ;;  %v6087_v15 = vadd.f32 %v7937_v12, %v6086_v26  ;;  %v6156_v38 = vadd.f32 %v6155_v57, %v6125_v6 }
 0x2b9   : > { %v6088_v53 = vadd.f32 %v7939_v29, %v6087_v15  ;;  %v6157_v40 = vadd.f32 %v6156_v38, %v6126_v46 }
 0x2bb   : > { %v6089_v58 = vrot.slane %v6088_v53, 4  ;;  %v6158_v17 = vadd.f32 %v6157_v40, %v6127_v59 }
 0x2bd   : > { %v6090_v48 = vadd.f32 %v6089_v58, %v6088_v53  ;;  %v6159_v31 = vrot.slane %v6158_v17, 4 }
 0x2bf   : > { %v6091_v18 = vrot.slane %v6090_v48, 2  ;;  %v6160_v27 = vadd.f32 %v6159_v31, %v6158_v17 }
 0x2c1   : > { %v6092_v51 = vadd.f32 %v6091_v18, %v6090_v48  ;;  %v6161_v21 = vrot.slane %v6160_v27, 2 }
 0x2c3   : > { %v6093_v3 = vrot.slane %v6092_v51, 1  ;;  %v6162_v5 = vadd.f32 %v6161_v21, %v6160_v27 }
 0x2c5   : > { %v6094_v23 = vadd.f32 %v6093_v3, %v6092_v51  ;;  %v6163_v45 = vrot.slane %v6162_v5, 1 }
 0x2c7   : > { %6095 = vst [vmem:[%s308_s27] sm:$0x1] %v6094_v23  ;;  %v6164_v1 = vadd.f32 %v6163_v45, %v6162_v5 }
 0x2c9   : > { %6165 = vst [vmem:[%s308_s27 + $0x1] sm:$0x1] %v6164_v1 }
 0x2ca PF: > { %s16_s20 = sadd.s32 1, %s8414_s20   ;;  %s10367_s18 = smov %s8410_s19 }
 0x2cb   : > { %p13_p5 = scmp.ge.s32.totalorder %s16_s20, 4   ;;  %s10368_s19 = smov %s10370_s21 }
 0x2cd   :  { %15 = sbr.rel (!%p13_p5) target bundleno = 2 (0x2), region = 97 }

</bundles_post_ra>
